<compile_context>
chip_gen: v6e
topology: v6e:2x2x1
jax: 0.10.0
libtpu: 0.0.40
codegen_flags: <defaults>
</compile_context>

<pallas_src>
import functools
import math

import jax
import jax.numpy as jnp
from jax.experimental import pallas as pl
from jax.experimental.pallas import tpu as pltpu


MXU_DTYPE = jnp.bfloat16   # operand dtype for MXU matmuls (accumulation stays f32)


# ---------------------------------------------------------------------------
# In-kernel helpers
# ---------------------------------------------------------------------------

def _layernorm(x, g, b, eps):
    """LayerNorm over last dim; x: (R, E) f32, g/b: (1, E) f32."""
    mean = jnp.mean(x, axis=-1, keepdims=True)
    var = jnp.mean(jnp.square(x - mean), axis=-1, keepdims=True)
    return (x - mean) * jax.lax.rsqrt(var + eps) * g + b


# ---------------------------------------------------------------------------
# The single fused Generator kernel
# ---------------------------------------------------------------------------

def _generator_kernel(zsel_ref, wl2s_ref, biaspos_ref,
                      wqkv_ref, wo_ref, wff1_ref, wff2_ref, vecs_ref,
                      wout_ref, bout_ref, o_ref,
                      *, batch, seq_len, n_heads, n_layers, eps):
    S = seq_len
    BS, E = biaspos_ref.shape
    Dh = E // n_heads
    dim_ff = wff1_ref.shape[-1]

    # ---- latent -> sequence, pos-embedding add fused, batch-folded (B*S, E) ----
    x = jnp.dot(zsel_ref[...], wl2s_ref[...],
                preferred_element_type=jnp.float32) + biaspos_ref[...]     # (BS, E) f32

    # ---- transformer encoder stack (statically unrolled, VMEM-resident) ----
    for l in range(n_layers):
        wqkv = wqkv_ref[l]                     # (E, 3E) bf16 (scale folded into Q cols)
        wo   = wo_ref[l]                       # (E, E)  bf16
        wff1 = wff1_ref[l]                     # (E, Dff) bf16
        wff2 = wff2_ref[l]                     # (Dff, E) bf16
        vecs = vecs_ref[l]                     # (8, Vmax) f32 packed small params
        b_qkv = vecs[0:1, :3 * E]
        b_out = vecs[1:2, :E]
        g1, b1 = vecs[2:3, :E], vecs[3:4, :E]
        b_ff1 = vecs[4:5, :dim_ff]
        b_ff2 = vecs[5:6, :E]
        g2, b2 = vecs[6:7, :E], vecs[7:8, :E]

        # fused QKV projection over the whole batch (M = B*S rows on the MXU)
        qkv = jnp.dot(x.astype(MXU_DTYPE), wqkv,
                      preferred_element_type=jnp.float32) + b_qkv          # (BS, 3E)
        qkv_bf = qkv.astype(MXU_DTYPE)                                     # single cast

        # self-attention: per batch element (rows), per head (lane slices);
        # per-head context accumulated straight through W_out rows (no concat).
        attn_rows = []
        for b in range(batch):
            r0 = b * S
            acc = jnp.zeros((S, E), jnp.float32)
            for h in range(n_heads):
                c0 = h * Dh
                q = qkv_bf[r0:r0 + S, c0:c0 + Dh]                          # (S, Dh)
                k = qkv_bf[r0:r0 + S, E + c0:E + c0 + Dh]
                v = qkv_bf[r0:r0 + S, 2 * E + c0:2 * E + c0 + Dh]
                # scores = (q*scale) @ k^T  (scale already folded into W_qkv)
                s = jax.lax.dot_general(q, k, (((1,), (1,)), ((), ())),
                                        preferred_element_type=jnp.float32)  # (S, S)
                m = jnp.max(s, axis=-1, keepdims=True)
                p = jnp.exp(s - m)
                p = p * pl.reciprocal(jnp.sum(p, axis=-1, keepdims=True),
                                      approx=True)                          # EUP recip
                ctx = jnp.dot(p.astype(MXU_DTYPE), v,
                              preferred_element_type=jnp.float32)            # (S, Dh)
                acc = acc + jnp.dot(ctx.astype(MXU_DTYPE), wo[c0:c0 + Dh, :],
                                    preferred_element_type=jnp.float32)      # (S, E)
            attn_rows.append(acc)
        attn = jnp.concatenate(attn_rows, axis=0) + b_out                   # (BS, E)

        # src = norm1(src + attn)
        x1 = _layernorm(x + attn, g1, b1, eps)

        # feed-forward (batch-folded)
        h1 = jnp.dot(x1.astype(MXU_DTYPE), wff1,
                     preferred_element_type=jnp.float32) + b_ff1            # (BS, Dff)
        h1 = jnp.maximum(h1, 0.0)
        h2 = jnp.dot(h1.astype(MXU_DTYPE), wff2,
                     preferred_element_type=jnp.float32) + b_ff2            # (BS, E)

        # src = norm2(src + ff)
        x = _layernorm(x1 + h2, g2, b2, eps)

    # ---- output projection; N padded to a 128-lane multiple -> unmasked store ----
    y = jnp.dot(x.astype(MXU_DTYPE), wout_ref[...],
                preferred_element_type=jnp.float32) + bout_ref[...]         # (BS, Npad)
    o_ref[...] = y


# ---------------------------------------------------------------------------
# Wrapper: one pallas_call for the whole forward
# ---------------------------------------------------------------------------

def generator_forward(z, packed, *, seq_len, embed_dim, n_heads,
                      n_tracks, n_pitches):
    B, latent_dim = z.shape
    S, E = seq_len, embed_dim
    n_layers = packed["wqkv"].shape[0]
    N = n_tracks * n_pitches
    npad = packed["wout_pad"].shape[1]

    # Block-diagonal latent expansion: row b*S+s holds z[b] in the s-th
    # latent_dim block, so Zsel @ W_big is the batch-folded (B*S, E) sequence.
    zsel = (z[:, None, None, :] *
            jnp.eye(S, dtype=z.dtype)[None, :, :, None])                    # (B,S,S,L)
    zsel = zsel.reshape(B * S, S * latent_dim).astype(MXU_DTYPE)

    biaspos = jnp.tile(packed["biaspos"], (B, 1))                           # (B*S, E)

    kernel = functools.partial(
        _generator_kernel, batch=B, seq_len=S, n_heads=n_heads,
        n_layers=n_layers, eps=1e-5)

    # Grid-less call: every operand is a single full-array VMEM block
    # (weights total < 1 MB at these shapes; no pipelining / double-buffering needed).
    y = pl.pallas_call(
        kernel,
        out_shape=jax.ShapeDtypeStruct((B * S, npad), jnp.float32),
    )(zsel, packed["wl2s_big"], biaspos,
      packed["wqkv"], packed["wo"], packed["wff1"], packed["wff2"],
      packed["vecs"], packed["wout_pad"], packed["bout_pad"])

    # wrapper-side layout plumbing only: slice off lane padding, then
    # view(B,S,T,P).permute(0,2,3,1) exactly like the PyTorch module
    y = y[:, :N].reshape(B, S, n_tracks, n_pitches)
    return jnp.transpose(y, (0, 2, 3, 1))


# ---------------------------------------------------------------------------
# Parameter init (natural PyTorch-like layout) + packing for the fused kernel
# ---------------------------------------------------------------------------

def init_params(key, *, latent_dim, seq_len, embed_dim, n_heads, n_layers,
                dim_ff, n_tracks, n_pitches):
    def nrm(k, shape, scale=0.02):
        return scale * jax.random.normal(k, shape, dtype=jnp.float32)

    keys = jax.random.split(key, 4 + n_layers)
    params = {
        "l2s_w": nrm(keys[0], (latent_dim, embed_dim * seq_len)),
        "l2s_b": jnp.zeros((embed_dim * seq_len,), jnp.float32),
        "pos":   nrm(keys[1], (seq_len, embed_dim), scale=1.0),
        "out_w": nrm(keys[2], (embed_dim, n_tracks * n_pitches)),
        "out_b": jnp.zeros((n_tracks * n_pitches,), jnp.float32),
        "layers": [],
    }
    for li in range(n_layers):
        lk = jax.random.split(keys[4 + li], 4)
        params["layers"].append({
            "attn_in_w":  nrm(lk[0], (embed_dim, 3 * embed_dim)),
            "attn_in_b":  jnp.zeros((3 * embed_dim,), jnp.float32),
            "attn_out_w": nrm(lk[1], (embed_dim, embed_dim)),
            "attn_out_b": jnp.zeros((embed_dim,), jnp.float32),
            "ln1_g": jnp.ones((embed_dim,), jnp.float32),
            "ln1_b": jnp.zeros((embed_dim,), jnp.float32),
            "ff1_w": nrm(lk[2], (embed_dim, dim_ff)),
            "ff1_b": jnp.zeros((dim_ff,), jnp.float32),
            "ff2_w": nrm(lk[3], (dim_ff, embed_dim)),
            "ff2_b": jnp.zeros((embed_dim,), jnp.float32),
            "ln2_g": jnp.ones((embed_dim,), jnp.float32),
            "ln2_b": jnp.zeros((embed_dim,), jnp.float32),
        })
    return params


def pack_params(p, *, latent_dim, seq_len, embed_dim, n_heads, dim_ff,
                n_tracks, n_pitches):
    """Restructure parameters for the fused kernel (all transforms are one-time,
    wrapper-side XLA ops)."""
    S, E, L = seq_len, embed_dim, latent_dim
    Dh = E // n_heads
    scale = 1.0 / math.sqrt(Dh)
    vmax = max(3 * E, dim_ff)

    # latent_to_seq weight regrouped so Zsel @ W_big directly yields (B*S, E):
    #   W_big[s*L + l, e] = l2s_w[l, s*E + e]
    wl2s_big = (p["l2s_w"].reshape(L, S, E)
                .transpose(1, 0, 2).reshape(S * L, E)).astype(MXU_DTYPE)
    biaspos = p["l2s_b"].reshape(S, E) + p["pos"]                        # (S, E) f32

    def stack(key):
        return jnp.stack([lp[key] for lp in p["layers"]])

    wqkv = stack("attn_in_w")
    wqkv = wqkv.at[:, :, :E].multiply(scale)      # fold 1/sqrt(Dh) into Q columns
    wqkv = wqkv.astype(MXU_DTYPE)
    wo = stack("attn_out_w").astype(MXU_DTYPE)
    wff1 = stack("ff1_w").astype(MXU_DTYPE)
    wff2 = stack("ff2_w").astype(MXU_DTYPE)

    def padv(v):
        return jnp.pad(v, (0, vmax - v.shape[0]))

    vecs = jnp.stack([
        jnp.stack([padv(lp["attn_in_b"]), padv(lp["attn_out_b"]),
                   padv(lp["ln1_g"]), padv(lp["ln1_b"]),
                   padv(lp["ff1_b"]), padv(lp["ff2_b"]),
                   padv(lp["ln2_g"]), padv(lp["ln2_b"])])
        for lp in p["layers"]])                                          # (nL, 8, Vmax)

    N = n_tracks * n_pitches
    npad = max(128, ((N + 127) // 128) * 128)
    wout_pad = jnp.zeros((E, npad), jnp.float32).at[:, :N].set(
        p["out_w"]).astype(MXU_DTYPE)
    bout_pad = jnp.zeros((1, npad), jnp.float32).at[0, :N].set(p["out_b"])

    return {"wl2s_big": wl2s_big, "biaspos": biaspos,
            "wqkv": wqkv, "wo": wo, "wff1": wff1, "wff2": wff2, "vecs": vecs,
            "wout_pad": wout_pad, "bout_pad": bout_pad}


# ---------------------------------------------------------------------------
# Main
# ---------------------------------------------------------------------------

if __name__ == "__main__":
    # Small shapes consistent with the module structure (scaled-down Generator).
    BATCH      = 2
    LATENT_DIM = 16
    SEQ_LEN    = 8
    EMBED_DIM  = 64
    N_HEADS    = 4
    N_LAYERS   = 2
    DIM_FF     = 128
    N_TRACKS   = 2
    N_PITCHES  = 16

    key = jax.random.PRNGKey(0)
    pkey, zkey = jax.random.split(key)

    raw = init_params(
        pkey, latent_dim=LATENT_DIM, seq_len=SEQ_LEN, embed_dim=EMBED_DIM,
        n_heads=N_HEADS, n_layers=N_LAYERS, dim_ff=DIM_FF,
        n_tracks=N_TRACKS, n_pitches=N_PITCHES)
    packed = pack_params(
        raw, latent_dim=LATENT_DIM, seq_len=SEQ_LEN, embed_dim=EMBED_DIM,
        n_heads=N_HEADS, dim_ff=DIM_FF, n_tracks=N_TRACKS, n_pitches=N_PITCHES)

    z = jax.random.normal(zkey, (BATCH, LATENT_DIM), dtype=jnp.float32)

    fwd = jax.jit(functools.partial(
        generator_forward, seq_len=SEQ_LEN, embed_dim=EMBED_DIM,
        n_heads=N_HEADS, n_tracks=N_TRACKS, n_pitches=N_PITCHES))

    out = fwd(z, packed)
    jax.block_until_ready(out)

    assert out.shape == (BATCH, N_TRACKS, N_PITCHES, SEQ_LEN), out.shape
    assert out.dtype == jnp.float32
    assert bool(jnp.all(jnp.isfinite(out)))
    print("KERNEL_OK")
</pallas_src>

<mosaic_0001>
module attributes {stable_mosaic.version = 11 : i64} {
  func.func @_generator_kernel(%arg0: memref<16x128xbf16, #tpu.memory_space<vmem>>, %arg1: memref<128x64xbf16, #tpu.memory_space<vmem>>, %arg2: memref<16x64xf32, #tpu.memory_space<vmem>>, %arg3: memref<2x64x192xbf16, #tpu.memory_space<vmem>>, %arg4: memref<2x64x64xbf16, #tpu.memory_space<vmem>>, %arg5: memref<2x64x128xbf16, #tpu.memory_space<vmem>>, %arg6: memref<2x128x64xbf16, #tpu.memory_space<vmem>>, %arg7: memref<2x8x192xf32, #tpu.memory_space<vmem>>, %arg8: memref<64x128xbf16, #tpu.memory_space<vmem>>, %arg9: memref<1x128xf32, #tpu.memory_space<vmem>>, %arg10: memref<16x128xf32, #tpu.memory_space<vmem>>) attributes {dimension_semantics = [], scalar_prefetch = 0 : i64, scratch_operands = 0 : i64, tpu.core_type = #tpu.core_type<tc>} {
    %c0 = arith.constant 0 : index
    %c0_0 = arith.constant 0 : index
    %0 = vector.load %arg0[%c0, %c0_0] : memref<16x128xbf16, #tpu.memory_space<vmem>>, vector<16x128xbf16>
    %c0_1 = arith.constant 0 : index
    %c0_2 = arith.constant 0 : index
    %1 = vector.load %arg1[%c0_1, %c0_2] : memref<128x64xbf16, #tpu.memory_space<vmem>>, vector<128x64xbf16>
    %cst = arith.constant dense<0.000000e+00> : vector<16x64xf32>
    %2 = tpu.matmul %0, %1, %cst {dimension_numbers = #tpu.dot_dimension_numbers<[1], [0], [0], [1], [0, 0, 1, 1], [], []>} : vector<16x128xbf16>, vector<128x64xbf16>, vector<16x64xf32> -> vector<16x64xf32>
    %c0_3 = arith.constant 0 : index
    %c0_4 = arith.constant 0 : index
    %3 = vector.load %arg2[%c0_3, %c0_4] : memref<16x64xf32, #tpu.memory_space<vmem>>, vector<16x64xf32>
    %4 = arith.addf %2, %3 : vector<16x64xf32>
    %c0_5 = arith.constant 0 : index
    %c0_6 = arith.constant 0 : index
    %c0_7 = arith.constant 0 : index
    %5 = vector.load %arg3[%c0_5, %c0_6, %c0_7] : memref<2x64x192xbf16, #tpu.memory_space<vmem>>, vector<1x64x192xbf16>
    %6 = vector.shape_cast %5 : vector<1x64x192xbf16> to vector<64x192xbf16>
    %c0_8 = arith.constant 0 : index
    %c0_9 = arith.constant 0 : index
    %c0_10 = arith.constant 0 : index
    %7 = vector.load %arg4[%c0_8, %c0_9, %c0_10] : memref<2x64x64xbf16, #tpu.memory_space<vmem>>, vector<1x64x64xbf16>
    %8 = vector.shape_cast %7 : vector<1x64x64xbf16> to vector<64x64xbf16>
    %c0_11 = arith.constant 0 : index
    %c0_12 = arith.constant 0 : index
    %c0_13 = arith.constant 0 : index
    %9 = vector.load %arg5[%c0_11, %c0_12, %c0_13] : memref<2x64x128xbf16, #tpu.memory_space<vmem>>, vector<1x64x128xbf16>
    %10 = vector.shape_cast %9 : vector<1x64x128xbf16> to vector<64x128xbf16>
    %c0_14 = arith.constant 0 : index
    %c0_15 = arith.constant 0 : index
    %c0_16 = arith.constant 0 : index
    %11 = vector.load %arg6[%c0_14, %c0_15, %c0_16] : memref<2x128x64xbf16, #tpu.memory_space<vmem>>, vector<1x128x64xbf16>
    %12 = vector.shape_cast %11 : vector<1x128x64xbf16> to vector<128x64xbf16>
    %c0_17 = arith.constant 0 : index
    %c0_18 = arith.constant 0 : index
    %c0_19 = arith.constant 0 : index
    %13 = vector.load %arg7[%c0_17, %c0_18, %c0_19] : memref<2x8x192xf32, #tpu.memory_space<vmem>>, vector<1x8x192xf32>
    %14 = vector.shape_cast %13 : vector<1x8x192xf32> to vector<8x192xf32>
    %15 = vector.extract_strided_slice %14 {offsets = [0, 0], sizes = [1, 192], strides = [1, 1]} : vector<8x192xf32> to vector<1x192xf32>
    %16 = vector.extract_strided_slice %14 {offsets = [1, 0], sizes = [1, 64], strides = [1, 1]} : vector<8x192xf32> to vector<1x64xf32>
    %17 = vector.extract_strided_slice %14 {offsets = [2, 0], sizes = [1, 64], strides = [1, 1]} : vector<8x192xf32> to vector<1x64xf32>
    %18 = vector.extract_strided_slice %14 {offsets = [3, 0], sizes = [1, 64], strides = [1, 1]} : vector<8x192xf32> to vector<1x64xf32>
    %19 = vector.extract_strided_slice %14 {offsets = [4, 0], sizes = [1, 128], strides = [1, 1]} : vector<8x192xf32> to vector<1x128xf32>
    %20 = vector.extract_strided_slice %14 {offsets = [5, 0], sizes = [1, 64], strides = [1, 1]} : vector<8x192xf32> to vector<1x64xf32>
    %21 = vector.extract_strided_slice %14 {offsets = [6, 0], sizes = [1, 64], strides = [1, 1]} : vector<8x192xf32> to vector<1x64xf32>
    %22 = vector.extract_strided_slice %14 {offsets = [7, 0], sizes = [1, 64], strides = [1, 1]} : vector<8x192xf32> to vector<1x64xf32>
    %23 = arith.truncf %4 : vector<16x64xf32> to vector<16x64xbf16>
    %cst_20 = arith.constant dense<0.000000e+00> : vector<16x192xf32>
    %24 = tpu.matmul %23, %6, %cst_20 {dimension_numbers = #tpu.dot_dimension_numbers<[1], [0], [0], [1], [0, 0, 1, 1], [], []>} : vector<16x64xbf16>, vector<64x192xbf16>, vector<16x192xf32> -> vector<16x192xf32>
    %25 = vector.broadcast %15 : vector<1x192xf32> to vector<16x192xf32>
    %26 = arith.addf %24, %25 : vector<16x192xf32>
    %27 = arith.truncf %26 : vector<16x192xf32> to vector<16x192xbf16>
    %cst_21 = arith.constant 0.000000e+00 : f32
    %28 = vector.broadcast %cst_21 : f32 to vector<8x64xf32>
    %29 = vector.extract_strided_slice %27 {offsets = [0, 0], sizes = [8, 16], strides = [1, 1]} : vector<16x192xbf16> to vector<8x16xbf16>
    %30 = vector.extract_strided_slice %27 {offsets = [0, 64], sizes = [8, 16], strides = [1, 1]} : vector<16x192xbf16> to vector<8x16xbf16>
    %31 = vector.extract_strided_slice %27 {offsets = [0, 128], sizes = [8, 16], strides = [1, 1]} : vector<16x192xbf16> to vector<8x16xbf16>
    %cst_22 = arith.constant dense<0.000000e+00> : vector<8x8xf32>
    %32 = tpu.matmul %29, %30, %cst_22 {dimension_numbers = #tpu.dot_dimension_numbers<[1], [1], [0], [0], [0, 0, 1, 0], [], []>} : vector<8x16xbf16>, vector<8x16xbf16>, vector<8x8xf32> -> vector<8x8xf32>
    %cst_23 = arith.constant dense<0xFF800000> : vector<8xf32>
    %33 = vector.multi_reduction <maximumf>, %32, %cst_23 [1] : vector<8x8xf32> to vector<8xf32>
    %34 = vector.shape_cast %33 : vector<8xf32> to vector<8x1xf32>
    %35 = vector.broadcast %34 : vector<8x1xf32> to vector<8x8xf32>
    %36 = arith.subf %32, %35 : vector<8x8xf32>
    %37 = math.exp %36 : vector<8x8xf32>
    %cst_24 = arith.constant dense<0.000000e+00> : vector<8xf32>
    %38 = vector.multi_reduction <add>, %37, %cst_24 [1] : vector<8x8xf32> to vector<8xf32>
    %39 = vector.shape_cast %38 : vector<8xf32> to vector<8x1xf32>
    %40 = tpu.reciprocal %39 {approx = true} : vector<8x1xf32> -> vector<8x1xf32>
    %41 = vector.broadcast %40 : vector<8x1xf32> to vector<8x8xf32>
    %42 = arith.mulf %37, %41 : vector<8x8xf32>
    %43 = arith.truncf %42 : vector<8x8xf32> to vector<8x8xbf16>
    %cst_25 = arith.constant dense<0.000000e+00> : vector<8x16xf32>
    %44 = tpu.matmul %43, %31, %cst_25 {dimension_numbers = #tpu.dot_dimension_numbers<[1], [0], [0], [1], [0, 0, 1, 1], [], []>} : vector<8x8xbf16>, vector<8x16xbf16>, vector<8x16xf32> -> vector<8x16xf32>
    %45 = arith.truncf %44 : vector<8x16xf32> to vector<8x16xbf16>
    %46 = vector.extract_strided_slice %8 {offsets = [0, 0], sizes = [16, 64], strides = [1, 1]} : vector<64x64xbf16> to vector<16x64xbf16>
    %cst_26 = arith.constant dense<0.000000e+00> : vector<8x64xf32>
    %47 = tpu.matmul %45, %46, %cst_26 {dimension_numbers = #tpu.dot_dimension_numbers<[1], [0], [0], [1], [0, 0, 1, 1], [], []>} : vector<8x16xbf16>, vector<16x64xbf16>, vector<8x64xf32> -> vector<8x64xf32>
    %48 = arith.addf %28, %47 : vector<8x64xf32>
    %49 = vector.extract_strided_slice %27 {offsets = [0, 16], sizes = [8, 16], strides = [1, 1]} : vector<16x192xbf16> to vector<8x16xbf16>
    %50 = vector.extract_strided_slice %27 {offsets = [0, 80], sizes = [8, 16], strides = [1, 1]} : vector<16x192xbf16> to vector<8x16xbf16>
    %51 = vector.extract_strided_slice %27 {offsets = [0, 144], sizes = [8, 16], strides = [1, 1]} : vector<16x192xbf16> to vector<8x16xbf16>
    %cst_27 = arith.constant dense<0.000000e+00> : vector<8x8xf32>
    %52 = tpu.matmul %49, %50, %cst_27 {dimension_numbers = #tpu.dot_dimension_numbers<[1], [1], [0], [0], [0, 0, 1, 0], [], []>} : vector<8x16xbf16>, vector<8x16xbf16>, vector<8x8xf32> -> vector<8x8xf32>
    %cst_28 = arith.constant dense<0xFF800000> : vector<8xf32>
    %53 = vector.multi_reduction <maximumf>, %52, %cst_28 [1] : vector<8x8xf32> to vector<8xf32>
    %54 = vector.shape_cast %53 : vector<8xf32> to vector<8x1xf32>
    %55 = vector.broadcast %54 : vector<8x1xf32> to vector<8x8xf32>
    %56 = arith.subf %52, %55 : vector<8x8xf32>
    %57 = math.exp %56 : vector<8x8xf32>
    %cst_29 = arith.constant dense<0.000000e+00> : vector<8xf32>
    %58 = vector.multi_reduction <add>, %57, %cst_29 [1] : vector<8x8xf32> to vector<8xf32>
    %59 = vector.shape_cast %58 : vector<8xf32> to vector<8x1xf32>
    %60 = tpu.reciprocal %59 {approx = true} : vector<8x1xf32> -> vector<8x1xf32>
    %61 = vector.broadcast %60 : vector<8x1xf32> to vector<8x8xf32>
    %62 = arith.mulf %57, %61 : vector<8x8xf32>
    %63 = arith.truncf %62 : vector<8x8xf32> to vector<8x8xbf16>
    %cst_30 = arith.constant dense<0.000000e+00> : vector<8x16xf32>
    %64 = tpu.matmul %63, %51, %cst_30 {dimension_numbers = #tpu.dot_dimension_numbers<[1], [0], [0], [1], [0, 0, 1, 1], [], []>} : vector<8x8xbf16>, vector<8x16xbf16>, vector<8x16xf32> -> vector<8x16xf32>
    %65 = arith.truncf %64 : vector<8x16xf32> to vector<8x16xbf16>
    %66 = vector.extract_strided_slice %8 {offsets = [16, 0], sizes = [16, 64], strides = [1, 1]} : vector<64x64xbf16> to vector<16x64xbf16>
    %cst_31 = arith.constant dense<0.000000e+00> : vector<8x64xf32>
    %67 = tpu.matmul %65, %66, %cst_31 {dimension_numbers = #tpu.dot_dimension_numbers<[1], [0], [0], [1], [0, 0, 1, 1], [], []>} : vector<8x16xbf16>, vector<16x64xbf16>, vector<8x64xf32> -> vector<8x64xf32>
    %68 = arith.addf %48, %67 : vector<8x64xf32>
    %69 = vector.extract_strided_slice %27 {offsets = [0, 32], sizes = [8, 16], strides = [1, 1]} : vector<16x192xbf16> to vector<8x16xbf16>
    %70 = vector.extract_strided_slice %27 {offsets = [0, 96], sizes = [8, 16], strides = [1, 1]} : vector<16x192xbf16> to vector<8x16xbf16>
    %71 = vector.extract_strided_slice %27 {offsets = [0, 160], sizes = [8, 16], strides = [1, 1]} : vector<16x192xbf16> to vector<8x16xbf16>
    %cst_32 = arith.constant dense<0.000000e+00> : vector<8x8xf32>
    %72 = tpu.matmul %69, %70, %cst_32 {dimension_numbers = #tpu.dot_dimension_numbers<[1], [1], [0], [0], [0, 0, 1, 0], [], []>} : vector<8x16xbf16>, vector<8x16xbf16>, vector<8x8xf32> -> vector<8x8xf32>
    %cst_33 = arith.constant dense<0xFF800000> : vector<8xf32>
    %73 = vector.multi_reduction <maximumf>, %72, %cst_33 [1] : vector<8x8xf32> to vector<8xf32>
    %74 = vector.shape_cast %73 : vector<8xf32> to vector<8x1xf32>
    %75 = vector.broadcast %74 : vector<8x1xf32> to vector<8x8xf32>
    %76 = arith.subf %72, %75 : vector<8x8xf32>
    %77 = math.exp %76 : vector<8x8xf32>
    %cst_34 = arith.constant dense<0.000000e+00> : vector<8xf32>
    %78 = vector.multi_reduction <add>, %77, %cst_34 [1] : vector<8x8xf32> to vector<8xf32>
    %79 = vector.shape_cast %78 : vector<8xf32> to vector<8x1xf32>
    %80 = tpu.reciprocal %79 {approx = true} : vector<8x1xf32> -> vector<8x1xf32>
    %81 = vector.broadcast %80 : vector<8x1xf32> to vector<8x8xf32>
    %82 = arith.mulf %77, %81 : vector<8x8xf32>
    %83 = arith.truncf %82 : vector<8x8xf32> to vector<8x8xbf16>
    %cst_35 = arith.constant dense<0.000000e+00> : vector<8x16xf32>
    %84 = tpu.matmul %83, %71, %cst_35 {dimension_numbers = #tpu.dot_dimension_numbers<[1], [0], [0], [1], [0, 0, 1, 1], [], []>} : vector<8x8xbf16>, vector<8x16xbf16>, vector<8x16xf32> -> vector<8x16xf32>
    %85 = arith.truncf %84 : vector<8x16xf32> to vector<8x16xbf16>
    %86 = vector.extract_strided_slice %8 {offsets = [32, 0], sizes = [16, 64], strides = [1, 1]} : vector<64x64xbf16> to vector<16x64xbf16>
    %cst_36 = arith.constant dense<0.000000e+00> : vector<8x64xf32>
    %87 = tpu.matmul %85, %86, %cst_36 {dimension_numbers = #tpu.dot_dimension_numbers<[1], [0], [0], [1], [0, 0, 1, 1], [], []>} : vector<8x16xbf16>, vector<16x64xbf16>, vector<8x64xf32> -> vector<8x64xf32>
    %88 = arith.addf %68, %87 : vector<8x64xf32>
    %89 = vector.extract_strided_slice %27 {offsets = [0, 48], sizes = [8, 16], strides = [1, 1]} : vector<16x192xbf16> to vector<8x16xbf16>
    %90 = vector.extract_strided_slice %27 {offsets = [0, 112], sizes = [8, 16], strides = [1, 1]} : vector<16x192xbf16> to vector<8x16xbf16>
    %91 = vector.extract_strided_slice %27 {offsets = [0, 176], sizes = [8, 16], strides = [1, 1]} : vector<16x192xbf16> to vector<8x16xbf16>
    %cst_37 = arith.constant dense<0.000000e+00> : vector<8x8xf32>
    %92 = tpu.matmul %89, %90, %cst_37 {dimension_numbers = #tpu.dot_dimension_numbers<[1], [1], [0], [0], [0, 0, 1, 0], [], []>} : vector<8x16xbf16>, vector<8x16xbf16>, vector<8x8xf32> -> vector<8x8xf32>
    %cst_38 = arith.constant dense<0xFF800000> : vector<8xf32>
    %93 = vector.multi_reduction <maximumf>, %92, %cst_38 [1] : vector<8x8xf32> to vector<8xf32>
    %94 = vector.shape_cast %93 : vector<8xf32> to vector<8x1xf32>
    %95 = vector.broadcast %94 : vector<8x1xf32> to vector<8x8xf32>
    %96 = arith.subf %92, %95 : vector<8x8xf32>
    %97 = math.exp %96 : vector<8x8xf32>
    %cst_39 = arith.constant dense<0.000000e+00> : vector<8xf32>
    %98 = vector.multi_reduction <add>, %97, %cst_39 [1] : vector<8x8xf32> to vector<8xf32>
    %99 = vector.shape_cast %98 : vector<8xf32> to vector<8x1xf32>
    %100 = tpu.reciprocal %99 {approx = true} : vector<8x1xf32> -> vector<8x1xf32>
    %101 = vector.broadcast %100 : vector<8x1xf32> to vector<8x8xf32>
    %102 = arith.mulf %97, %101 : vector<8x8xf32>
    %103 = arith.truncf %102 : vector<8x8xf32> to vector<8x8xbf16>
    %cst_40 = arith.constant dense<0.000000e+00> : vector<8x16xf32>
    %104 = tpu.matmul %103, %91, %cst_40 {dimension_numbers = #tpu.dot_dimension_numbers<[1], [0], [0], [1], [0, 0, 1, 1], [], []>} : vector<8x8xbf16>, vector<8x16xbf16>, vector<8x16xf32> -> vector<8x16xf32>
    %105 = arith.truncf %104 : vector<8x16xf32> to vector<8x16xbf16>
    %106 = vector.extract_strided_slice %8 {offsets = [48, 0], sizes = [16, 64], strides = [1, 1]} : vector<64x64xbf16> to vector<16x64xbf16>
    %cst_41 = arith.constant dense<0.000000e+00> : vector<8x64xf32>
    %107 = tpu.matmul %105, %106, %cst_41 {dimension_numbers = #tpu.dot_dimension_numbers<[1], [0], [0], [1], [0, 0, 1, 1], [], []>} : vector<8x16xbf16>, vector<16x64xbf16>, vector<8x64xf32> -> vector<8x64xf32>
    %108 = arith.addf %88, %107 : vector<8x64xf32>
    %cst_42 = arith.constant 0.000000e+00 : f32
    %109 = vector.broadcast %cst_42 : f32 to vector<8x64xf32>
    %110 = vector.extract_strided_slice %27 {offsets = [8, 0], sizes = [8, 16], strides = [1, 1]} : vector<16x192xbf16> to vector<8x16xbf16>
    %111 = vector.extract_strided_slice %27 {offsets = [8, 64], sizes = [8, 16], strides = [1, 1]} : vector<16x192xbf16> to vector<8x16xbf16>
    %112 = vector.extract_strided_slice %27 {offsets = [8, 128], sizes = [8, 16], strides = [1, 1]} : vector<16x192xbf16> to vector<8x16xbf16>
    %cst_43 = arith.constant dense<0.000000e+00> : vector<8x8xf32>
    %113 = tpu.matmul %110, %111, %cst_43 {dimension_numbers = #tpu.dot_dimension_numbers<[1], [1], [0], [0], [0, 0, 1, 0], [], []>} : vector<8x16xbf16>, vector<8x16xbf16>, vector<8x8xf32> -> vector<8x8xf32>
    %cst_44 = arith.constant dense<0xFF800000> : vector<8xf32>
    %114 = vector.multi_reduction <maximumf>, %113, %cst_44 [1] : vector<8x8xf32> to vector<8xf32>
    %115 = vector.shape_cast %114 : vector<8xf32> to vector<8x1xf32>
    %116 = vector.broadcast %115 : vector<8x1xf32> to vector<8x8xf32>
    %117 = arith.subf %113, %116 : vector<8x8xf32>
    %118 = math.exp %117 : vector<8x8xf32>
    %cst_45 = arith.constant dense<0.000000e+00> : vector<8xf32>
    %119 = vector.multi_reduction <add>, %118, %cst_45 [1] : vector<8x8xf32> to vector<8xf32>
    %120 = vector.shape_cast %119 : vector<8xf32> to vector<8x1xf32>
    %121 = tpu.reciprocal %120 {approx = true} : vector<8x1xf32> -> vector<8x1xf32>
    %122 = vector.broadcast %121 : vector<8x1xf32> to vector<8x8xf32>
    %123 = arith.mulf %118, %122 : vector<8x8xf32>
    %124 = arith.truncf %123 : vector<8x8xf32> to vector<8x8xbf16>
    %cst_46 = arith.constant dense<0.000000e+00> : vector<8x16xf32>
    %125 = tpu.matmul %124, %112, %cst_46 {dimension_numbers = #tpu.dot_dimension_numbers<[1], [0], [0], [1], [0, 0, 1, 1], [], []>} : vector<8x8xbf16>, vector<8x16xbf16>, vector<8x16xf32> -> vector<8x16xf32>
    %126 = arith.truncf %125 : vector<8x16xf32> to vector<8x16xbf16>
    %127 = vector.extract_strided_slice %8 {offsets = [0, 0], sizes = [16, 64], strides = [1, 1]} : vector<64x64xbf16> to vector<16x64xbf16>
    %cst_47 = arith.constant dense<0.000000e+00> : vector<8x64xf32>
    %128 = tpu.matmul %126, %127, %cst_47 {dimension_numbers = #tpu.dot_dimension_numbers<[1], [0], [0], [1], [0, 0, 1, 1], [], []>} : vector<8x16xbf16>, vector<16x64xbf16>, vector<8x64xf32> -> vector<8x64xf32>
    %129 = arith.addf %109, %128 : vector<8x64xf32>
    %130 = vector.extract_strided_slice %27 {offsets = [8, 16], sizes = [8, 16], strides = [1, 1]} : vector<16x192xbf16> to vector<8x16xbf16>
    %131 = vector.extract_strided_slice %27 {offsets = [8, 80], sizes = [8, 16], strides = [1, 1]} : vector<16x192xbf16> to vector<8x16xbf16>
    %132 = vector.extract_strided_slice %27 {offsets = [8, 144], sizes = [8, 16], strides = [1, 1]} : vector<16x192xbf16> to vector<8x16xbf16>
    %cst_48 = arith.constant dense<0.000000e+00> : vector<8x8xf32>
    %133 = tpu.matmul %130, %131, %cst_48 {dimension_numbers = #tpu.dot_dimension_numbers<[1], [1], [0], [0], [0, 0, 1, 0], [], []>} : vector<8x16xbf16>, vector<8x16xbf16>, vector<8x8xf32> -> vector<8x8xf32>
    %cst_49 = arith.constant dense<0xFF800000> : vector<8xf32>
    %134 = vector.multi_reduction <maximumf>, %133, %cst_49 [1] : vector<8x8xf32> to vector<8xf32>
    %135 = vector.shape_cast %134 : vector<8xf32> to vector<8x1xf32>
    %136 = vector.broadcast %135 : vector<8x1xf32> to vector<8x8xf32>
    %137 = arith.subf %133, %136 : vector<8x8xf32>
    %138 = math.exp %137 : vector<8x8xf32>
    %cst_50 = arith.constant dense<0.000000e+00> : vector<8xf32>
    %139 = vector.multi_reduction <add>, %138, %cst_50 [1] : vector<8x8xf32> to vector<8xf32>
    %140 = vector.shape_cast %139 : vector<8xf32> to vector<8x1xf32>
    %141 = tpu.reciprocal %140 {approx = true} : vector<8x1xf32> -> vector<8x1xf32>
    %142 = vector.broadcast %141 : vector<8x1xf32> to vector<8x8xf32>
    %143 = arith.mulf %138, %142 : vector<8x8xf32>
    %144 = arith.truncf %143 : vector<8x8xf32> to vector<8x8xbf16>
    %cst_51 = arith.constant dense<0.000000e+00> : vector<8x16xf32>
    %145 = tpu.matmul %144, %132, %cst_51 {dimension_numbers = #tpu.dot_dimension_numbers<[1], [0], [0], [1], [0, 0, 1, 1], [], []>} : vector<8x8xbf16>, vector<8x16xbf16>, vector<8x16xf32> -> vector<8x16xf32>
    %146 = arith.truncf %145 : vector<8x16xf32> to vector<8x16xbf16>
    %147 = vector.extract_strided_slice %8 {offsets = [16, 0], sizes = [16, 64], strides = [1, 1]} : vector<64x64xbf16> to vector<16x64xbf16>
    %cst_52 = arith.constant dense<0.000000e+00> : vector<8x64xf32>
    %148 = tpu.matmul %146, %147, %cst_52 {dimension_numbers = #tpu.dot_dimension_numbers<[1], [0], [0], [1], [0, 0, 1, 1], [], []>} : vector<8x16xbf16>, vector<16x64xbf16>, vector<8x64xf32> -> vector<8x64xf32>
    %149 = arith.addf %129, %148 : vector<8x64xf32>
    %150 = vector.extract_strided_slice %27 {offsets = [8, 32], sizes = [8, 16], strides = [1, 1]} : vector<16x192xbf16> to vector<8x16xbf16>
    %151 = vector.extract_strided_slice %27 {offsets = [8, 96], sizes = [8, 16], strides = [1, 1]} : vector<16x192xbf16> to vector<8x16xbf16>
    %152 = vector.extract_strided_slice %27 {offsets = [8, 160], sizes = [8, 16], strides = [1, 1]} : vector<16x192xbf16> to vector<8x16xbf16>
    %cst_53 = arith.constant dense<0.000000e+00> : vector<8x8xf32>
    %153 = tpu.matmul %150, %151, %cst_53 {dimension_numbers = #tpu.dot_dimension_numbers<[1], [1], [0], [0], [0, 0, 1, 0], [], []>} : vector<8x16xbf16>, vector<8x16xbf16>, vector<8x8xf32> -> vector<8x8xf32>
    %cst_54 = arith.constant dense<0xFF800000> : vector<8xf32>
    %154 = vector.multi_reduction <maximumf>, %153, %cst_54 [1] : vector<8x8xf32> to vector<8xf32>
    %155 = vector.shape_cast %154 : vector<8xf32> to vector<8x1xf32>
    %156 = vector.broadcast %155 : vector<8x1xf32> to vector<8x8xf32>
    %157 = arith.subf %153, %156 : vector<8x8xf32>
    %158 = math.exp %157 : vector<8x8xf32>
    %cst_55 = arith.constant dense<0.000000e+00> : vector<8xf32>
    %159 = vector.multi_reduction <add>, %158, %cst_55 [1] : vector<8x8xf32> to vector<8xf32>
    %160 = vector.shape_cast %159 : vector<8xf32> to vector<8x1xf32>
    %161 = tpu.reciprocal %160 {approx = true} : vector<8x1xf32> -> vector<8x1xf32>
    %162 = vector.broadcast %161 : vector<8x1xf32> to vector<8x8xf32>
    %163 = arith.mulf %158, %162 : vector<8x8xf32>
    %164 = arith.truncf %163 : vector<8x8xf32> to vector<8x8xbf16>
    %cst_56 = arith.constant dense<0.000000e+00> : vector<8x16xf32>
    %165 = tpu.matmul %164, %152, %cst_56 {dimension_numbers = #tpu.dot_dimension_numbers<[1], [0], [0], [1], [0, 0, 1, 1], [], []>} : vector<8x8xbf16>, vector<8x16xbf16>, vector<8x16xf32> -> vector<8x16xf32>
    %166 = arith.truncf %165 : vector<8x16xf32> to vector<8x16xbf16>
    %167 = vector.extract_strided_slice %8 {offsets = [32, 0], sizes = [16, 64], strides = [1, 1]} : vector<64x64xbf16> to vector<16x64xbf16>
    %cst_57 = arith.constant dense<0.000000e+00> : vector<8x64xf32>
    %168 = tpu.matmul %166, %167, %cst_57 {dimension_numbers = #tpu.dot_dimension_numbers<[1], [0], [0], [1], [0, 0, 1, 1], [], []>} : vector<8x16xbf16>, vector<16x64xbf16>, vector<8x64xf32> -> vector<8x64xf32>
    %169 = arith.addf %149, %168 : vector<8x64xf32>
    %170 = vector.extract_strided_slice %27 {offsets = [8, 48], sizes = [8, 16], strides = [1, 1]} : vector<16x192xbf16> to vector<8x16xbf16>
    %171 = vector.extract_strided_slice %27 {offsets = [8, 112], sizes = [8, 16], strides = [1, 1]} : vector<16x192xbf16> to vector<8x16xbf16>
    %172 = vector.extract_strided_slice %27 {offsets = [8, 176], sizes = [8, 16], strides = [1, 1]} : vector<16x192xbf16> to vector<8x16xbf16>
    %cst_58 = arith.constant dense<0.000000e+00> : vector<8x8xf32>
    %173 = tpu.matmul %170, %171, %cst_58 {dimension_numbers = #tpu.dot_dimension_numbers<[1], [1], [0], [0], [0, 0, 1, 0], [], []>} : vector<8x16xbf16>, vector<8x16xbf16>, vector<8x8xf32> -> vector<8x8xf32>
    %cst_59 = arith.constant dense<0xFF800000> : vector<8xf32>
    %174 = vector.multi_reduction <maximumf>, %173, %cst_59 [1] : vector<8x8xf32> to vector<8xf32>
    %175 = vector.shape_cast %174 : vector<8xf32> to vector<8x1xf32>
    %176 = vector.broadcast %175 : vector<8x1xf32> to vector<8x8xf32>
    %177 = arith.subf %173, %176 : vector<8x8xf32>
    %178 = math.exp %177 : vector<8x8xf32>
    %cst_60 = arith.constant dense<0.000000e+00> : vector<8xf32>
    %179 = vector.multi_reduction <add>, %178, %cst_60 [1] : vector<8x8xf32> to vector<8xf32>
    %180 = vector.shape_cast %179 : vector<8xf32> to vector<8x1xf32>
    %181 = tpu.reciprocal %180 {approx = true} : vector<8x1xf32> -> vector<8x1xf32>
    %182 = vector.broadcast %181 : vector<8x1xf32> to vector<8x8xf32>
    %183 = arith.mulf %178, %182 : vector<8x8xf32>
    %184 = arith.truncf %183 : vector<8x8xf32> to vector<8x8xbf16>
    %cst_61 = arith.constant dense<0.000000e+00> : vector<8x16xf32>
    %185 = tpu.matmul %184, %172, %cst_61 {dimension_numbers = #tpu.dot_dimension_numbers<[1], [0], [0], [1], [0, 0, 1, 1], [], []>} : vector<8x8xbf16>, vector<8x16xbf16>, vector<8x16xf32> -> vector<8x16xf32>
    %186 = arith.truncf %185 : vector<8x16xf32> to vector<8x16xbf16>
    %187 = vector.extract_strided_slice %8 {offsets = [48, 0], sizes = [16, 64], strides = [1, 1]} : vector<64x64xbf16> to vector<16x64xbf16>
    %cst_62 = arith.constant dense<0.000000e+00> : vector<8x64xf32>
    %188 = tpu.matmul %186, %187, %cst_62 {dimension_numbers = #tpu.dot_dimension_numbers<[1], [0], [0], [1], [0, 0, 1, 1], [], []>} : vector<8x16xbf16>, vector<16x64xbf16>, vector<8x64xf32> -> vector<8x64xf32>
    %189 = arith.addf %169, %188 : vector<8x64xf32>
    %190 = tpu.concatenate %108, %189 in 0 : vector<8x64xf32>, vector<8x64xf32> -> vector<16x64xf32>
    %191 = vector.broadcast %16 : vector<1x64xf32> to vector<16x64xf32>
    %192 = arith.addf %190, %191 : vector<16x64xf32>
    %193 = arith.addf %4, %192 : vector<16x64xf32>
    %cst_63 = arith.constant dense<0.000000e+00> : vector<16xf32>
    %194 = vector.multi_reduction <add>, %193, %cst_63 [1] : vector<16x64xf32> to vector<16xf32>
    %195 = vector.shape_cast %194 : vector<16xf32> to vector<16x1xf32>
    %cst_64 = arith.constant 6.400000e+01 : f32
    %196 = vector.broadcast %cst_64 : f32 to vector<16x1xf32>
    %197 = arith.divf %195, %196 : vector<16x1xf32>
    %198 = vector.broadcast %197 : vector<16x1xf32> to vector<16x64xf32>
    %199 = arith.subf %193, %198 : vector<16x64xf32>
    %200 = arith.mulf %199, %199 : vector<16x64xf32>
    %cst_65 = arith.constant dense<0.000000e+00> : vector<16xf32>
    %201 = vector.multi_reduction <add>, %200, %cst_65 [1] : vector<16x64xf32> to vector<16xf32>
    %202 = vector.shape_cast %201 : vector<16xf32> to vector<16x1xf32>
    %cst_66 = arith.constant 6.400000e+01 : f32
    %203 = vector.broadcast %cst_66 : f32 to vector<16x1xf32>
    %204 = arith.divf %202, %203 : vector<16x1xf32>
    %205 = vector.broadcast %197 : vector<16x1xf32> to vector<16x64xf32>
    %206 = arith.subf %193, %205 : vector<16x64xf32>
    %cst_67 = arith.constant 9.99999974E-6 : f32
    %207 = vector.broadcast %cst_67 : f32 to vector<16x1xf32>
    %208 = arith.addf %204, %207 : vector<16x1xf32>
    %209 = math.rsqrt %208 : vector<16x1xf32>
    %210 = vector.broadcast %209 : vector<16x1xf32> to vector<16x64xf32>
    %211 = arith.mulf %206, %210 : vector<16x64xf32>
    %212 = vector.broadcast %17 : vector<1x64xf32> to vector<16x64xf32>
    %213 = arith.mulf %211, %212 : vector<16x64xf32>
    %214 = vector.broadcast %18 : vector<1x64xf32> to vector<16x64xf32>
    %215 = arith.addf %213, %214 : vector<16x64xf32>
    %216 = arith.truncf %215 : vector<16x64xf32> to vector<16x64xbf16>
    %cst_68 = arith.constant dense<0.000000e+00> : vector<16x128xf32>
    %217 = tpu.matmul %216, %10, %cst_68 {dimension_numbers = #tpu.dot_dimension_numbers<[1], [0], [0], [1], [0, 0, 1, 1], [], []>} : vector<16x64xbf16>, vector<64x128xbf16>, vector<16x128xf32> -> vector<16x128xf32>
    %218 = vector.broadcast %19 : vector<1x128xf32> to vector<16x128xf32>
    %219 = arith.addf %217, %218 : vector<16x128xf32>
    %cst_69 = arith.constant 0.000000e+00 : f32
    %220 = vector.broadcast %cst_69 : f32 to vector<16x128xf32>
    %221 = arith.maximumf %219, %220 : vector<16x128xf32>
    %222 = arith.truncf %221 : vector<16x128xf32> to vector<16x128xbf16>
    %cst_70 = arith.constant dense<0.000000e+00> : vector<16x64xf32>
    %223 = tpu.matmul %222, %12, %cst_70 {dimension_numbers = #tpu.dot_dimension_numbers<[1], [0], [0], [1], [0, 0, 1, 1], [], []>} : vector<16x128xbf16>, vector<128x64xbf16>, vector<16x64xf32> -> vector<16x64xf32>
    %224 = vector.broadcast %20 : vector<1x64xf32> to vector<16x64xf32>
    %225 = arith.addf %223, %224 : vector<16x64xf32>
    %226 = arith.addf %215, %225 : vector<16x64xf32>
    %cst_71 = arith.constant dense<0.000000e+00> : vector<16xf32>
    %227 = vector.multi_reduction <add>, %226, %cst_71 [1] : vector<16x64xf32> to vector<16xf32>
    %228 = vector.shape_cast %227 : vector<16xf32> to vector<16x1xf32>
    %cst_72 = arith.constant 6.400000e+01 : f32
    %229 = vector.broadcast %cst_72 : f32 to vector<16x1xf32>
    %230 = arith.divf %228, %229 : vector<16x1xf32>
    %231 = vector.broadcast %230 : vector<16x1xf32> to vector<16x64xf32>
    %232 = arith.subf %226, %231 : vector<16x64xf32>
    %233 = arith.mulf %232, %232 : vector<16x64xf32>
    %cst_73 = arith.constant dense<0.000000e+00> : vector<16xf32>
    %234 = vector.multi_reduction <add>, %233, %cst_73 [1] : vector<16x64xf32> to vector<16xf32>
    %235 = vector.shape_cast %234 : vector<16xf32> to vector<16x1xf32>
    %cst_74 = arith.constant 6.400000e+01 : f32
    %236 = vector.broadcast %cst_74 : f32 to vector<16x1xf32>
    %237 = arith.divf %235, %236 : vector<16x1xf32>
    %238 = vector.broadcast %230 : vector<16x1xf32> to vector<16x64xf32>
    %239 = arith.subf %226, %238 : vector<16x64xf32>
    %cst_75 = arith.constant 9.99999974E-6 : f32
    %240 = vector.broadcast %cst_75 : f32 to vector<16x1xf32>
    %241 = arith.addf %237, %240 : vector<16x1xf32>
    %242 = math.rsqrt %241 : vector<16x1xf32>
    %243 = vector.broadcast %242 : vector<16x1xf32> to vector<16x64xf32>
    %244 = arith.mulf %239, %243 : vector<16x64xf32>
    %245 = vector.broadcast %21 : vector<1x64xf32> to vector<16x64xf32>
    %246 = arith.mulf %244, %245 : vector<16x64xf32>
    %247 = vector.broadcast %22 : vector<1x64xf32> to vector<16x64xf32>
    %248 = arith.addf %246, %247 : vector<16x64xf32>
    %c1 = arith.constant 1 : index
    %c0_76 = arith.constant 0 : index
    %c0_77 = arith.constant 0 : index
    %249 = vector.load %arg3[%c1, %c0_76, %c0_77] : memref<2x64x192xbf16, #tpu.memory_space<vmem>>, vector<1x64x192xbf16>
    %250 = vector.shape_cast %249 : vector<1x64x192xbf16> to vector<64x192xbf16>
    %c1_78 = arith.constant 1 : index
    %c0_79 = arith.constant 0 : index
    %c0_80 = arith.constant 0 : index
    %251 = vector.load %arg4[%c1_78, %c0_79, %c0_80] : memref<2x64x64xbf16, #tpu.memory_space<vmem>>, vector<1x64x64xbf16>
    %252 = vector.shape_cast %251 : vector<1x64x64xbf16> to vector<64x64xbf16>
    %c1_81 = arith.constant 1 : index
    %c0_82 = arith.constant 0 : index
    %c0_83 = arith.constant 0 : index
    %253 = vector.load %arg5[%c1_81, %c0_82, %c0_83] : memref<2x64x128xbf16, #tpu.memory_space<vmem>>, vector<1x64x128xbf16>
    %254 = vector.shape_cast %253 : vector<1x64x128xbf16> to vector<64x128xbf16>
    %c1_84 = arith.constant 1 : index
    %c0_85 = arith.constant 0 : index
    %c0_86 = arith.constant 0 : index
    %255 = vector.load %arg6[%c1_84, %c0_85, %c0_86] : memref<2x128x64xbf16, #tpu.memory_space<vmem>>, vector<1x128x64xbf16>
    %256 = vector.shape_cast %255 : vector<1x128x64xbf16> to vector<128x64xbf16>
    %c1_87 = arith.constant 1 : index
    %c0_88 = arith.constant 0 : index
    %c0_89 = arith.constant 0 : index
    %257 = vector.load %arg7[%c1_87, %c0_88, %c0_89] : memref<2x8x192xf32, #tpu.memory_space<vmem>>, vector<1x8x192xf32>
    %258 = vector.shape_cast %257 : vector<1x8x192xf32> to vector<8x192xf32>
    %259 = vector.extract_strided_slice %258 {offsets = [0, 0], sizes = [1, 192], strides = [1, 1]} : vector<8x192xf32> to vector<1x192xf32>
    %260 = vector.extract_strided_slice %258 {offsets = [1, 0], sizes = [1, 64], strides = [1, 1]} : vector<8x192xf32> to vector<1x64xf32>
    %261 = vector.extract_strided_slice %258 {offsets = [2, 0], sizes = [1, 64], strides = [1, 1]} : vector<8x192xf32> to vector<1x64xf32>
    %262 = vector.extract_strided_slice %258 {offsets = [3, 0], sizes = [1, 64], strides = [1, 1]} : vector<8x192xf32> to vector<1x64xf32>
    %263 = vector.extract_strided_slice %258 {offsets = [4, 0], sizes = [1, 128], strides = [1, 1]} : vector<8x192xf32> to vector<1x128xf32>
    %264 = vector.extract_strided_slice %258 {offsets = [5, 0], sizes = [1, 64], strides = [1, 1]} : vector<8x192xf32> to vector<1x64xf32>
    %265 = vector.extract_strided_slice %258 {offsets = [6, 0], sizes = [1, 64], strides = [1, 1]} : vector<8x192xf32> to vector<1x64xf32>
    %266 = vector.extract_strided_slice %258 {offsets = [7, 0], sizes = [1, 64], strides = [1, 1]} : vector<8x192xf32> to vector<1x64xf32>
    %267 = arith.truncf %248 : vector<16x64xf32> to vector<16x64xbf16>
    %cst_90 = arith.constant dense<0.000000e+00> : vector<16x192xf32>
    %268 = tpu.matmul %267, %250, %cst_90 {dimension_numbers = #tpu.dot_dimension_numbers<[1], [0], [0], [1], [0, 0, 1, 1], [], []>} : vector<16x64xbf16>, vector<64x192xbf16>, vector<16x192xf32> -> vector<16x192xf32>
    %269 = vector.broadcast %259 : vector<1x192xf32> to vector<16x192xf32>
    %270 = arith.addf %268, %269 : vector<16x192xf32>
    %271 = arith.truncf %270 : vector<16x192xf32> to vector<16x192xbf16>
    %cst_91 = arith.constant 0.000000e+00 : f32
    %272 = vector.broadcast %cst_91 : f32 to vector<8x64xf32>
    %273 = vector.extract_strided_slice %271 {offsets = [0, 0], sizes = [8, 16], strides = [1, 1]} : vector<16x192xbf16> to vector<8x16xbf16>
    %274 = vector.extract_strided_slice %271 {offsets = [0, 64], sizes = [8, 16], strides = [1, 1]} : vector<16x192xbf16> to vector<8x16xbf16>
    %275 = vector.extract_strided_slice %271 {offsets = [0, 128], sizes = [8, 16], strides = [1, 1]} : vector<16x192xbf16> to vector<8x16xbf16>
    %cst_92 = arith.constant dense<0.000000e+00> : vector<8x8xf32>
    %276 = tpu.matmul %273, %274, %cst_92 {dimension_numbers = #tpu.dot_dimension_numbers<[1], [1], [0], [0], [0, 0, 1, 0], [], []>} : vector<8x16xbf16>, vector<8x16xbf16>, vector<8x8xf32> -> vector<8x8xf32>
    %cst_93 = arith.constant dense<0xFF800000> : vector<8xf32>
    %277 = vector.multi_reduction <maximumf>, %276, %cst_93 [1] : vector<8x8xf32> to vector<8xf32>
    %278 = vector.shape_cast %277 : vector<8xf32> to vector<8x1xf32>
    %279 = vector.broadcast %278 : vector<8x1xf32> to vector<8x8xf32>
    %280 = arith.subf %276, %279 : vector<8x8xf32>
    %281 = math.exp %280 : vector<8x8xf32>
    %cst_94 = arith.constant dense<0.000000e+00> : vector<8xf32>
    %282 = vector.multi_reduction <add>, %281, %cst_94 [1] : vector<8x8xf32> to vector<8xf32>
    %283 = vector.shape_cast %282 : vector<8xf32> to vector<8x1xf32>
    %284 = tpu.reciprocal %283 {approx = true} : vector<8x1xf32> -> vector<8x1xf32>
    %285 = vector.broadcast %284 : vector<8x1xf32> to vector<8x8xf32>
    %286 = arith.mulf %281, %285 : vector<8x8xf32>
    %287 = arith.truncf %286 : vector<8x8xf32> to vector<8x8xbf16>
    %cst_95 = arith.constant dense<0.000000e+00> : vector<8x16xf32>
    %288 = tpu.matmul %287, %275, %cst_95 {dimension_numbers = #tpu.dot_dimension_numbers<[1], [0], [0], [1], [0, 0, 1, 1], [], []>} : vector<8x8xbf16>, vector<8x16xbf16>, vector<8x16xf32> -> vector<8x16xf32>
    %289 = arith.truncf %288 : vector<8x16xf32> to vector<8x16xbf16>
    %290 = vector.extract_strided_slice %252 {offsets = [0, 0], sizes = [16, 64], strides = [1, 1]} : vector<64x64xbf16> to vector<16x64xbf16>
    %cst_96 = arith.constant dense<0.000000e+00> : vector<8x64xf32>
    %291 = tpu.matmul %289, %290, %cst_96 {dimension_numbers = #tpu.dot_dimension_numbers<[1], [0], [0], [1], [0, 0, 1, 1], [], []>} : vector<8x16xbf16>, vector<16x64xbf16>, vector<8x64xf32> -> vector<8x64xf32>
    %292 = arith.addf %272, %291 : vector<8x64xf32>
    %293 = vector.extract_strided_slice %271 {offsets = [0, 16], sizes = [8, 16], strides = [1, 1]} : vector<16x192xbf16> to vector<8x16xbf16>
    %294 = vector.extract_strided_slice %271 {offsets = [0, 80], sizes = [8, 16], strides = [1, 1]} : vector<16x192xbf16> to vector<8x16xbf16>
    %295 = vector.extract_strided_slice %271 {offsets = [0, 144], sizes = [8, 16], strides = [1, 1]} : vector<16x192xbf16> to vector<8x16xbf16>
    %cst_97 = arith.constant dense<0.000000e+00> : vector<8x8xf32>
    %296 = tpu.matmul %293, %294, %cst_97 {dimension_numbers = #tpu.dot_dimension_numbers<[1], [1], [0], [0], [0, 0, 1, 0], [], []>} : vector<8x16xbf16>, vector<8x16xbf16>, vector<8x8xf32> -> vector<8x8xf32>
    %cst_98 = arith.constant dense<0xFF800000> : vector<8xf32>
    %297 = vector.multi_reduction <maximumf>, %296, %cst_98 [1] : vector<8x8xf32> to vector<8xf32>
    %298 = vector.shape_cast %297 : vector<8xf32> to vector<8x1xf32>
    %299 = vector.broadcast %298 : vector<8x1xf32> to vector<8x8xf32>
    %300 = arith.subf %296, %299 : vector<8x8xf32>
    %301 = math.exp %300 : vector<8x8xf32>
    %cst_99 = arith.constant dense<0.000000e+00> : vector<8xf32>
    %302 = vector.multi_reduction <add>, %301, %cst_99 [1] : vector<8x8xf32> to vector<8xf32>
    %303 = vector.shape_cast %302 : vector<8xf32> to vector<8x1xf32>
    %304 = tpu.reciprocal %303 {approx = true} : vector<8x1xf32> -> vector<8x1xf32>
    %305 = vector.broadcast %304 : vector<8x1xf32> to vector<8x8xf32>
    %306 = arith.mulf %301, %305 : vector<8x8xf32>
    %307 = arith.truncf %306 : vector<8x8xf32> to vector<8x8xbf16>
    %cst_100 = arith.constant dense<0.000000e+00> : vector<8x16xf32>
    %308 = tpu.matmul %307, %295, %cst_100 {dimension_numbers = #tpu.dot_dimension_numbers<[1], [0], [0], [1], [0, 0, 1, 1], [], []>} : vector<8x8xbf16>, vector<8x16xbf16>, vector<8x16xf32> -> vector<8x16xf32>
    %309 = arith.truncf %308 : vector<8x16xf32> to vector<8x16xbf16>
    %310 = vector.extract_strided_slice %252 {offsets = [16, 0], sizes = [16, 64], strides = [1, 1]} : vector<64x64xbf16> to vector<16x64xbf16>
    %cst_101 = arith.constant dense<0.000000e+00> : vector<8x64xf32>
    %311 = tpu.matmul %309, %310, %cst_101 {dimension_numbers = #tpu.dot_dimension_numbers<[1], [0], [0], [1], [0, 0, 1, 1], [], []>} : vector<8x16xbf16>, vector<16x64xbf16>, vector<8x64xf32> -> vector<8x64xf32>
    %312 = arith.addf %292, %311 : vector<8x64xf32>
    %313 = vector.extract_strided_slice %271 {offsets = [0, 32], sizes = [8, 16], strides = [1, 1]} : vector<16x192xbf16> to vector<8x16xbf16>
    %314 = vector.extract_strided_slice %271 {offsets = [0, 96], sizes = [8, 16], strides = [1, 1]} : vector<16x192xbf16> to vector<8x16xbf16>
    %315 = vector.extract_strided_slice %271 {offsets = [0, 160], sizes = [8, 16], strides = [1, 1]} : vector<16x192xbf16> to vector<8x16xbf16>
    %cst_102 = arith.constant dense<0.000000e+00> : vector<8x8xf32>
    %316 = tpu.matmul %313, %314, %cst_102 {dimension_numbers = #tpu.dot_dimension_numbers<[1], [1], [0], [0], [0, 0, 1, 0], [], []>} : vector<8x16xbf16>, vector<8x16xbf16>, vector<8x8xf32> -> vector<8x8xf32>
    %cst_103 = arith.constant dense<0xFF800000> : vector<8xf32>
    %317 = vector.multi_reduction <maximumf>, %316, %cst_103 [1] : vector<8x8xf32> to vector<8xf32>
    %318 = vector.shape_cast %317 : vector<8xf32> to vector<8x1xf32>
    %319 = vector.broadcast %318 : vector<8x1xf32> to vector<8x8xf32>
    %320 = arith.subf %316, %319 : vector<8x8xf32>
    %321 = math.exp %320 : vector<8x8xf32>
    %cst_104 = arith.constant dense<0.000000e+00> : vector<8xf32>
    %322 = vector.multi_reduction <add>, %321, %cst_104 [1] : vector<8x8xf32> to vector<8xf32>
    %323 = vector.shape_cast %322 : vector<8xf32> to vector<8x1xf32>
    %324 = tpu.reciprocal %323 {approx = true} : vector<8x1xf32> -> vector<8x1xf32>
    %325 = vector.broadcast %324 : vector<8x1xf32> to vector<8x8xf32>
    %326 = arith.mulf %321, %325 : vector<8x8xf32>
    %327 = arith.truncf %326 : vector<8x8xf32> to vector<8x8xbf16>
    %cst_105 = arith.constant dense<0.000000e+00> : vector<8x16xf32>
    %328 = tpu.matmul %327, %315, %cst_105 {dimension_numbers = #tpu.dot_dimension_numbers<[1], [0], [0], [1], [0, 0, 1, 1], [], []>} : vector<8x8xbf16>, vector<8x16xbf16>, vector<8x16xf32> -> vector<8x16xf32>
    %329 = arith.truncf %328 : vector<8x16xf32> to vector<8x16xbf16>
    %330 = vector.extract_strided_slice %252 {offsets = [32, 0], sizes = [16, 64], strides = [1, 1]} : vector<64x64xbf16> to vector<16x64xbf16>
    %cst_106 = arith.constant dense<0.000000e+00> : vector<8x64xf32>
    %331 = tpu.matmul %329, %330, %cst_106 {dimension_numbers = #tpu.dot_dimension_numbers<[1], [0], [0], [1], [0, 0, 1, 1], [], []>} : vector<8x16xbf16>, vector<16x64xbf16>, vector<8x64xf32> -> vector<8x64xf32>
    %332 = arith.addf %312, %331 : vector<8x64xf32>
    %333 = vector.extract_strided_slice %271 {offsets = [0, 48], sizes = [8, 16], strides = [1, 1]} : vector<16x192xbf16> to vector<8x16xbf16>
    %334 = vector.extract_strided_slice %271 {offsets = [0, 112], sizes = [8, 16], strides = [1, 1]} : vector<16x192xbf16> to vector<8x16xbf16>
    %335 = vector.extract_strided_slice %271 {offsets = [0, 176], sizes = [8, 16], strides = [1, 1]} : vector<16x192xbf16> to vector<8x16xbf16>
    %cst_107 = arith.constant dense<0.000000e+00> : vector<8x8xf32>
    %336 = tpu.matmul %333, %334, %cst_107 {dimension_numbers = #tpu.dot_dimension_numbers<[1], [1], [0], [0], [0, 0, 1, 0], [], []>} : vector<8x16xbf16>, vector<8x16xbf16>, vector<8x8xf32> -> vector<8x8xf32>
    %cst_108 = arith.constant dense<0xFF800000> : vector<8xf32>
    %337 = vector.multi_reduction <maximumf>, %336, %cst_108 [1] : vector<8x8xf32> to vector<8xf32>
    %338 = vector.shape_cast %337 : vector<8xf32> to vector<8x1xf32>
    %339 = vector.broadcast %338 : vector<8x1xf32> to vector<8x8xf32>
    %340 = arith.subf %336, %339 : vector<8x8xf32>
    %341 = math.exp %340 : vector<8x8xf32>
    %cst_109 = arith.constant dense<0.000000e+00> : vector<8xf32>
    %342 = vector.multi_reduction <add>, %341, %cst_109 [1] : vector<8x8xf32> to vector<8xf32>
    %343 = vector.shape_cast %342 : vector<8xf32> to vector<8x1xf32>
    %344 = tpu.reciprocal %343 {approx = true} : vector<8x1xf32> -> vector<8x1xf32>
    %345 = vector.broadcast %344 : vector<8x1xf32> to vector<8x8xf32>
    %346 = arith.mulf %341, %345 : vector<8x8xf32>
    %347 = arith.truncf %346 : vector<8x8xf32> to vector<8x8xbf16>
    %cst_110 = arith.constant dense<0.000000e+00> : vector<8x16xf32>
    %348 = tpu.matmul %347, %335, %cst_110 {dimension_numbers = #tpu.dot_dimension_numbers<[1], [0], [0], [1], [0, 0, 1, 1], [], []>} : vector<8x8xbf16>, vector<8x16xbf16>, vector<8x16xf32> -> vector<8x16xf32>
    %349 = arith.truncf %348 : vector<8x16xf32> to vector<8x16xbf16>
    %350 = vector.extract_strided_slice %252 {offsets = [48, 0], sizes = [16, 64], strides = [1, 1]} : vector<64x64xbf16> to vector<16x64xbf16>
    %cst_111 = arith.constant dense<0.000000e+00> : vector<8x64xf32>
    %351 = tpu.matmul %349, %350, %cst_111 {dimension_numbers = #tpu.dot_dimension_numbers<[1], [0], [0], [1], [0, 0, 1, 1], [], []>} : vector<8x16xbf16>, vector<16x64xbf16>, vector<8x64xf32> -> vector<8x64xf32>
    %352 = arith.addf %332, %351 : vector<8x64xf32>
    %cst_112 = arith.constant 0.000000e+00 : f32
    %353 = vector.broadcast %cst_112 : f32 to vector<8x64xf32>
    %354 = vector.extract_strided_slice %271 {offsets = [8, 0], sizes = [8, 16], strides = [1, 1]} : vector<16x192xbf16> to vector<8x16xbf16>
    %355 = vector.extract_strided_slice %271 {offsets = [8, 64], sizes = [8, 16], strides = [1, 1]} : vector<16x192xbf16> to vector<8x16xbf16>
    %356 = vector.extract_strided_slice %271 {offsets = [8, 128], sizes = [8, 16], strides = [1, 1]} : vector<16x192xbf16> to vector<8x16xbf16>
    %cst_113 = arith.constant dense<0.000000e+00> : vector<8x8xf32>
    %357 = tpu.matmul %354, %355, %cst_113 {dimension_numbers = #tpu.dot_dimension_numbers<[1], [1], [0], [0], [0, 0, 1, 0], [], []>} : vector<8x16xbf16>, vector<8x16xbf16>, vector<8x8xf32> -> vector<8x8xf32>
    %cst_114 = arith.constant dense<0xFF800000> : vector<8xf32>
    %358 = vector.multi_reduction <maximumf>, %357, %cst_114 [1] : vector<8x8xf32> to vector<8xf32>
    %359 = vector.shape_cast %358 : vector<8xf32> to vector<8x1xf32>
    %360 = vector.broadcast %359 : vector<8x1xf32> to vector<8x8xf32>
    %361 = arith.subf %357, %360 : vector<8x8xf32>
    %362 = math.exp %361 : vector<8x8xf32>
    %cst_115 = arith.constant dense<0.000000e+00> : vector<8xf32>
    %363 = vector.multi_reduction <add>, %362, %cst_115 [1] : vector<8x8xf32> to vector<8xf32>
    %364 = vector.shape_cast %363 : vector<8xf32> to vector<8x1xf32>
    %365 = tpu.reciprocal %364 {approx = true} : vector<8x1xf32> -> vector<8x1xf32>
    %366 = vector.broadcast %365 : vector<8x1xf32> to vector<8x8xf32>
    %367 = arith.mulf %362, %366 : vector<8x8xf32>
    %368 = arith.truncf %367 : vector<8x8xf32> to vector<8x8xbf16>
    %cst_116 = arith.constant dense<0.000000e+00> : vector<8x16xf32>
    %369 = tpu.matmul %368, %356, %cst_116 {dimension_numbers = #tpu.dot_dimension_numbers<[1], [0], [0], [1], [0, 0, 1, 1], [], []>} : vector<8x8xbf16>, vector<8x16xbf16>, vector<8x16xf32> -> vector<8x16xf32>
    %370 = arith.truncf %369 : vector<8x16xf32> to vector<8x16xbf16>
    %371 = vector.extract_strided_slice %252 {offsets = [0, 0], sizes = [16, 64], strides = [1, 1]} : vector<64x64xbf16> to vector<16x64xbf16>
    %cst_117 = arith.constant dense<0.000000e+00> : vector<8x64xf32>
    %372 = tpu.matmul %370, %371, %cst_117 {dimension_numbers = #tpu.dot_dimension_numbers<[1], [0], [0], [1], [0, 0, 1, 1], [], []>} : vector<8x16xbf16>, vector<16x64xbf16>, vector<8x64xf32> -> vector<8x64xf32>
    %373 = arith.addf %353, %372 : vector<8x64xf32>
    %374 = vector.extract_strided_slice %271 {offsets = [8, 16], sizes = [8, 16], strides = [1, 1]} : vector<16x192xbf16> to vector<8x16xbf16>
    %375 = vector.extract_strided_slice %271 {offsets = [8, 80], sizes = [8, 16], strides = [1, 1]} : vector<16x192xbf16> to vector<8x16xbf16>
    %376 = vector.extract_strided_slice %271 {offsets = [8, 144], sizes = [8, 16], strides = [1, 1]} : vector<16x192xbf16> to vector<8x16xbf16>
    %cst_118 = arith.constant dense<0.000000e+00> : vector<8x8xf32>
    %377 = tpu.matmul %374, %375, %cst_118 {dimension_numbers = #tpu.dot_dimension_numbers<[1], [1], [0], [0], [0, 0, 1, 0], [], []>} : vector<8x16xbf16>, vector<8x16xbf16>, vector<8x8xf32> -> vector<8x8xf32>
    %cst_119 = arith.constant dense<0xFF800000> : vector<8xf32>
    %378 = vector.multi_reduction <maximumf>, %377, %cst_119 [1] : vector<8x8xf32> to vector<8xf32>
    %379 = vector.shape_cast %378 : vector<8xf32> to vector<8x1xf32>
    %380 = vector.broadcast %379 : vector<8x1xf32> to vector<8x8xf32>
    %381 = arith.subf %377, %380 : vector<8x8xf32>
    %382 = math.exp %381 : vector<8x8xf32>
    %cst_120 = arith.constant dense<0.000000e+00> : vector<8xf32>
    %383 = vector.multi_reduction <add>, %382, %cst_120 [1] : vector<8x8xf32> to vector<8xf32>
    %384 = vector.shape_cast %383 : vector<8xf32> to vector<8x1xf32>
    %385 = tpu.reciprocal %384 {approx = true} : vector<8x1xf32> -> vector<8x1xf32>
    %386 = vector.broadcast %385 : vector<8x1xf32> to vector<8x8xf32>
    %387 = arith.mulf %382, %386 : vector<8x8xf32>
    %388 = arith.truncf %387 : vector<8x8xf32> to vector<8x8xbf16>
    %cst_121 = arith.constant dense<0.000000e+00> : vector<8x16xf32>
    %389 = tpu.matmul %388, %376, %cst_121 {dimension_numbers = #tpu.dot_dimension_numbers<[1], [0], [0], [1], [0, 0, 1, 1], [], []>} : vector<8x8xbf16>, vector<8x16xbf16>, vector<8x16xf32> -> vector<8x16xf32>
    %390 = arith.truncf %389 : vector<8x16xf32> to vector<8x16xbf16>
    %391 = vector.extract_strided_slice %252 {offsets = [16, 0], sizes = [16, 64], strides = [1, 1]} : vector<64x64xbf16> to vector<16x64xbf16>
    %cst_122 = arith.constant dense<0.000000e+00> : vector<8x64xf32>
    %392 = tpu.matmul %390, %391, %cst_122 {dimension_numbers = #tpu.dot_dimension_numbers<[1], [0], [0], [1], [0, 0, 1, 1], [], []>} : vector<8x16xbf16>, vector<16x64xbf16>, vector<8x64xf32> -> vector<8x64xf32>
    %393 = arith.addf %373, %392 : vector<8x64xf32>
    %394 = vector.extract_strided_slice %271 {offsets = [8, 32], sizes = [8, 16], strides = [1, 1]} : vector<16x192xbf16> to vector<8x16xbf16>
    %395 = vector.extract_strided_slice %271 {offsets = [8, 96], sizes = [8, 16], strides = [1, 1]} : vector<16x192xbf16> to vector<8x16xbf16>
    %396 = vector.extract_strided_slice %271 {offsets = [8, 160], sizes = [8, 16], strides = [1, 1]} : vector<16x192xbf16> to vector<8x16xbf16>
    %cst_123 = arith.constant dense<0.000000e+00> : vector<8x8xf32>
    %397 = tpu.matmul %394, %395, %cst_123 {dimension_numbers = #tpu.dot_dimension_numbers<[1], [1], [0], [0], [0, 0, 1, 0], [], []>} : vector<8x16xbf16>, vector<8x16xbf16>, vector<8x8xf32> -> vector<8x8xf32>
    %cst_124 = arith.constant dense<0xFF800000> : vector<8xf32>
    %398 = vector.multi_reduction <maximumf>, %397, %cst_124 [1] : vector<8x8xf32> to vector<8xf32>
    %399 = vector.shape_cast %398 : vector<8xf32> to vector<8x1xf32>
    %400 = vector.broadcast %399 : vector<8x1xf32> to vector<8x8xf32>
    %401 = arith.subf %397, %400 : vector<8x8xf32>
    %402 = math.exp %401 : vector<8x8xf32>
    %cst_125 = arith.constant dense<0.000000e+00> : vector<8xf32>
    %403 = vector.multi_reduction <add>, %402, %cst_125 [1] : vector<8x8xf32> to vector<8xf32>
    %404 = vector.shape_cast %403 : vector<8xf32> to vector<8x1xf32>
    %405 = tpu.reciprocal %404 {approx = true} : vector<8x1xf32> -> vector<8x1xf32>
    %406 = vector.broadcast %405 : vector<8x1xf32> to vector<8x8xf32>
    %407 = arith.mulf %402, %406 : vector<8x8xf32>
    %408 = arith.truncf %407 : vector<8x8xf32> to vector<8x8xbf16>
    %cst_126 = arith.constant dense<0.000000e+00> : vector<8x16xf32>
    %409 = tpu.matmul %408, %396, %cst_126 {dimension_numbers = #tpu.dot_dimension_numbers<[1], [0], [0], [1], [0, 0, 1, 1], [], []>} : vector<8x8xbf16>, vector<8x16xbf16>, vector<8x16xf32> -> vector<8x16xf32>
    %410 = arith.truncf %409 : vector<8x16xf32> to vector<8x16xbf16>
    %411 = vector.extract_strided_slice %252 {offsets = [32, 0], sizes = [16, 64], strides = [1, 1]} : vector<64x64xbf16> to vector<16x64xbf16>
    %cst_127 = arith.constant dense<0.000000e+00> : vector<8x64xf32>
    %412 = tpu.matmul %410, %411, %cst_127 {dimension_numbers = #tpu.dot_dimension_numbers<[1], [0], [0], [1], [0, 0, 1, 1], [], []>} : vector<8x16xbf16>, vector<16x64xbf16>, vector<8x64xf32> -> vector<8x64xf32>
    %413 = arith.addf %393, %412 : vector<8x64xf32>
    %414 = vector.extract_strided_slice %271 {offsets = [8, 48], sizes = [8, 16], strides = [1, 1]} : vector<16x192xbf16> to vector<8x16xbf16>
    %415 = vector.extract_strided_slice %271 {offsets = [8, 112], sizes = [8, 16], strides = [1, 1]} : vector<16x192xbf16> to vector<8x16xbf16>
    %416 = vector.extract_strided_slice %271 {offsets = [8, 176], sizes = [8, 16], strides = [1, 1]} : vector<16x192xbf16> to vector<8x16xbf16>
    %cst_128 = arith.constant dense<0.000000e+00> : vector<8x8xf32>
    %417 = tpu.matmul %414, %415, %cst_128 {dimension_numbers = #tpu.dot_dimension_numbers<[1], [1], [0], [0], [0, 0, 1, 0], [], []>} : vector<8x16xbf16>, vector<8x16xbf16>, vector<8x8xf32> -> vector<8x8xf32>
    %cst_129 = arith.constant dense<0xFF800000> : vector<8xf32>
    %418 = vector.multi_reduction <maximumf>, %417, %cst_129 [1] : vector<8x8xf32> to vector<8xf32>
    %419 = vector.shape_cast %418 : vector<8xf32> to vector<8x1xf32>
    %420 = vector.broadcast %419 : vector<8x1xf32> to vector<8x8xf32>
    %421 = arith.subf %417, %420 : vector<8x8xf32>
    %422 = math.exp %421 : vector<8x8xf32>
    %cst_130 = arith.constant dense<0.000000e+00> : vector<8xf32>
    %423 = vector.multi_reduction <add>, %422, %cst_130 [1] : vector<8x8xf32> to vector<8xf32>
    %424 = vector.shape_cast %423 : vector<8xf32> to vector<8x1xf32>
    %425 = tpu.reciprocal %424 {approx = true} : vector<8x1xf32> -> vector<8x1xf32>
    %426 = vector.broadcast %425 : vector<8x1xf32> to vector<8x8xf32>
    %427 = arith.mulf %422, %426 : vector<8x8xf32>
    %428 = arith.truncf %427 : vector<8x8xf32> to vector<8x8xbf16>
    %cst_131 = arith.constant dense<0.000000e+00> : vector<8x16xf32>
    %429 = tpu.matmul %428, %416, %cst_131 {dimension_numbers = #tpu.dot_dimension_numbers<[1], [0], [0], [1], [0, 0, 1, 1], [], []>} : vector<8x8xbf16>, vector<8x16xbf16>, vector<8x16xf32> -> vector<8x16xf32>
    %430 = arith.truncf %429 : vector<8x16xf32> to vector<8x16xbf16>
    %431 = vector.extract_strided_slice %252 {offsets = [48, 0], sizes = [16, 64], strides = [1, 1]} : vector<64x64xbf16> to vector<16x64xbf16>
    %cst_132 = arith.constant dense<0.000000e+00> : vector<8x64xf32>
    %432 = tpu.matmul %430, %431, %cst_132 {dimension_numbers = #tpu.dot_dimension_numbers<[1], [0], [0], [1], [0, 0, 1, 1], [], []>} : vector<8x16xbf16>, vector<16x64xbf16>, vector<8x64xf32> -> vector<8x64xf32>
    %433 = arith.addf %413, %432 : vector<8x64xf32>
    %434 = tpu.concatenate %352, %433 in 0 : vector<8x64xf32>, vector<8x64xf32> -> vector<16x64xf32>
    %435 = vector.broadcast %260 : vector<1x64xf32> to vector<16x64xf32>
    %436 = arith.addf %434, %435 : vector<16x64xf32>
    %437 = arith.addf %248, %436 : vector<16x64xf32>
    %cst_133 = arith.constant dense<0.000000e+00> : vector<16xf32>
    %438 = vector.multi_reduction <add>, %437, %cst_133 [1] : vector<16x64xf32> to vector<16xf32>
    %439 = vector.shape_cast %438 : vector<16xf32> to vector<16x1xf32>
    %cst_134 = arith.constant 6.400000e+01 : f32
    %440 = vector.broadcast %cst_134 : f32 to vector<16x1xf32>
    %441 = arith.divf %439, %440 : vector<16x1xf32>
    %442 = vector.broadcast %441 : vector<16x1xf32> to vector<16x64xf32>
    %443 = arith.subf %437, %442 : vector<16x64xf32>
    %444 = arith.mulf %443, %443 : vector<16x64xf32>
    %cst_135 = arith.constant dense<0.000000e+00> : vector<16xf32>
    %445 = vector.multi_reduction <add>, %444, %cst_135 [1] : vector<16x64xf32> to vector<16xf32>
    %446 = vector.shape_cast %445 : vector<16xf32> to vector<16x1xf32>
    %cst_136 = arith.constant 6.400000e+01 : f32
    %447 = vector.broadcast %cst_136 : f32 to vector<16x1xf32>
    %448 = arith.divf %446, %447 : vector<16x1xf32>
    %449 = vector.broadcast %441 : vector<16x1xf32> to vector<16x64xf32>
    %450 = arith.subf %437, %449 : vector<16x64xf32>
    %cst_137 = arith.constant 9.99999974E-6 : f32
    %451 = vector.broadcast %cst_137 : f32 to vector<16x1xf32>
    %452 = arith.addf %448, %451 : vector<16x1xf32>
    %453 = math.rsqrt %452 : vector<16x1xf32>
    %454 = vector.broadcast %453 : vector<16x1xf32> to vector<16x64xf32>
    %455 = arith.mulf %450, %454 : vector<16x64xf32>
    %456 = vector.broadcast %261 : vector<1x64xf32> to vector<16x64xf32>
    %457 = arith.mulf %455, %456 : vector<16x64xf32>
    %458 = vector.broadcast %262 : vector<1x64xf32> to vector<16x64xf32>
    %459 = arith.addf %457, %458 : vector<16x64xf32>
    %460 = arith.truncf %459 : vector<16x64xf32> to vector<16x64xbf16>
    %cst_138 = arith.constant dense<0.000000e+00> : vector<16x128xf32>
    %461 = tpu.matmul %460, %254, %cst_138 {dimension_numbers = #tpu.dot_dimension_numbers<[1], [0], [0], [1], [0, 0, 1, 1], [], []>} : vector<16x64xbf16>, vector<64x128xbf16>, vector<16x128xf32> -> vector<16x128xf32>
    %462 = vector.broadcast %263 : vector<1x128xf32> to vector<16x128xf32>
    %463 = arith.addf %461, %462 : vector<16x128xf32>
    %cst_139 = arith.constant 0.000000e+00 : f32
    %464 = vector.broadcast %cst_139 : f32 to vector<16x128xf32>
    %465 = arith.maximumf %463, %464 : vector<16x128xf32>
    %466 = arith.truncf %465 : vector<16x128xf32> to vector<16x128xbf16>
    %cst_140 = arith.constant dense<0.000000e+00> : vector<16x64xf32>
    %467 = tpu.matmul %466, %256, %cst_140 {dimension_numbers = #tpu.dot_dimension_numbers<[1], [0], [0], [1], [0, 0, 1, 1], [], []>} : vector<16x128xbf16>, vector<128x64xbf16>, vector<16x64xf32> -> vector<16x64xf32>
    %468 = vector.broadcast %264 : vector<1x64xf32> to vector<16x64xf32>
    %469 = arith.addf %467, %468 : vector<16x64xf32>
    %470 = arith.addf %459, %469 : vector<16x64xf32>
    %cst_141 = arith.constant dense<0.000000e+00> : vector<16xf32>
    %471 = vector.multi_reduction <add>, %470, %cst_141 [1] : vector<16x64xf32> to vector<16xf32>
    %472 = vector.shape_cast %471 : vector<16xf32> to vector<16x1xf32>
    %cst_142 = arith.constant 6.400000e+01 : f32
    %473 = vector.broadcast %cst_142 : f32 to vector<16x1xf32>
    %474 = arith.divf %472, %473 : vector<16x1xf32>
    %475 = vector.broadcast %474 : vector<16x1xf32> to vector<16x64xf32>
    %476 = arith.subf %470, %475 : vector<16x64xf32>
    %477 = arith.mulf %476, %476 : vector<16x64xf32>
    %cst_143 = arith.constant dense<0.000000e+00> : vector<16xf32>
    %478 = vector.multi_reduction <add>, %477, %cst_143 [1] : vector<16x64xf32> to vector<16xf32>
    %479 = vector.shape_cast %478 : vector<16xf32> to vector<16x1xf32>
    %cst_144 = arith.constant 6.400000e+01 : f32
    %480 = vector.broadcast %cst_144 : f32 to vector<16x1xf32>
    %481 = arith.divf %479, %480 : vector<16x1xf32>
    %482 = vector.broadcast %474 : vector<16x1xf32> to vector<16x64xf32>
    %483 = arith.subf %470, %482 : vector<16x64xf32>
    %cst_145 = arith.constant 9.99999974E-6 : f32
    %484 = vector.broadcast %cst_145 : f32 to vector<16x1xf32>
    %485 = arith.addf %481, %484 : vector<16x1xf32>
    %486 = math.rsqrt %485 : vector<16x1xf32>
    %487 = vector.broadcast %486 : vector<16x1xf32> to vector<16x64xf32>
    %488 = arith.mulf %483, %487 : vector<16x64xf32>
    %489 = vector.broadcast %265 : vector<1x64xf32> to vector<16x64xf32>
    %490 = arith.mulf %488, %489 : vector<16x64xf32>
    %491 = vector.broadcast %266 : vector<1x64xf32> to vector<16x64xf32>
    %492 = arith.addf %490, %491 : vector<16x64xf32>
    %493 = arith.truncf %492 : vector<16x64xf32> to vector<16x64xbf16>
    %c0_146 = arith.constant 0 : index
    %c0_147 = arith.constant 0 : index
    %494 = vector.load %arg8[%c0_146, %c0_147] : memref<64x128xbf16, #tpu.memory_space<vmem>>, vector<64x128xbf16>
    %cst_148 = arith.constant dense<0.000000e+00> : vector<16x128xf32>
    %495 = tpu.matmul %493, %494, %cst_148 {dimension_numbers = #tpu.dot_dimension_numbers<[1], [0], [0], [1], [0, 0, 1, 1], [], []>} : vector<16x64xbf16>, vector<64x128xbf16>, vector<16x128xf32> -> vector<16x128xf32>
    %c0_149 = arith.constant 0 : index
    %c0_150 = arith.constant 0 : index
    %496 = vector.load %arg9[%c0_149, %c0_150] : memref<1x128xf32, #tpu.memory_space<vmem>>, vector<1x128xf32>
    %497 = vector.broadcast %496 : vector<1x128xf32> to vector<16x128xf32>
    %498 = arith.addf %495, %497 : vector<16x128xf32>
    %c0_151 = arith.constant 0 : index
    %c0_152 = arith.constant 0 : index
    %499 = vector.load %arg10[%c0_151, %c0_152] : memref<16x128xf32, #tpu.memory_space<vmem>>, vector<16x128xf32>
    tpu.vector_store %arg10[%c0_151, %c0_152], %498 {strides = array<i32>} : memref<16x128xf32, #tpu.memory_space<vmem>>, vector<16x128xf32>,
    return
  }
}

</mosaic_0001>

<bundles_post_ra>
// kernel: generator_forward.1
= control target key start
LH: loop header
LB: loop body
LE: loop exit
PB: predicated region body
PF: predicated region fallthrough
CT: control target
= control target key end

     0   :  { %v4391_v0 = vmov 0.0   ;;  %vm4392_vm0 = vmmov 0   ;;  %v4393_v18 = vmov 0   ;;  %vm242_vm1 = vcmask 523264   ;;  %s4394_s30 = smov 112   ;;  %s4395_s11 = smov 64   ;;  %s5243_s1 = inlined_call_operand.vmem [shape: bf16[128,64], index: 1, kind: input, shape index: {}]   ;;  %s5244_s3 = inlined_call_operand.vmem [shape: bf16[2,64,192], index: 3, kind: input, shape index: {}]   ;;  %s5245_s0 = inlined_call_operand.vmem [shape: bf16[16,128], index: 0, kind: input, shape index: {}]   ;;  %s5246_s2 = inlined_call_operand.vmem [shape: f32[16,64], index: 2, kind: input, shape index: {}]   ;;  %s5247_s7 = inlined_call_operand.vmem [shape: f32[2,8,192], index: 7, kind: input, shape index: {}]   ;;  %s5248_s4 = inlined_call_operand.vmem [shape: bf16[2,64,64], index: 4, kind: input, shape index: {}]   ;;  %s5249_s5 = inlined_call_operand.vmem [shape: bf16[2,64,128], index: 5, kind: input, shape index: {}]   ;;  %s5250_s6 = inlined_call_operand.vmem [shape: bf16[2,128,64], index: 6, kind: input, shape index: {}]   ;;  %s5251_s8 = inlined_call_operand.vmem [shape: bf16[64,128], index: 8, kind: input, shape index: {}]   ;;  %s5252_s9 = inlined_call_operand.vmem [shape: f32[1,128], index: 9, kind: input, shape index: {}]   ;;  %s5253_s10 = inlined_call_operand.vmem [shape: f32[16,128], index: 10, kind: output, shape index: {}]  }
   0x1   :  { %3846 = vmatprep.subr.bf16.mxu0 %v4391_v0  ;;  %v4240_v1 = vld [vmem:[%s5243_s1 + $0x38] sm:$0xff]   ;;  %3862 = vmatprep.mubr.msk.bf16.mxu0 %vm4392_vm0, %v4391_v0  ;;  %v4241_v2 = vld [vmem:[%s5243_s1 + $0x30] sm:$0xff]   ;;  %v4242_v3 = vld [vmem:[%s5243_s1 + $0x28] sm:$0xff]   ;;  %v194_v28 = vlaneseq  ;;  %s4396_s12 = smov 48   ;;  %vm294_vm2 = vcmask 130048   ;;  %vm357_vm3 = vcmask 1043456  }
   0x2   :  { %3847 = vmatpush3.bf16.msra.mxu0 %v4240_v1  ;;  %v4243_v4 = vld [vmem:[%s5243_s1 + $0x20] sm:$0xff]   ;;  %v4249_v5 = vld [vmem:[%s5244_s3 + $0x34] ss:$8 sps:$4 sm:$0xff]   ;;  %v4251_v6 = vld [vmem:[%s5244_s3 + $0x30] ss:$8 sps:$4 sm:$0xff]   ;;  %278 = vmatprep.mubr.bf16.mxu1 %v4393_v18  ;;  %vm341_vm4 = vcmask 64512  }
   0x3   :  { %3848 = vmatprep.subr.bf16.mxu0 %v4391_v0  ;;  %254 = vmatprep.subr.bf16.mxu1 %v4249_v5  ;;  %v4252_v7 = vld [vmem:[%s5244_s3 + $0x24] ss:$8 sps:$4 sm:$0xff]   ;;  %v4254_v8 = vld [vmem:[%s5244_s3 + $0x20] ss:$8 sps:$4 sm:$0xff]   ;;  %v4244_v9 = vld [vmem:[%s5243_s1 + $0x18] sm:$0xff]   ;;  %v4537_v29 = vshrl.u32 %v194_v28, 7 }
   0x4   :  { %255 = vmatpush1.bf16.msra.mxu1 %v4251_v6  ;;  %v4245_v10 = vld [vmem:[%s5243_s1 + $0x10] sm:$0xff]   ;;  %v4246_v11 = vld [vmem:[%s5243_s1 + $0x8] sm:$0xff]   ;;  %v4247_v12 = vld [vmem:[%s5243_s1] sm:$0xff]   ;;  %s4397_s15 = smov 32   ;;  %s4398_s16 = smov 96  }
   0x5   :  { %256 = vmatprep.subr.bf16.mxu1 %v4252_v7  ;;  %v4248_v13 = vld [vmem:[%s5245_s0] sm:$0xff]   ;;  %v4255_v14 = vld [vmem:[%s5244_s3 + $0x14] ss:$8 sps:$4 sm:$0xff]   ;;  %v4257_v15 = vld [vmem:[%s5244_s3 + $0x10] ss:$8 sps:$4 sm:$0xff]   ;;  %v4540_v30 = vsub.s32 0, %v4537_v29 }
   0x6   :  { %3849 = vmatpush3.bf16.msra.mxu0 %v4241_v2  ;;  %v4258_v16 = vld [vmem:[%s5244_s3 + $0x4] ss:$8 sps:$4 sm:$0xff]   ;;  %v4260_v17 = vld [vmem:[%s5244_s3] ss:$8 sps:$4 sm:$0xff]   ;;  %s4399_s21 = smov 80   ;;  %s4400_s22 = smov 16  }
   0x7   :  { %3850 = vmatprep.subr.bf16.mxu0 %v4391_v0  ;;  %v54_v20 = vld [vmem:[%s5246_s2] sm:$0xff]  ;;  %v55_v22 = vld [vmem:[%s5246_s2 + $0x8] sm:$0xff] }
   0x8   :  { %257 = vmatpush1.bf16.msra.mxu1 %v4254_v8  ;;  %v4545_v31 = vld [vmem:[%s5247_s7] sm:$0xff]  ;;  %v192_v39 = vld [vmem:[%s5247_s7 + $0x8] sm:$0xff] }
   0x9   :  { %258 = vmatprep.subr.bf16.mxu1 %v4255_v14  ;;  %v197_v33 = vrot.slane %v4545_v31, %v4540_v30  ;;  %v201_v41 = vrot.slane %v192_v39, %v4540_v30 }
   0xa   :  { %3851 = vmatpush3.bf16.msra.mxu0 %v4242_v3 }
   0xb   :  { %3852 = vmatprep.subr.bf16.mxu0 %v4391_v0 }
   0xc   :  { %259 = vmatpush1.bf16.msra.mxu1 %v4257_v15 }
   0xd   :  { %260 = vmatprep.subr.bf16.mxu1 %v4258_v16 }
   0xe   :  { %3853 = vmatpush3.bf16.msra.mxu0 %v4243_v4 }
   0xf   :  { %3854 = vmatprep.subr.bf16.mxu0 %v4391_v0 }
  0x10   :  { %261 = vmatpush1.bf16.msra.mxu1 %v4260_v17 }
  0x11   :  { %3866 = vmatprep.subr.bf16.mxu1 %v4391_v0 }
  0x12   :  { %3855 = vmatpush3.bf16.msra.mxu0 %v4244_v9 }
  0x13   :  { %3856 = vmatprep.subr.bf16.mxu0 %v4391_v0 }
  0x16   :  { %3857 = vmatpush3.bf16.msra.mxu0 %v4245_v10 }
  0x17   :  { %3858 = vmatprep.subr.bf16.mxu0 %v4391_v0 }
  0x1a   :  { %3859 = vmatpush3.bf16.msra.mxu0 %v4246_v11 }
  0x1b   :  { %3860 = vmatprep.subr.bf16.mxu0 %v4391_v0 }
  0x1e   :  { %3861 = vmatpush3.bf16.msra.mxu0 %v4247_v12 }
  0x1f   :  { %3878 = vmatprep.subr.bf16.mxu0 %v4391_v0 }
  0x21   :  { %3863 = vmatmul.mubr.bf16.vlgmr.msra.gmra.mxu0 %v4248_v13 }
  0x22   :  { %3880 = vmatprep.mubr.msk.bf16.mxu0 %vm4392_vm0, %v4391_v0 }
  0xe1   :  { %v144_v19 = vpop.f32.mrf.mxu0 }
  0xe2   :  { %v4528_v24 = vadd.f32 %v144_v19, %v54_v20  ;;  %v4598_v19 = vld [vmem:[%s5248_s4] sm:$0xff]   ;;  %v4605_v20 = vld [vmem:[%s5248_s4 + $0x8] sm:$0xff]  }
  0xe3   :  { %v3864_v21 = vpop.f32.mrf.mxu0 }
  0xe5   :  { %v147_v23 = vpop.f32.mrf.mxu0 }
  0xe6   :  { %v4530_v25 = vadd.f32 %v147_v23, %v55_v22 }
  0xe7   :  { %v3865_v26 = vpop.f32.mrf.mxu0 }
  0xe8   :  { %v193_v27 = vpack.c.bf16 %v4530_v25, %v4528_v24 }
  0xea   :  { %3568 = vmatmul.mubr.msk.bf16.vlgmr.msra.gmra.mxu1 %vm242_vm1, %v193_v27 }
  0xeb   :  { %3868 = vmatprep.mubr.msk.bf16.mxu1 %vm4392_vm0, %v4391_v0 }
 0x1aa   :  { %v280_v32 = vpop.f32.mrf.mxu1 }
 0x1ab   :  { %v281_v36 = vadd.f32 %v280_v32, %v197_v33 }
 0x1ac   :  { %v282_v34 = vpop.f32.mrf.mxu1 }
 0x1ad   :  { %v283_v45 = vadd.f32 %v282_v34, %v201_v41 }
 0x1ae   :  { %v284_v35 = vpop.f32.mrf.mxu1 }
 0x1af   :  { %v285_v37 = vadd.f32 %v284_v35, %v197_v33 }
 0x1b0   :  { %v286_v40 = vpop.f32.mrf.mxu1 }
 0x1b1   :  { %v4549_v38 = vpack.c.bf16 %v285_v37, %v281_v36  ;;  %v287_v43 = vadd.f32 %v286_v40, %v201_v41 }
 0x1b3   :  { %402 = vrot.lane.b32.xlu1 %v4549_v38, %s4394_s30  ;;  %292 = vrot.lane.b32.xlu0 %v4549_v38, %s4395_s11  ;;  %v4563_v47 = vpack.c.bf16 %v287_v43, %v283_v45 }
 0x1b5   :  { %v359_v49 = vsel %vm357_vm3, %v4563_v47, 0 }
 0x1b7   :  { %404 = vrot.lane.b32.xlu0 %v4549_v38, %s4396_s12 }
 0x225   :  { %v293_v42 = vpop.permute.xlu0 %292  ;;  %v403_v50 = vpop.permute.xlu1 %402 }
 0x226   :  { %v299_v44 = vsel %vm294_vm2, %v293_v42, 0 }
 0x227   :  { %3867 = vmatpush3.bf16.xpose.msra.mxu1 %v299_v44 }
 0x228   :  { %3872 = vmatprep.subr.bf16.mxu1 %v4391_v0 }
 0x229   :  { %v405_v46 = vpop.permute.xlu0 %404 }
 0x22a   :  { %v410_v48 = vsel %vm294_vm2, %v405_v46, 0 }
 0x22b   :  { %3879 = vmatpush3.bf16.xpose.msra.mxu0 %v410_v48 }
 0x22c   :  { %3890 = vmatprep.subr.bf16.mxu0 %v4391_v0 }
 0x22e   :  { %3869 = vmatmul.mubr.msk.bf16.vlgmr.msra.gmra.mxu1 %vm294_vm2, %v4549_v38 }
 0x22f   :  { %3873 = vmatpush3.bf16.msra.mxu1 %v359_v49  ;;  %3874 = vmatprep.mubr.msk.bf16.mxu1 %vm4392_vm0, %v4391_v0 }
 0x230   :  { %3884 = vmatprep.subr.bf16.mxu1 %v4391_v0 }
 0x232   :  { %3881 = vmatmul.mubr.msk.bf16.vlgmr.msra.gmra.mxu0 %vm294_vm2, %v403_v50 }
 0x233   :  { %3892 = vmatprep.mubr.msk.bf16.mxu0 %vm4392_vm0, %v4391_v0  ;;  %3891 = vmatpush3.bf16.msra.mxu0 %v4605_v20 }
 0x234   :  { %3902 = vmatprep.subr.bf16.mxu0 %v4391_v0 }
 0x2ee   :  { %v335_v51 = vpop.f32.mrf.mxu1 }
 0x2ef   :  { %v342_v52 = vsel %vm341_vm4, %v335_v51, -inf }
 0x2f0   :  { %343 = vmax.xlane.f32.xlu1 %v342_v52  ;;  %v3870_v53 = vpop.f32.mrf.mxu1 }
 0x2f2   :  { %v338_v54 = vpop.f32.mrf.mxu1  ;;  %v446_v55 = vpop.f32.mrf.mxu0 }
 0x2f3   :  { %v452_v56 = vsel %vm341_vm4, %v446_v55, -inf }
 0x2f4   :  { %v3871_v57 = vpop.f32.mrf.mxu1  ;;  %453 = vmax.xlane.f32.xlu0 %v452_v56  ;;  %v3882_v58 = vpop.f32.mrf.mxu0 }
 0x2f6   :  { %v449_v59 = vpop.f32.mrf.mxu0 }
 0x2f8   :  { %v3883_v60 = vpop.f32.mrf.mxu0 }
 0x379   :  { %v344_v61 = vpop.xlane.xlu1 %343 }
 0x37a   :  { %v345_v62 = vsub.f32 %v335_v51, %v344_v61 }
 0x37c   :  { %v346_v63 = vmul.f32 1.442695, %v345_v62 }
 0x37d   :  { %v454_v1 = vpop.xlane.xlu0 %453 }
 0x37e   :  { %4309 = vpow2.f32 %v346_v63  ;;  %v455_v2 = vsub.f32 %v446_v55, %v454_v1 }
 0x380   :  { %v456_v3 = vmul.f32 1.442695, %v455_v2 }
 0x382   :  { %4311 = vpow2.f32 %v456_v3 }
 0x38b   :  { %v4310_v4 = vpop.eup %4309 }
 0x38c   :  { %v348_v5 = vsel %vm341_vm4, %v4310_v4, 0.0 }
 0x38d   :  { %349 = vadd.xlane.f32.xlu0 %v348_v5 }
 0x38f   :  { %v4312_v6 = vpop.eup %4311 }
 0x390   :  { %v458_v7 = vsel %vm341_vm4, %v4312_v6, 0.0 }
 0x391   :  { %459 = vadd.xlane.f32.xlu1 %v458_v7 }
 0x3a2   :  { %614 = vrot.lane.b32.xlu1 %v4549_v38, %s4397_s15 }
 0x3a3   :  { %465 = vrot.lane.b32.xlu0 %v4563_v47, %s4394_s30 }
 0x3a6   :  { %612 = vrot.lane.b32.xlu1 %v4549_v38, %s4398_s16 }
 0x416   :  { %v350_v8 = vpop.xlane.xlu0 %349 }
 0x417   :  { %4313 = vrcp.f32 %v350_v8 }
 0x41a   :  { %v460_v9 = vpop.xlane.xlu1 %459  ;;  %v466_v12 = vpop.permute.xlu0 %465 }
 0x41b   :  { %4315 = vrcp.f32 %v460_v9  ;;  %v471_v15 = vsel %vm357_vm3, %v466_v12, 0 }
 0x41e   :  { %v615_v28 = vpop.permute.xlu1 %614 }
 0x41f   :  { %v620_v35 = vsel %vm294_vm2, %v615_v28, 0 }
 0x422   :  { %v613_v39 = vpop.permute.xlu1 %612 }
 0x424   :  { %v4314_v10 = vpop.eup %4313 }
 0x425   :  { %v352_v11 = vmul.f32 %v4314_v10, %v4310_v4 }
 0x427   :  { %v353_v13 = vpack.c.bf16 %v352_v11, %v352_v11 }
 0x428   :  { %v4316_v14 = vpop.eup %4315 }
 0x429   :  { %3875 = vmatmul.mubr.msk.bf16.vlgmr.msra.gmra.mxu1 %vm341_vm4, %v353_v13  ;;  %v462_v16 = vmul.f32 %v4316_v14, %v4312_v6  ;;  %v4643_v6 = vld [vmem:[%s5248_s4 + $0x10] sm:$0xff]  }
 0x42a   :  { %3885 = vmatpush3.bf16.msra.mxu1 %v471_v15  ;;  %3886 = vmatprep.mubr.msk.bf16.mxu1 %vm4392_vm0, %v4391_v0 }
 0x42b   :  { %3896 = vmatprep.subr.bf16.mxu1 %v4391_v0  ;;  %v463_v17 = vpack.c.bf16 %v462_v16, %v462_v16 }
 0x431   :  { %3887 = vmatmul.mubr.msk.bf16.vlgmr.msra.gmra.mxu1 %vm341_vm4, %v463_v17  ;;  %v4652_v17 = vrot.slane %v4549_v38, 4 }
 0x432   :  { %3898 = vmatprep.mubr.msk.bf16.mxu1 %vm4392_vm0, %v4391_v0  ;;  %3897 = vmatpush3.bf16.msra.mxu1 %v4598_v19 }
 0x433   :  { %3908 = vmatprep.subr.bf16.mxu1 %v4391_v0 }
 0x4e9   :  { %v395_v21 = vpop.f32.mrf.mxu1 }
 0x4ea   :  { %v401_v22 = vpack.c.bf16 %v395_v21, %v395_v21 }
 0x4eb   :  { %v3876_v23 = vpop.f32.mrf.mxu1 }
 0x4ec   :  { %3899 = vmatmul.mubr.msk.bf16.vlgmr.msra.gmra.mxu1 %vm294_vm2, %v401_v22 }
 0x4ed   :  { %v398_v26 = vpop.f32.mrf.mxu1  ;;  %3910 = vmatprep.mubr.msk.bf16.mxu1 %vm4392_vm0, %v4391_v0 }
 0x4ef   :  { %v3877_v27 = vpop.f32.mrf.mxu1 }
 0x4f1   :  { %v507_v32 = vpop.f32.mrf.mxu1 }
 0x4f2   :  { %v513_v33 = vpack.c.bf16 %v507_v32, %v507_v32 }
 0x4f3   :  { %v3888_v34 = vpop.f32.mrf.mxu1 }
 0x4f4   :  { %3893 = vmatmul.mubr.msk.bf16.vlgmr.msra.gmra.mxu0 %vm294_vm2, %v513_v33 }
 0x4f5   :  { %3903 = vmatpush3.bf16.xpose.msra.mxu0 %v620_v35  ;;  %v510_v36 = vpop.f32.mrf.mxu1  ;;  %3904 = vmatprep.mubr.msk.bf16.mxu0 %vm4392_vm0, %v4391_v0  ;;  %v4669_v35 = vld [vmem:[%s5248_s4 + $0x18] sm:$0xff]  }
 0x4f6   :  { %3914 = vmatprep.subr.bf16.mxu0 %v4391_v0 }
 0x4f7   :  { %v3889_v37 = vpop.f32.mrf.mxu1 }
 0x4fc   :  { %3905 = vmatmul.mubr.msk.bf16.vlgmr.msra.gmra.mxu0 %vm294_vm2, %v613_v39 }
 0x4fd   :  { %3916 = vmatprep.mubr.msk.bf16.mxu0 %vm4392_vm0, %v4391_v0  ;;  %3915 = vmatpush3.bf16.msra.mxu0 %v4643_v6 }
 0x4fe   :  { %3926 = vmatprep.subr.bf16.mxu0 %v4391_v0 }
 0x5ac   :  { %v606_v40 = vpop.f32.mrf.mxu1 }
 0x5ae   :  { %v3900_v41 = vpop.f32.mrf.mxu1 }
 0x5b0   :  { %v609_v42 = vpop.f32.mrf.mxu1 }
 0x5b2   :  { %v3901_v43 = vpop.f32.mrf.mxu1 }
 0x5b4   :  { %v557_v44 = vpop.f32.mrf.mxu0 }
 0x5b5   :  { %v4620_v45 = vadd.f32 %v606_v40, %v557_v44 }
 0x5b6   :  { %v3894_v46 = vpop.f32.mrf.mxu0 }
 0x5b8   :  { %v560_v48 = vpop.f32.mrf.mxu0 }
 0x5ba   :  { %v3895_v49 = vpop.f32.mrf.mxu0 }
 0x5bb   :  { %v4692_v49 = vrot.slane %v4563_v47, 4 }
 0x5bc   :  { %v656_v50 = vpop.f32.mrf.mxu0 }
 0x5bd   :  { %v662_v51 = vsel %vm341_vm4, %v656_v50, -inf }
 0x5be   :  { %663 = vmax.xlane.f32.xlu0 %v662_v51  ;;  %v3906_v52 = vpop.f32.mrf.mxu0 }
 0x5c0   :  { %v659_v53 = vpop.f32.mrf.mxu0 }
 0x5c1   :  { %v1000_v53 = vsel %vm357_vm3, %v4692_v49, 0 }
 0x5c2   :  { %v3907_v54 = vpop.f32.mrf.mxu0 }
 0x5d4   :  { %674 = vrot.lane.b32.xlu0 %v4563_v47, %s4398_s16 }
 0x5d8   :  { %773 = vrot.lane.b32.xlu0 %v4549_v38, %s4399_s21 }
 0x647   :  { %v664_v55 = vpop.xlane.xlu0 %663 }
 0x648   :  { %v665_v56 = vsub.f32 %v656_v50, %v664_v55 }
 0x64a   :  { %v666_v57 = vmul.f32 1.442695, %v665_v56 }
 0x64b   :  { %v675_v58 = vpop.permute.xlu0 %674 }
 0x64c   :  { %4317 = vpow2.f32 %v666_v57  ;;  %v680_v59 = vsel %vm357_vm3, %v675_v58, 0 }
 0x64d   :  { %3909 = vmatpush3.bf16.msra.mxu1 %v680_v59 }
 0x64e   :  { %3920 = vmatprep.subr.bf16.mxu1 %v4391_v0 }
 0x64f   :  { %v774_v5 = vpop.permute.xlu0 %773 }
 0x659   :  { %v4318_v60 = vpop.eup %4317 }
 0x65a   :  { %v668_v61 = vsel %vm341_vm4, %v4318_v60, 0.0 }
 0x65b   :  { %669 = vadd.xlane.f32.xlu1 %v668_v61 }
 0x66c   :  { %775 = vrot.lane.b32.xlu1 %v4549_v38, %s4400_s22 }
 0x6e4   :  { %v670_v62 = vpop.xlane.xlu1 %669 }
 0x6e5   :  { %4319 = vrcp.f32 %v670_v62 }
 0x6e8   :  { %v776_v2 = vpop.permute.xlu1 %775 }
 0x6e9   :  { %v781_v4 = vsel %vm294_vm2, %v776_v2, 0 }
 0x6f2   :  { %v4320_v63 = vpop.eup %4319 }
 0x6f3   :  { %v672_v1 = vmul.f32 %v4320_v63, %v4318_v60 }
 0x6f5   :  { %v673_v3 = vpack.c.bf16 %v672_v1, %v672_v1 }
 0x6f7   :  { %3911 = vmatmul.mubr.msk.bf16.vlgmr.msra.gmra.mxu1 %vm341_vm4, %v673_v3 }
 0x6f8   :  { %3921 = vmatpush3.bf16.xpose.msra.mxu1 %v781_v4  ;;  %3922 = vmatprep.mubr.msk.bf16.mxu1 %vm4392_vm0, %v4391_v0 }
 0x6f9   :  { %3932 = vmatprep.subr.bf16.mxu1 %v4391_v0 }
 0x6ff   :  { %3923 = vmatmul.mubr.msk.bf16.vlgmr.msra.gmra.mxu1 %vm294_vm2, %v774_v5 }
 0x700   :  { %3934 = vmatprep.mubr.msk.bf16.mxu1 %vm4392_vm0, %v4391_v0  ;;  %3933 = vmatpush3.bf16.msra.mxu1 %v4669_v35 }
 0x701   :  { %3944 = vmatprep.subr.bf16.mxu1 %v4391_v0 }
 0x7b7   :  { %v716_v7 = vpop.f32.mrf.mxu1 }
 0x7b8   :  { %v722_v8 = vpack.c.bf16 %v716_v7, %v716_v7 }
 0x7b9   :  { %v3912_v9 = vpop.f32.mrf.mxu1 }
 0x7ba   :  { %3917 = vmatmul.mubr.msk.bf16.vlgmr.msra.gmra.mxu0 %vm294_vm2, %v722_v8 }
 0x7bb   :  { %v719_v10 = vpop.f32.mrf.mxu1  ;;  %3928 = vmatprep.mubr.msk.bf16.mxu0 %vm4392_vm0, %v4391_v0 }
 0x7bd   :  { %v3913_v11 = vpop.f32.mrf.mxu1 }
 0x7bf   :  { %v817_v12 = vpop.f32.mrf.mxu1 }
 0x7c0   :  { %v823_v13 = vsel %vm341_vm4, %v817_v12, -inf }
 0x7c1   :  { %824 = vmax.xlane.f32.xlu1 %v823_v13  ;;  %v3924_v14 = vpop.f32.mrf.mxu1 }
 0x7c3   :  { %v820_v15 = vpop.f32.mrf.mxu1 }
 0x7c5   :  { %v3925_v16 = vpop.f32.mrf.mxu1 }
 0x7d2   :  { %935 = vrot.lane.b32.xlu1 %v4652_v17, %s4395_s11 }
 0x7d6   :  { %1045 = vrot.lane.b32.xlu1 %v4652_v17, %s4396_s12 }
 0x84a   :  { %v825_v21 = vpop.xlane.xlu1 %824 }
 0x84b   :  { %v826_v22 = vsub.f32 %v817_v12, %v825_v21 }
 0x84d   :  { %v827_v23 = vmul.f32 1.442695, %v826_v22 }
 0x84e   :  { %v936_v42 = vpop.permute.xlu1 %935 }
 0x84f   :  { %4321 = vpow2.f32 %v827_v23  ;;  %v941_v44 = vsel %vm294_vm2, %v936_v42, 0 }
 0x85c   :  { %v4322_v26 = vpop.eup %4321 }
 0x85d   :  { %v829_v27 = vsel %vm341_vm4, %v4322_v26, 0.0 }
 0x85e   :  { %830 = vadd.xlane.f32.xlu0 %v829_v27 }
 0x874   :  { %835 = vrot.lane.b32.xlu0 %v4563_v47, %s4399_s21 }
 0x878   :  { %1043 = vrot.lane.b32.xlu0 %v4652_v17, %s4394_s30 }
 0x87a   :  { %v766_v38 = vpop.f32.mrf.mxu0 }
 0x87b   :  { %v4664_v28 = vadd.f32 %v766_v38, %v4620_v45  ;;  %v1046_v45 = vpop.permute.xlu1 %1045 }
 0x87c   :  { %v3918_v32 = vpop.f32.mrf.mxu0  ;;  %v1051_v46 = vsel %vm294_vm2, %v1046_v45, 0 }
 0x87e   :  { %v769_v33 = vpop.f32.mrf.mxu0 }
 0x880   :  { %v3919_v34 = vpop.f32.mrf.mxu0 }
 0x8e7   :  { %v831_v36 = vpop.xlane.xlu0 %830 }
 0x8e8   :  { %4323 = vrcp.f32 %v831_v36 }
 0x8eb   :  { %v836_v37 = vpop.permute.xlu0 %835 }
 0x8ec   :  { %v841_v39 = vsel %vm357_vm3, %v836_v37, 0 }
 0x8ed   :  { %3927 = vmatpush3.bf16.msra.mxu0 %v841_v39 }
 0x8ee   :  { %3938 = vmatprep.subr.bf16.mxu0 %v4391_v0 }
 0x8ef   :  { %v1044_v48 = vpop.permute.xlu0 %1043 }
 0x8f5   :  { %v4324_v40 = vpop.eup %4323 }
 0x8f6   :  { %v833_v41 = vmul.f32 %v4324_v40, %v4322_v26 }
 0x8f8   :  { %v834_v43 = vpack.c.bf16 %v833_v41, %v833_v41 }
 0x8fa   :  { %3929 = vmatmul.mubr.msk.bf16.vlgmr.msra.gmra.mxu0 %vm341_vm4, %v834_v43 }
 0x8fb   :  { %3939 = vmatpush3.bf16.xpose.msra.mxu0 %v941_v44  ;;  %3940 = vmatprep.mubr.msk.bf16.mxu0 %vm4392_vm0, %v4391_v0 }
 0x8fc   :  { %3950 = vmatprep.subr.bf16.mxu0 %v4391_v0 }
 0x902   :  { %3941 = vmatmul.mubr.msk.bf16.vlgmr.msra.gmra.mxu0 %vm294_vm2, %v4652_v17 }
 0x903   :  { %3951 = vmatpush3.bf16.xpose.msra.mxu0 %v1051_v46  ;;  %3952 = vmatprep.mubr.msk.bf16.mxu0 %vm4392_vm0, %v4391_v0 }
 0x904   :  { %3962 = vmatprep.subr.bf16.mxu0 %v4391_v0 }
 0x90a   :  { %3953 = vmatmul.mubr.msk.bf16.vlgmr.msra.gmra.mxu0 %vm294_vm2, %v1044_v48 }
 0x90b   :  { %3963 = vmatpush3.bf16.msra.mxu0 %v4605_v20  ;;  %3964 = vmatprep.mubr.msk.bf16.mxu0 %vm4392_vm0, %v4391_v0 }
 0x90c   :  { %3974 = vmatprep.subr.bf16.mxu0 %v4391_v0 }
 0x9ba   :  { %v877_v50 = vpop.f32.mrf.mxu0 }
 0x9bb   :  { %v883_v51 = vpack.c.bf16 %v877_v50, %v877_v50 }
 0x9bc   :  { %v3930_v52 = vpop.f32.mrf.mxu0 }
 0x9bd   :  { %3935 = vmatmul.mubr.msk.bf16.vlgmr.msra.gmra.mxu1 %vm294_vm2, %v883_v51 }
 0x9be   :  { %3945 = vmatpush3.bf16.msra.mxu1 %v1000_v53  ;;  %v880_v54 = vpop.f32.mrf.mxu0  ;;  %3946 = vmatprep.mubr.msk.bf16.mxu1 %vm4392_vm0, %v4391_v0 }
 0x9bf   :  { %3956 = vmatprep.subr.bf16.mxu1 %v4391_v0 }
 0x9c0   :  { %v3931_v20 = vpop.f32.mrf.mxu0 }
 0x9c2   :  { %v977_v55 = vpop.f32.mrf.mxu0 }
 0x9c3   :  { %v983_v47 = vsel %vm341_vm4, %v977_v55, -inf }
 0x9c4   :  { %984 = vmax.xlane.f32.xlu1 %v983_v47  ;;  %v3942_v56 = vpop.f32.mrf.mxu0 }
 0x9c6   :  { %v980_v57 = vpop.f32.mrf.mxu0 }
 0x9c8   :  { %v3943_v58 = vpop.f32.mrf.mxu0 }
 0x9ca   :  { %v1087_v59 = vpop.f32.mrf.mxu0 }
 0x9cb   :  { %v1093_v60 = vsel %vm341_vm4, %v1087_v59, -inf }
 0x9cc   :  { %1094 = vmax.xlane.f32.xlu0 %v1093_v60  ;;  %v3954_v61 = vpop.f32.mrf.mxu0 }
 0x9ce   :  { %v1090_v62 = vpop.f32.mrf.mxu0 }
 0x9d0   :  { %v3955_v63 = vpop.f32.mrf.mxu0 }
 0xa4d   :  { %v985_v1 = vpop.xlane.xlu1 %984 }
 0xa4e   :  { %v986_v2 = vsub.f32 %v977_v55, %v985_v1 }
 0xa50   :  { %v987_v3 = vmul.f32 1.442695, %v986_v2 }
 0xa52   :  { %4325 = vpow2.f32 %v987_v3 }
 0xa55   :  { %v1095_v4 = vpop.xlane.xlu0 %1094 }
 0xa56   :  { %v1096_v5 = vsub.f32 %v1087_v59, %v1095_v4 }
 0xa58   :  { %v1097_v7 = vmul.f32 1.442695, %v1096_v5 }
 0xa5a   :  { %4327 = vpow2.f32 %v1097_v7 }
 0xa5f   :  { %v4326_v8 = vpop.eup %4325 }
 0xa60   :  { %v989_v9 = vsel %vm341_vm4, %v4326_v8, 0.0 }
 0xa61   :  { %990 = vadd.xlane.f32.xlu0 %v989_v9 }
 0xa67   :  { %v4328_v10 = vpop.eup %4327 }
 0xa68   :  { %v1099_v11 = vsel %vm341_vm4, %v4328_v10, 0.0 }
 0xa69   :  { %1100 = vadd.xlane.f32.xlu1 %v1099_v11 }
 0xa77   :  { %1105 = vrot.lane.b32.xlu0 %v4692_v49, %s4394_s30 }
 0xa7a   :  { %1242 = vrot.lane.b32.xlu1 %v4652_v17, %s4397_s15 }
 0xa7d   :  { %v927_v12 = vpop.f32.mrf.mxu1 }
 0xa7e   :  { %v4709_v13 = vadd.f32 %v927_v12, %v4664_v28  ;;  %1240 = vrot.lane.b32.xlu1 %v4652_v17, %s4398_s16 }
 0xa7f   :  { %v3936_v14 = vpop.f32.mrf.mxu1 }
 0xa81   :  { %v930_v15 = vpop.f32.mrf.mxu1 }
 0xa83   :  { %v3937_v16 = vpop.f32.mrf.mxu1 }
 0xaea   :  { %v991_v21 = vpop.xlane.xlu0 %990 }
 0xaeb   :  { %4329 = vrcp.f32 %v991_v21 }
 0xaee   :  { %v1106_v27 = vpop.permute.xlu0 %1105 }
 0xaef   :  { %v1111_v32 = vsel %vm357_vm3, %v1106_v27, 0 }
 0xaf2   :  { %v1101_v22 = vpop.xlane.xlu1 %1100 }
 0xaf3   :  { %4331 = vrcp.f32 %v1101_v22 }
 0xaf6   :  { %v1243_v42 = vpop.permute.xlu1 %1242 }
 0xaf8   :  { %v4330_v23 = vpop.eup %4329 }
 0xaf9   :  { %v993_v26 = vmul.f32 %v4330_v23, %v4326_v8 }
 0xafa   :  { %v1241_v50 = vpop.permute.xlu1 %1240 }
 0xafb   :  { %v994_v38 = vpack.c.bf16 %v993_v26, %v993_v26 }
 0xafd   :  { %3947 = vmatmul.mubr.msk.bf16.vlgmr.msra.gmra.mxu1 %vm341_vm4, %v994_v38 }
 0xafe   :  { %3957 = vmatpush3.bf16.msra.mxu1 %v1111_v32  ;;  %3958 = vmatprep.mubr.msk.bf16.mxu1 %vm4392_vm0, %v4391_v0 }
 0xaff   :  { %3968 = vmatprep.subr.bf16.mxu1 %v4391_v0 }
 0xb00   :  { %v4332_v28 = vpop.eup %4331 }
 0xb01   :  { %v1103_v33 = vmul.f32 %v4332_v28, %v4328_v10 }
 0xb03   :  { %v1104_v34 = vpack.c.bf16 %v1103_v33, %v1103_v33 }
 0xb05   :  { %3959 = vmatmul.mubr.msk.bf16.vlgmr.msra.gmra.mxu1 %vm341_vm4, %v1104_v34 }
 0xb06   :  { %3969 = vmatpush3.bf16.msra.mxu1 %v4598_v19  ;;  %3970 = vmatprep.mubr.msk.bf16.mxu1 %vm4392_vm0, %v4391_v0  ;;  %v1248_v19 = vsel %vm294_vm2, %v1243_v42, 0 }
 0xb07   :  { %3980 = vmatprep.subr.bf16.mxu1 %v4391_v0 }
 0xbbd   :  { %v1036_v36 = vpop.f32.mrf.mxu1 }
 0xbbe   :  { %v1042_v37 = vpack.c.bf16 %v1036_v36, %v1036_v36 }
 0xbbf   :  { %v3948_v39 = vpop.f32.mrf.mxu1 }
 0xbc0   :  { %3971 = vmatmul.mubr.msk.bf16.vlgmr.msra.gmra.mxu1 %vm294_vm2, %v1042_v37 }
 0xbc1   :  { %v1039_v40 = vpop.f32.mrf.mxu1  ;;  %3982 = vmatprep.mubr.msk.bf16.mxu1 %vm4392_vm0, %v4391_v0 }
 0xbc3   :  { %v3949_v41 = vpop.f32.mrf.mxu1 }
 0xbc5   :  { %v1147_v43 = vpop.f32.mrf.mxu1 }
 0xbc6   :  { %v1153_v44 = vpack.c.bf16 %v1147_v43, %v1147_v43 }
 0xbc7   :  { %v3960_v45 = vpop.f32.mrf.mxu1 }
 0xbc8   :  { %3965 = vmatmul.mubr.msk.bf16.vlgmr.msra.gmra.mxu0 %vm294_vm2, %v1153_v44 }
 0xbc9   :  { %3975 = vmatpush3.bf16.xpose.msra.mxu0 %v1248_v19  ;;  %v1150_v46 = vpop.f32.mrf.mxu1  ;;  %3976 = vmatprep.mubr.msk.bf16.mxu0 %vm4392_vm0, %v4391_v0 }
 0xbca   :  { %3986 = vmatprep.subr.bf16.mxu0 %v4391_v0 }
 0xbcb   :  { %v3961_v48 = vpop.f32.mrf.mxu1 }
 0xbd0   :  { %3977 = vmatmul.mubr.msk.bf16.vlgmr.msra.gmra.mxu0 %vm294_vm2, %v1241_v50 }
 0xbd1   :  { %3987 = vmatpush3.bf16.msra.mxu0 %v4643_v6  ;;  %3988 = vmatprep.mubr.msk.bf16.mxu0 %vm4392_vm0, %v4391_v0 }
 0xbd2   :  { %3998 = vmatprep.subr.bf16.mxu0 %v4391_v0 }
 0xc80   :  { %v1234_v51 = vpop.f32.mrf.mxu1 }
 0xc82   :  { %v3972_v52 = vpop.f32.mrf.mxu1 }
 0xc84   :  { %v1237_v53 = vpop.f32.mrf.mxu1 }
 0xc86   :  { %v3973_v54 = vpop.f32.mrf.mxu1 }
 0xc88   :  { %v1191_v20 = vpop.f32.mrf.mxu0 }
 0xc89   :  { %v4736_v55 = vadd.f32 %v1234_v51, %v1191_v20 }
 0xc8a   :  { %v3966_v47 = vpop.f32.mrf.mxu0 }
 0xc8c   :  { %v1194_v56 = vpop.f32.mrf.mxu0 }
 0xc8e   :  { %v3967_v57 = vpop.f32.mrf.mxu0 }
 0xc90   :  { %v1284_v58 = vpop.f32.mrf.mxu0 }
 0xc91   :  { %v1290_v59 = vsel %vm341_vm4, %v1284_v58, -inf }
 0xc92   :  { %1291 = vmax.xlane.f32.xlu0 %v1290_v59  ;;  %v3978_v6 = vpop.f32.mrf.mxu0 }
 0xc94   :  { %v1287_v60 = vpop.f32.mrf.mxu0 }
 0xc96   :  { %v3979_v61 = vpop.f32.mrf.mxu0 }
 0xca8   :  { %1302 = vrot.lane.b32.xlu0 %v4692_v49, %s4398_s16 }
 0xcac   :  { %1395 = vrot.lane.b32.xlu0 %v4652_v17, %s4399_s21 }
 0xd1b   :  { %v1292_v62 = vpop.xlane.xlu0 %1291 }
 0xd1c   :  { %v1293_v63 = vsub.f32 %v1284_v58, %v1292_v62 }
 0xd1e   :  { %v1294_v1 = vmul.f32 1.442695, %v1293_v63 }
 0xd1f   :  { %v1303_v2 = vpop.permute.xlu0 %1302 }
 0xd20   :  { %4333 = vpow2.f32 %v1294_v1  ;;  %v1308_v3 = vsel %vm357_vm3, %v1303_v2, 0 }
 0xd21   :  { %3981 = vmatpush3.bf16.msra.mxu1 %v1308_v3 }
 0xd22   :  { %3992 = vmatprep.subr.bf16.mxu1 %v4391_v0 }
 0xd23   :  { %v1396_v14 = vpop.permute.xlu0 %1395 }
 0xd2d   :  { %v4334_v4 = vpop.eup %4333 }
 0xd2e   :  { %v1296_v5 = vsel %vm341_vm4, %v4334_v4, 0.0 }
 0xd2f   :  { %1297 = vadd.xlane.f32.xlu1 %v1296_v5 }
 0xd40   :  { %1397 = vrot.lane.b32.xlu1 %v4652_v17, %s4400_s22  ;;  %v1552_v17 = vsub.s32 1, %v4537_v29 }
 0xd42   :  { %v1553_v16 = vrot.slane %v4545_v31, %v1552_v17 }
 0xdb8   :  { %v1298_v7 = vpop.xlane.xlu1 %1297 }
 0xdb9   :  { %4335 = vrcp.f32 %v1298_v7 }
 0xdbc   :  { %v1398_v10 = vpop.permute.xlu1 %1397 }
 0xdbd   :  { %v1403_v12 = vsel %vm294_vm2, %v1398_v10, 0  ;;  %v4267_v10 = vld [vmem:[%s5249_s5 + $0x8] sm:$0xff]  }
 0xdc6   :  { %v4336_v8 = vpop.eup %4335 }
 0xdc7   :  { %v1300_v9 = vmul.f32 %v4336_v8, %v4334_v4 }
 0xdc9   :  { %v1301_v11 = vpack.c.bf16 %v1300_v9, %v1300_v9  ;;  %v4265_v9 = vld [vmem:[%s5249_s5 + $0x18] sm:$0xff]  }
 0xdcb   :  { %3983 = vmatmul.mubr.msk.bf16.vlgmr.msra.gmra.mxu1 %vm341_vm4, %v1301_v11  ;;  %v4268_v11 = vld [vmem:[%s5249_s5] sm:$0xff]  }
 0xdcc   :  { %3993 = vmatpush3.bf16.xpose.msra.mxu1 %v1403_v12  ;;  %3994 = vmatprep.mubr.msk.bf16.mxu1 %vm4392_vm0, %v4391_v0  ;;  %v4269_v12 = vld [vmem:[%s5250_s6 + $0x38] sm:$0xff]  }
 0xdcd   :  { %4004 = vmatprep.subr.bf16.mxu1 %v4391_v0 }
 0xdd3   :  { %3995 = vmatmul.mubr.msk.bf16.vlgmr.msra.gmra.mxu1 %vm294_vm2, %v1396_v14  ;;  %v4270_v14 = vld [vmem:[%s5250_s6 + $0x30] sm:$0xff]  }
 0xdd4   :  { %4005 = vmatpush3.bf16.msra.mxu1 %v4669_v35  ;;  %4006 = vmatprep.mubr.msk.bf16.mxu1 %vm4392_vm0, %v4391_v0  ;;  %v1554_v35 = vadd.f32 %v1553_v16, %v4709_v13 }
 0xdd5   :  { %4022 = vmatprep.subr.bf16.mxu1 %v4391_v0 }
 0xdd6   :  { %v1556_v32 = vadd.f32 %v1554_v35, %v4528_v24 }
 0xdd8   :  { %v1558_v31 = vsel %vm242_vm1, %v1556_v32, 0.0 }
 0xe8b   :  { %v1344_v15 = vpop.f32.mrf.mxu1 }
 0xe8c   :  { %v1350_v21 = vpack.c.bf16 %v1344_v15, %v1344_v15  ;;  %v4271_v15 = vld [vmem:[%s5250_s6 + $0x28] sm:$0xff]  }
 0xe8d   :  { %v3984_v22 = vpop.f32.mrf.mxu1 }
 0xe8e   :  { %3989 = vmatmul.mubr.msk.bf16.vlgmr.msra.gmra.mxu0 %vm294_vm2, %v1350_v21  ;;  %v4273_v21 = vld [vmem:[%s5250_s6 + $0x18] sm:$0xff]  }
 0xe8f   :  { %v1347_v23 = vpop.f32.mrf.mxu1  ;;  %4000 = vmatprep.mubr.msk.bf16.mxu0 %vm4392_vm0, %v4391_v0 }
 0xe91   :  { %v3985_v26 = vpop.f32.mrf.mxu1 }
 0xe93   :  { %v1439_v27 = vpop.f32.mrf.mxu1 }
 0xe94   :  { %v1445_v38 = vsel %vm341_vm4, %v1439_v27, -inf }
 0xe95   :  { %1446 = vmax.xlane.f32.xlu1 %v1445_v38  ;;  %v3996_v28 = vpop.f32.mrf.mxu1 }
 0xe97   :  { %v1442_v33 = vpop.f32.mrf.mxu1 }
 0xe99   :  { %1559 = vadd.xlane.f32.xlu1 %v1558_v31  ;;  %v3997_v34 = vpop.f32.mrf.mxu1  ;;  %v4824_v31 = vld [vmem:[%s5247_s7] sm:$0xff] }
 0xf1e   :  { %v1447_v36 = vpop.xlane.xlu1 %1446 }
 0xf1f   :  { %v1448_v37 = vsub.f32 %v1439_v27, %v1447_v36  ;;  %v1593_v36 = vsub.s32 3, %v4537_v29 }
 0xf21   :  { %v1449_v39 = vmul.f32 1.442695, %v1448_v37 }
 0xf23   :  { %4337 = vpow2.f32 %v1449_v39 }
 0xf30   :  { %v4338_v40 = vpop.eup %4337 }
 0xf31   :  { %v1451_v13 = vsel %vm341_vm4, %v4338_v40, 0.0 }
 0xf32   :  { %1452 = vadd.xlane.f32.xlu0 %v1451_v13  ;;  %v1594_v13 = vrot.slane %v4824_v31, %v1593_v36 }
 0xf48   :  { %1457 = vrot.lane.b32.xlu0 %v4692_v49, %s4399_s21 }
 0xf4e   :  { %v1388_v41 = vpop.f32.mrf.mxu0 }
 0xf4f   :  { %v1394_v24 = vadd.f32 %v1388_v41, %v4736_v55  ;;  %v1560_v55 = vpop.xlane.xlu1 %1559 }
 0xf50   :  { %v3990_v42 = vpop.f32.mrf.mxu0  ;;  %v1565_v47 = vmul.f32 0.015625, %v1560_v55 }
 0xf52   :  { %v1391_v43 = vpop.f32.mrf.mxu0  ;;  %v1567_v59 = vsub.f32 %v1556_v32, %v1565_v47  ;;  %v1587_v32 = vsub.s32 2, %v4537_v29  ;;  %v1675_v47 = vsub.s32 5, %v4537_v29 }
 0xf54   :  { %v3991_v44 = vpop.f32.mrf.mxu0  ;;  %v1569_v1 = vmul.f32 %v1567_v59, %v1567_v59  ;;  %v1588_v34 = vrot.slane %v4824_v31, %v1587_v32 }
 0xf55   :  { %v4274_v44 = vld [vmem:[%s5250_s6 + $0x10] sm:$0xff]  }
 0xf56   :  { %v1571_v2 = vsel %vm242_vm1, %v1569_v1, 0.0 }
 0xfbb   :  { %v1453_v45 = vpop.xlane.xlu0 %1452 }
 0xfbc   :  { %4339 = vrcp.f32 %v1453_v45  ;;  %v4275_v45 = vld [vmem:[%s5250_s6 + $0x8] sm:$0xff]  }
 0xfbf   :  { %v1458_v19 = vpop.permute.xlu0 %1457 }
 0xfc0   :  { %v1463_v46 = vsel %vm357_vm3, %v1458_v19, 0  ;;  %v4276_v19 = vld [vmem:[%s5250_s6] sm:$0xff]  }
 0xfc1   :  { %3999 = vmatpush3.bf16.msra.mxu0 %v1463_v46 }
 0xfc2   :  { %4010 = vmatprep.subr.bf16.mxu0 %v4391_v0 }
 0xfc9   :  { %v4340_v48 = vpop.eup %4339 }
 0xfca   :  { %v1455_v50 = vmul.f32 %v4340_v48, %v4338_v40 }
 0xfcc   :  { %v1456_v51 = vpack.c.bf16 %v1455_v50, %v1455_v50 }
 0xfce   :  { %4001 = vmatmul.mubr.msk.bf16.vlgmr.msra.gmra.mxu0 %vm341_vm4, %v1456_v51 }
 0xfcf   :  { %4018 = vmatprep.mubr.msk.bf16.mxu0 %vm4392_vm0, %v4391_v0  ;;  %4011 = vmatpush3.bf16.msra.mxu0 %v4265_v9 }
 0xfd0   :  { %4012 = vmatprep.subr.bf16.mxu0 %v4391_v0 }
0x108e   :  { %v1499_v49 = vpop.f32.mrf.mxu0 }
0x108f   :  { %v1505_v52 = vpack.c.bf16 %v1499_v49, %v1499_v49 }
0x1090   :  { %v4002_v53 = vpop.f32.mrf.mxu0 }
0x1091   :  { %4007 = vmatmul.mubr.msk.bf16.vlgmr.msra.gmra.mxu1 %vm294_vm2, %v1505_v52 }
0x1092   :  { %v1502_v54 = vpop.f32.mrf.mxu0  ;;  %4038 = vmatprep.mubr.msk.bf16.mxu1 %vm4392_vm0, %v4391_v0  ;;  %4023 = vmatpush3.bf16.msra.mxu1 %v4269_v12 }
0x1093   :  { %4024 = vmatprep.subr.bf16.mxu1 %v4391_v0 }
0x1094   :  { %v4003_v20 = vpop.f32.mrf.mxu0 }
0x1096   :  { %4025 = vmatpush3.bf16.msra.mxu1 %v4270_v14  ;;  %v4279_v14 = vld [vmem:[%s5244_s3 + $0x74] ss:$8 sps:$4 sm:$0xff]  }
0x1097   :  { %4026 = vmatprep.subr.bf16.mxu1 %v4391_v0 }
0x109a   :  { %4027 = vmatpush3.bf16.msra.mxu1 %v4271_v15  ;;  %v4277_v15 = vld [vmem:[%s5244_s3 + $0x70] ss:$8 sps:$4 sm:$0xff]  }
0x109b   :  { %4028 = vmatprep.subr.bf16.mxu1 %v4391_v0 }
0x1151   :  { %v1543_v56 = vpop.f32.mrf.mxu1 }
0x1152   :  { %v1549_v57 = vadd.f32 %v1543_v56, %v1394_v24  ;;  %v1676_v56 = vrot.slane %v4824_v31, %v1675_v47 }
0x1153   :  { %v4008_v58 = vpop.f32.mrf.mxu1 }
0x1154   :  { %v1555_v6 = vadd.f32 %v1553_v16, %v1549_v57  ;;  %v4272_v16 = vld [vmem:[%s5250_s6 + $0x20] sm:$0xff]  }
0x1155   :  { %v1546_v60 = vpop.f32.mrf.mxu1  ;;  %4029 = vmatpush3.bf16.msra.mxu1 %v4272_v16  ;;  %v4282_v16 = vld [vmem:[%s5244_s3 + $0x64] ss:$8 sps:$4 sm:$0xff]  }
0x1156   :  { %v1557_v61 = vadd.f32 %v1555_v6, %v4530_v25  ;;  %v4266_v25 = vld [vmem:[%s5249_s5 + $0x10] sm:$0xff]   ;;  %4030 = vmatprep.subr.bf16.mxu1 %v4391_v0 }
0x1157   :  { %v4009_v62 = vpop.f32.mrf.mxu1  ;;  %4013 = vmatpush3.bf16.msra.mxu0 %v4266_v25 }
0x1158   :  { %v1561_v63 = vsel %vm242_vm1, %v1557_v61, 0.0  ;;  %4014 = vmatprep.subr.bf16.mxu0 %v4391_v0 }
0x1159   :  { %1562 = vadd.xlane.f32.xlu1 %v1561_v63  ;;  %4031 = vmatpush3.bf16.msra.mxu1 %v4273_v21  ;;  %v4280_v21 = vld [vmem:[%s5244_s3 + $0x60] ss:$8 sps:$4 sm:$0xff]  }
0x115a   :  { %4032 = vmatprep.subr.bf16.mxu1 %v4391_v0 }
0x115b   :  { %4015 = vmatpush3.bf16.msra.mxu0 %v4267_v10 }
0x115c   :  { %4016 = vmatprep.subr.bf16.mxu0 %v4391_v0 }
0x115d   :  { %1572 = vadd.xlane.f32.xlu1 %v1571_v2  ;;  %4033 = vmatpush3.bf16.msra.mxu1 %v4274_v44 }
0x115e   :  { %4034 = vmatprep.subr.bf16.mxu1 %v4391_v0 }
0x115f   :  { %4017 = vmatpush3.bf16.msra.mxu0 %v4268_v11 }
0x1160   :  { %1913 = vmatprep.subr.bf16.mxu0 %v4279_v14 }
0x1161   :  { %4035 = vmatpush3.bf16.msra.mxu1 %v4275_v45 }
0x1162   :  { %4036 = vmatprep.subr.bf16.mxu1 %v4391_v0 }
0x1165   :  { %4037 = vmatpush3.bf16.msra.mxu1 %v4276_v19 }
0x1166   :  { %4048 = vmatprep.subr.bf16.mxu1 %v4391_v0 }
0x11e2   :  { %v1563_v3 = vpop.xlane.xlu1 %1562 }
0x11e3   :  { %v1566_v4 = vmul.f32 0.015625, %v1563_v3 }
0x11e5   :  { %v1568_v5 = vsub.f32 %v1557_v61, %v1566_v4 }
0x11e6   :  { %v1573_v22 = vpop.xlane.xlu1 %1572 }
0x11e7   :  { %v1570_v7 = vmul.f32 %v1568_v5, %v1568_v5  ;;  %v1577_v23 = vmul.f32 0.015625, %v1573_v22  ;;  %v4285_v22 = vld [vmem:[%s5244_s3 + $0x54] ss:$8 sps:$4 sm:$0xff]  }
0x11e9   :  { %v1574_v8 = vsel %vm242_vm1, %v1570_v7, 0.0  ;;  %v1579_v35 = vadd.f32 1e-05, %v1577_v23  ;;  %v4283_v23 = vld [vmem:[%s5244_s3 + $0x50] ss:$8 sps:$4 sm:$0xff]  }
0x11ea   :  { %1575 = vadd.xlane.f32.xlu1 %v1574_v8 }
0x11eb   :  { %4341 = vrsqrt.f32 %v1579_v35  ;;  %v4288_v35 = vld [vmem:[%s5244_s3 + $0x44] ss:$8 sps:$4 sm:$0xff]  }
0x11f8   :  { %v4342_v28 = vpop.eup %4341 }
0x11f9   :  { %v1583_v33 = vmul.f32 %v4342_v28, %v1567_v59 }
0x11fb   :  { %v1589_v40 = vmul.f32 %v1588_v34, %v1583_v33 }
0x11fd   :  { %v1595_v24 = vadd.f32 %v1594_v13, %v1589_v40 }
0x1273   :  { %v1576_v26 = vpop.xlane.xlu1 %1575 }
0x1274   :  { %v1578_v27 = vmul.f32 0.015625, %v1576_v26  ;;  %v4286_v26 = vld [vmem:[%s5244_s3 + $0x40] ss:$8 sps:$4 sm:$0xff]  }
0x1276   :  { %v1580_v38 = vadd.f32 1e-05, %v1578_v27 }
0x1278   :  { %4343 = vrsqrt.f32 %v1580_v38 }
0x1285   :  { %v4344_v37 = vpop.eup %4343 }
0x1286   :  { %v1584_v39 = vmul.f32 %v4344_v37, %v1568_v5 }
0x1288   :  { %v1590_v41 = vmul.f32 %v1588_v34, %v1584_v39  ;;  %v1796_v39 = vsub.s32 6, %v4537_v29 }
0x128a   :  { %v1596_v42 = vadd.f32 %v1594_v13, %v1590_v41  ;;  %v1797_v41 = vrot.slane %v4824_v31, %v1796_v39 }
0x128c   :  { %v1597_v43 = vpack.c.bf16 %v1596_v42, %v1595_v24 }
0x128e   :  { %4019 = vmatmul.mubr.msk.bf16.vlgmr.msra.gmra.mxu0 %vm242_vm1, %v1597_v43 }
0x128f   :  { %1937 = vmatprep.mubr.bf16.mxu0 %v4393_v18  ;;  %v1600_v18 = vsub.s32 4, %v4537_v29  ;;  %1914 = vmatpush1.bf16.msra.mxu0 %v4277_v15 }
0x1290   :  { %1915 = vmatprep.subr.bf16.mxu0 %v4282_v16 }
0x1291   :  { %v1601_v46 = vrot.slane %v4824_v31, %v1600_v18 }
0x1293   :  { %1916 = vmatpush1.bf16.msra.mxu0 %v4280_v21 }
0x1294   :  { %1917 = vmatprep.subr.bf16.mxu0 %v4285_v22 }
0x1297   :  { %1918 = vmatpush1.bf16.msra.mxu0 %v4283_v23 }
0x1298   :  { %1919 = vmatprep.subr.bf16.mxu0 %v4288_v35 }
0x129b   :  { %1920 = vmatpush1.bf16.msra.mxu0 %v4286_v26 }
0x129c   :  { %4042 = vmatprep.subr.bf16.mxu0 %v4391_v0 }
0x134e   :  { %v1663_v48 = vpop.f32.mrf.mxu0 }
0x134f   :  { %v1664_v51 = vadd.f32 %v1663_v48, %v1601_v46 }
0x1350   :  { %v4020_v50 = vpop.f32.mrf.mxu0 }
0x1351   :  { %v1670_v54 = vmax.f32 %v1664_v51, 0.0  ;;  %v4906_v51 = vld [vmem:[%s5247_s7 + $0x10] sm:$0xff] }
0x1352   :  { %v1666_v49 = vpop.f32.mrf.mxu0 }
0x1353   :  { %v1667_v52 = vadd.f32 %v1666_v49, %v1601_v46 }
0x1354   :  { %v4021_v53 = vpop.f32.mrf.mxu0 }
0x1355   :  { %v1671_v20 = vmax.f32 %v1667_v52, 0.0  ;;  %v1857_v52 = vrot.slane %v4906_v51, %v4540_v30 }
0x1357   :  { %v1672_v55 = vpack.c.bf16 %v1671_v20, %v1670_v54 }
0x1359   :  { %4039 = vmatmul.mubr.bf16.vlgmr.msra.gmra.mxu1 %v1672_v55 }
0x135a   :  { %4050 = vmatprep.mubr.msk.bf16.mxu1 %vm4392_vm0, %v4391_v0 }
0x1419   :  { %v1759_v57 = vpop.f32.mrf.mxu1 }
0x141a   :  { %v1760_v58 = vadd.f32 %v1759_v57, %v1676_v56 }
0x141b   :  { %v4040_v59 = vpop.f32.mrf.mxu1 }
0x141c   :  { %v1766_v6 = vadd.f32 %v1760_v58, %v1595_v24  ;;  %v1802_v24 = vsub.s32 7, %v4537_v29 }
0x141d   :  { %v1762_v60 = vpop.f32.mrf.mxu1 }
0x141e   :  { %v1763_v61 = vadd.f32 %v1762_v60, %v1676_v56  ;;  %v1768_v62 = vsel %vm242_vm1, %v1766_v6, 0.0  ;;  %v1803_v45 = vrot.slane %v4824_v31, %v1802_v24  ;;  %v3651_v31 = vld [vmem:[%s5247_s7 + $0x18] sm:$0xff] }
0x141f   :  { %1769 = vadd.xlane.f32.xlu1 %v1768_v62  ;;  %v4041_v63 = vpop.f32.mrf.mxu1  ;;  %v1861_v54 = vrot.slane %v3651_v31, %v4540_v30 }
0x1420   :  { %v1767_v1 = vadd.f32 %v1763_v61, %v1596_v42 }
0x1422   :  { %v1771_v2 = vsel %vm242_vm1, %v1767_v1, 0.0 }
0x1423   :  { %1772 = vadd.xlane.f32.xlu1 %v1771_v2 }
0x14a8   :  { %v1770_v3 = vpop.xlane.xlu1 %1769 }
0x14a9   :  { %v1774_v4 = vmul.f32 0.015625, %v1770_v3 }
0x14ab   :  { %v1776_v5 = vsub.f32 %v1766_v6, %v1774_v4 }
0x14ac   :  { %v1773_v7 = vpop.xlane.xlu1 %1772 }
0x14ad   :  { %v1775_v8 = vmul.f32 0.015625, %v1773_v7  ;;  %v1778_v9 = vmul.f32 %v1776_v5, %v1776_v5 }
0x14af   :  { %v1777_v25 = vsub.f32 %v1767_v1, %v1775_v8  ;;  %v1780_v10 = vsel %vm242_vm1, %v1778_v9, 0.0 }
0x14b0   :  { %1781 = vadd.xlane.f32.xlu0 %v1780_v10 }
0x14b1   :  { %v1779_v11 = vmul.f32 %v1777_v25, %v1777_v25 }
0x14b3   :  { %v1783_v12 = vsel %vm242_vm1, %v1779_v11, 0.0 }
0x14b4   :  { %1784 = vadd.xlane.f32.xlu1 %v1783_v12 }
0x1539   :  { %v1782_v27 = vpop.xlane.xlu0 %1781 }
0x153a   :  { %v1786_v38 = vmul.f32 0.015625, %v1782_v27 }
0x153c   :  { %v1788_v28 = vadd.f32 1e-05, %v1786_v38 }
0x153d   :  { %v1785_v33 = vpop.xlane.xlu1 %1784 }
0x153e   :  { %4345 = vrsqrt.f32 %v1788_v28  ;;  %v1787_v34 = vmul.f32 0.015625, %v1785_v33 }
0x1540   :  { %v1789_v37 = vadd.f32 1e-05, %v1787_v34 }
0x1542   :  { %4347 = vrsqrt.f32 %v1789_v37 }
0x154b   :  { %v4346_v40 = vpop.eup %4345 }
0x154c   :  { %v1792_v13 = vmul.f32 %v4346_v40, %v1776_v5 }
0x154e   :  { %v1798_v44 = vmul.f32 %v1797_v41, %v1792_v13 }
0x154f   :  { %v4348_v42 = vpop.eup %4347 }
0x1550   :  { %v1793_v43 = vmul.f32 %v4348_v42, %v1777_v25  ;;  %v4894_v46 = vadd.f32 %v1803_v45, %v1798_v44 }
0x1552   :  { %v1799_v19 = vmul.f32 %v1797_v41, %v1793_v43 }
0x1554   :  { %v4896_v48 = vadd.f32 %v1803_v45, %v1799_v19  ;;  %v4959_v45 = vld [vmem:[%s5248_s4 + $0x20] sm:$0xff]   ;;  %v4966_v19 = vld [vmem:[%s5248_s4 + $0x28] sm:$0xff]  }
0x1556   :  { %v1853_v50 = vpack.c.bf16 %v4896_v48, %v4894_v46 }
0x1558   :  { %3660 = vmatmul.mubr.msk.bf16.vlgmr.msra.gmra.mxu0 %vm242_vm1, %v1853_v50 }
0x1559   :  { %4044 = vmatprep.mubr.msk.bf16.mxu0 %vm4392_vm0, %v4391_v0 }
0x1618   :  { %v1939_v49 = vpop.f32.mrf.mxu0 }
0x1619   :  { %v1940_v55 = vadd.f32 %v1939_v49, %v1857_v52 }
0x161a   :  { %v1941_v53 = vpop.f32.mrf.mxu0 }
0x161b   :  { %v1942_v58 = vadd.f32 %v1941_v53, %v1861_v54 }
0x161c   :  { %v1943_v20 = vpop.f32.mrf.mxu0 }
0x161d   :  { %v1944_v56 = vadd.f32 %v1943_v20, %v1857_v52 }
0x161e   :  { %v1945_v57 = vpop.f32.mrf.mxu0 }
0x161f   :  { %v4914_v59 = vpack.c.bf16 %v1944_v56, %v1940_v55  ;;  %v1946_v6 = vadd.f32 %v1945_v57, %v1861_v54 }
0x1621   :  { %v4916_v60 = vpack.c.bf16 %v1946_v6, %v1942_v58  ;;  %1951 = vrot.lane.b32.xlu1 %v4914_v59, %s4395_s11 }
0x1623   :  { %v2015_v61 = vsel %vm357_vm3, %v4916_v60, 0 }
0x1624   :  { %4049 = vmatpush3.bf16.msra.mxu1 %v2015_v61 }
0x1625   :  { %2060 = vrot.lane.b32.xlu1 %v4914_v59, %s4396_s12  ;;  %4060 = vmatprep.subr.bf16.mxu1 %v4391_v0 }
0x1629   :  { %2058 = vrot.lane.b32.xlu1 %v4914_v59, %s4394_s30 }
0x1693   :  { %v1952_v30 = vpop.permute.xlu1 %1951 }
0x1694   :  { %v1957_v62 = vsel %vm294_vm2, %v1952_v30, 0 }
0x1695   :  { %4043 = vmatpush3.bf16.xpose.msra.mxu0 %v1957_v62 }
0x1696   :  { %4054 = vmatprep.subr.bf16.mxu0 %v4391_v0 }
0x1697   :  { %v2061_v63 = vpop.permute.xlu1 %2060 }
0x1698   :  { %v2066_v1 = vsel %vm294_vm2, %v2061_v63, 0 }
0x169b   :  { %v2059_v2 = vpop.permute.xlu1 %2058 }
0x169c   :  { %4045 = vmatmul.mubr.msk.bf16.vlgmr.msra.gmra.mxu0 %vm294_vm2, %v4914_v59 }
0x169d   :  { %4055 = vmatpush3.bf16.xpose.msra.mxu0 %v2066_v1  ;;  %4056 = vmatprep.mubr.msk.bf16.mxu0 %vm4392_vm0, %v4391_v0 }
0x169e   :  { %4066 = vmatprep.subr.bf16.mxu0 %v4391_v0 }
0x16a4   :  { %4057 = vmatmul.mubr.msk.bf16.vlgmr.msra.gmra.mxu0 %vm294_vm2, %v2059_v2 }
0x16a5   :  { %4068 = vmatprep.mubr.msk.bf16.mxu0 %vm4392_vm0, %v4391_v0  ;;  %4067 = vmatpush3.bf16.msra.mxu0 %v4966_v19 }
0x16a6   :  { %4078 = vmatprep.subr.bf16.mxu0 %v4391_v0 }
0x175c   :  { %v1993_v3 = vpop.f32.mrf.mxu0 }
0x175d   :  { %v1999_v4 = vsel %vm341_vm4, %v1993_v3, -inf }
0x175e   :  { %2000 = vmax.xlane.f32.xlu0 %v1999_v4  ;;  %v4046_v5 = vpop.f32.mrf.mxu0 }
0x1760   :  { %v1996_v7 = vpop.f32.mrf.mxu0 }
0x1762   :  { %v4047_v8 = vpop.f32.mrf.mxu0 }
0x1764   :  { %v2102_v9 = vpop.f32.mrf.mxu0 }
0x1765   :  { %v2108_v25 = vsel %vm341_vm4, %v2102_v9, -inf }
0x1766   :  { %2109 = vmax.xlane.f32.xlu1 %v2108_v25  ;;  %v4058_v10 = vpop.f32.mrf.mxu0 }
0x1768   :  { %v2105_v11 = vpop.f32.mrf.mxu0 }
0x176a   :  { %v4059_v12 = vpop.f32.mrf.mxu0 }
0x1777   :  { %2268 = vrot.lane.b32.xlu1 %v4914_v59, %s4398_s16 }
0x17e7   :  { %v2001_v14 = vpop.xlane.xlu0 %2000 }
0x17e8   :  { %v2002_v15 = vsub.f32 %v1993_v3, %v2001_v14 }
0x17ea   :  { %v2003_v16 = vmul.f32 1.442695, %v2002_v15 }
0x17ec   :  { %4349 = vpow2.f32 %v2003_v16 }
0x17ef   :  { %v2110_v21 = vpop.xlane.xlu1 %2109 }
0x17f0   :  { %v2111_v22 = vsub.f32 %v2102_v9, %v2110_v21 }
0x17f2   :  { %v2112_v23 = vmul.f32 1.442695, %v2111_v22 }
0x17f3   :  { %v2269_v61 = vpop.permute.xlu1 %2268 }
0x17f4   :  { %4351 = vpow2.f32 %v2112_v23 }
0x17f9   :  { %v4350_v35 = vpop.eup %4349 }
0x17fa   :  { %v2005_v26 = vsel %vm341_vm4, %v4350_v35, 0.0 }
0x17fb   :  { %2006 = vadd.xlane.f32.xlu0 %v2005_v26 }
0x1801   :  { %v4352_v27 = vpop.eup %4351 }
0x1802   :  { %v2114_v38 = vsel %vm341_vm4, %v4352_v27, 0.0 }
0x1803   :  { %2115 = vadd.xlane.f32.xlu0 %v2114_v38 }
0x1819   :  { %2121 = vrot.lane.b32.xlu0 %v4916_v60, %s4394_s30 }
0x181d   :  { %2270 = vrot.lane.b32.xlu0 %v4914_v59, %s4397_s15 }
0x1884   :  { %v2007_v28 = vpop.xlane.xlu0 %2006 }
0x1885   :  { %4353 = vrcp.f32 %v2007_v28 }
0x188c   :  { %v2116_v33 = vpop.xlane.xlu0 %2115 }
0x188d   :  { %4355 = vrcp.f32 %v2116_v33 }
0x1890   :  { %v2122_v40 = vpop.permute.xlu0 %2121 }
0x1891   :  { %v2127_v41 = vsel %vm357_vm3, %v2122_v40, 0 }
0x1892   :  { %v4354_v34 = vpop.eup %4353 }
0x1893   :  { %v2009_v37 = vmul.f32 %v4354_v34, %v4350_v35 }
0x1894   :  { %v2271_v54 = vpop.permute.xlu0 %2270 }
0x1895   :  { %v2010_v13 = vpack.c.bf16 %v2009_v37, %v2009_v37  ;;  %v2276_v57 = vsel %vm294_vm2, %v2271_v54, 0  ;;  %v5004_v37 = vld [vmem:[%s5248_s4 + $0x30] sm:$0xff]  }
0x1897   :  { %4051 = vmatmul.mubr.msk.bf16.vlgmr.msra.gmra.mxu1 %vm341_vm4, %v2010_v13 }
0x1898   :  { %4061 = vmatpush3.bf16.msra.mxu1 %v2127_v41  ;;  %4062 = vmatprep.mubr.msk.bf16.mxu1 %vm4392_vm0, %v4391_v0 }
0x1899   :  { %4072 = vmatprep.subr.bf16.mxu1 %v4391_v0 }
0x189a   :  { %v4356_v42 = vpop.eup %4355 }
0x189b   :  { %v2118_v43 = vmul.f32 %v4356_v42, %v4352_v27 }
0x189d   :  { %v2119_v44 = vpack.c.bf16 %v2118_v43, %v2118_v43 }
0x189f   :  { %4063 = vmatmul.mubr.msk.bf16.vlgmr.msra.gmra.mxu1 %vm341_vm4, %v2119_v44 }
0x18a0   :  { %4074 = vmatprep.mubr.msk.bf16.mxu1 %vm4392_vm0, %v4391_v0  ;;  %4073 = vmatpush3.bf16.msra.mxu1 %v4959_v45 }
0x18a1   :  { %4084 = vmatprep.subr.bf16.mxu1 %v4391_v0 }
0x1957   :  { %v2051_v50 = vpop.f32.mrf.mxu1 }
0x1958   :  { %v2057_v49 = vpack.c.bf16 %v2051_v50, %v2051_v50 }
0x1959   :  { %v4052_v31 = vpop.f32.mrf.mxu1 }
0x195a   :  { %4075 = vmatmul.mubr.msk.bf16.vlgmr.msra.gmra.mxu1 %vm294_vm2, %v2057_v49 }
0x195b   :  { %v2054_v52 = vpop.f32.mrf.mxu1  ;;  %4086 = vmatprep.mubr.msk.bf16.mxu1 %vm4392_vm0, %v4391_v0 }
0x195d   :  { %v4053_v53 = vpop.f32.mrf.mxu1 }
0x195e   :  { %v5015_v53 = vrot.slane %v4914_v59, 4 }
0x195f   :  { %v2163_v20 = vpop.f32.mrf.mxu1 }
0x1960   :  { %v2169_v55 = vpack.c.bf16 %v2163_v20, %v2163_v20 }
0x1961   :  { %v4064_v56 = vpop.f32.mrf.mxu1 }
0x1962   :  { %4069 = vmatmul.mubr.msk.bf16.vlgmr.msra.gmra.mxu0 %vm294_vm2, %v2169_v55 }
0x1963   :  { %4079 = vmatpush3.bf16.xpose.msra.mxu0 %v2276_v57  ;;  %v2166_v58 = vpop.f32.mrf.mxu1  ;;  %4080 = vmatprep.mubr.msk.bf16.mxu0 %vm4392_vm0, %v4391_v0 }
0x1964   :  { %4090 = vmatprep.subr.bf16.mxu0 %v4391_v0 }
0x1965   :  { %v4065_v6 = vpop.f32.mrf.mxu1 }
0x196a   :  { %4081 = vmatmul.mubr.msk.bf16.vlgmr.msra.gmra.mxu0 %vm294_vm2, %v2269_v61 }
0x196b   :  { %4092 = vmatprep.mubr.msk.bf16.mxu0 %vm4392_vm0, %v4391_v0  ;;  %4091 = vmatpush3.bf16.msra.mxu0 %v5004_v37 }
0x196c   :  { %4102 = vmatprep.subr.bf16.mxu0 %v4391_v0 }
0x1a1a   :  { %v2262_v30 = vpop.f32.mrf.mxu1 }
0x1a1c   :  { %v4076_v62 = vpop.f32.mrf.mxu1 }
0x1a1e   :  { %v2265_v63 = vpop.f32.mrf.mxu1 }
0x1a20   :  { %v4077_v1 = vpop.f32.mrf.mxu1 }
0x1a21   :  { %v5032_v1 = vld [vmem:[%s5248_s4 + $0x38] sm:$0xff]  }
0x1a22   :  { %v2213_v2 = vpop.f32.mrf.mxu0 }
0x1a23   :  { %v4981_v3 = vadd.f32 %v2262_v30, %v2213_v2 }
0x1a24   :  { %v4070_v4 = vpop.f32.mrf.mxu0 }
0x1a26   :  { %v2216_v5 = vpop.f32.mrf.mxu0 }
0x1a28   :  { %v4071_v7 = vpop.f32.mrf.mxu0 }
0x1a2a   :  { %v2312_v8 = vpop.f32.mrf.mxu0 }
0x1a2b   :  { %v2318_v9 = vsel %vm341_vm4, %v2312_v8, -inf }
0x1a2c   :  { %2319 = vmax.xlane.f32.xlu0 %v2318_v9  ;;  %v4082_v25 = vpop.f32.mrf.mxu0 }
0x1a2e   :  { %v2315_v10 = vpop.f32.mrf.mxu0 }
0x1a30   :  { %v4083_v11 = vpop.f32.mrf.mxu0 }
0x1a31   :  { %v5053_v11 = vrot.slane %v4916_v60, 4 }
0x1a42   :  { %2330 = vrot.lane.b32.xlu0 %v4916_v60, %s4398_s16 }
0x1a46   :  { %2429 = vrot.lane.b32.xlu0 %v4914_v59, %s4399_s21 }
0x1ab5   :  { %v2320_v12 = vpop.xlane.xlu0 %2319 }
0x1ab6   :  { %v2321_v14 = vsub.f32 %v2312_v8, %v2320_v12 }
0x1ab8   :  { %v2322_v15 = vmul.f32 1.442695, %v2321_v14 }
0x1ab9   :  { %v2331_v16 = vpop.permute.xlu0 %2330 }
0x1aba   :  { %4357 = vpow2.f32 %v2322_v15  ;;  %v2336_v21 = vsel %vm357_vm3, %v2331_v16, 0  ;;  %v2656_v16 = vsel %vm357_vm3, %v5053_v11, 0 }
0x1abb   :  { %4085 = vmatpush3.bf16.msra.mxu1 %v2336_v21 }
0x1abc   :  { %4096 = vmatprep.subr.bf16.mxu1 %v4391_v0 }
0x1abd   :  { %v2430_v34 = vpop.permute.xlu0 %2429 }
0x1ac7   :  { %v4358_v22 = vpop.eup %4357 }
0x1ac8   :  { %v2324_v23 = vsel %vm341_vm4, %v4358_v22, 0.0 }
0x1ac9   :  { %2325 = vadd.xlane.f32.xlu1 %v2324_v23 }
0x1ada   :  { %2431 = vrot.lane.b32.xlu1 %v4914_v59, %s4400_s22 }
0x1b52   :  { %v2326_v35 = vpop.xlane.xlu1 %2325 }
0x1b53   :  { %4359 = vrcp.f32 %v2326_v35 }
0x1b56   :  { %v2432_v38 = vpop.permute.xlu1 %2431 }
0x1b57   :  { %v2437_v33 = vsel %vm294_vm2, %v2432_v38, 0 }
0x1b60   :  { %v4360_v26 = vpop.eup %4359 }
0x1b61   :  { %v2328_v27 = vmul.f32 %v4360_v26, %v4358_v22 }
0x1b63   :  { %v2329_v28 = vpack.c.bf16 %v2328_v27, %v2328_v27 }
0x1b65   :  { %4087 = vmatmul.mubr.msk.bf16.vlgmr.msra.gmra.mxu1 %vm341_vm4, %v2329_v28 }
0x1b66   :  { %4097 = vmatpush3.bf16.xpose.msra.mxu1 %v2437_v33  ;;  %4098 = vmatprep.mubr.msk.bf16.mxu1 %vm4392_vm0, %v4391_v0 }
0x1b67   :  { %4108 = vmatprep.subr.bf16.mxu1 %v4391_v0 }
0x1b6d   :  { %4099 = vmatmul.mubr.msk.bf16.vlgmr.msra.gmra.mxu1 %vm294_vm2, %v2430_v34 }
0x1b6e   :  { %4110 = vmatprep.mubr.msk.bf16.mxu1 %vm4392_vm0, %v4391_v0  ;;  %4109 = vmatpush3.bf16.msra.mxu1 %v5032_v1 }
0x1b6f   :  { %4120 = vmatprep.subr.bf16.mxu1 %v4391_v0 }
0x1c25   :  { %v2372_v40 = vpop.f32.mrf.mxu1 }
0x1c26   :  { %v2378_v13 = vpack.c.bf16 %v2372_v40, %v2372_v40 }
0x1c27   :  { %v4088_v41 = vpop.f32.mrf.mxu1 }
0x1c28   :  { %4093 = vmatmul.mubr.msk.bf16.vlgmr.msra.gmra.mxu0 %vm294_vm2, %v2378_v13 }
0x1c29   :  { %v2375_v42 = vpop.f32.mrf.mxu1  ;;  %4104 = vmatprep.mubr.msk.bf16.mxu0 %vm4392_vm0, %v4391_v0 }
0x1c2b   :  { %v4089_v43 = vpop.f32.mrf.mxu1 }
0x1c2d   :  { %v2473_v44 = vpop.f32.mrf.mxu1 }
0x1c2e   :  { %v2479_v50 = vsel %vm341_vm4, %v2473_v44, -inf }
0x1c2f   :  { %2480 = vmax.xlane.f32.xlu0 %v2479_v50  ;;  %v4100_v49 = vpop.f32.mrf.mxu1 }
0x1c31   :  { %v2476_v31 = vpop.f32.mrf.mxu1 }
0x1c33   :  { %v4101_v52 = vpop.f32.mrf.mxu1 }
0x1c45   :  { %2491 = vrot.lane.b32.xlu0 %v4916_v60, %s4399_s21 }
0x1c49   :  { %2701 = vrot.lane.b32.xlu0 %v5015_v53, %s4396_s12 }
0x1c4d   :  { %2699 = vrot.lane.b32.xlu0 %v5015_v53, %s4394_s30 }
0x1cb8   :  { %v2481_v54 = vpop.xlane.xlu0 %2480 }
0x1cb9   :  { %v2482_v20 = vsub.f32 %v2473_v44, %v2481_v54 }
0x1cbb   :  { %v2483_v55 = vmul.f32 1.442695, %v2482_v20 }
0x1cbc   :  { %v2492_v56 = vpop.permute.xlu0 %2491 }
0x1cbd   :  { %4361 = vpow2.f32 %v2483_v55  ;;  %v2497_v57 = vsel %vm357_vm3, %v2492_v56, 0 }
0x1cbe   :  { %4103 = vmatpush3.bf16.msra.mxu0 %v2497_v57 }
0x1cbf   :  { %4114 = vmatprep.subr.bf16.mxu0 %v4391_v0 }
0x1cc0   :  { %v2702_v9 = vpop.permute.xlu0 %2701 }
0x1cc1   :  { %v2707_v25 = vsel %vm294_vm2, %v2702_v9, 0 }
0x1cc4   :  { %v2700_v10 = vpop.permute.xlu0 %2699 }
0x1cca   :  { %v4362_v58 = vpop.eup %4361 }
0x1ccb   :  { %v2485_v59 = vsel %vm341_vm4, %v4362_v58, 0.0 }
0x1ccc   :  { %2486 = vadd.xlane.f32.xlu1 %v2485_v59 }
0x1cdd   :  { %2591 = vrot.lane.b32.xlu1 %v5015_v53, %s4395_s11 }
0x1ce8   :  { %v2422_v6 = vpop.f32.mrf.mxu0 }
0x1ce9   :  { %v5027_v61 = vadd.f32 %v2422_v6, %v4981_v3 }
0x1cea   :  { %v4094_v30 = vpop.f32.mrf.mxu0 }
0x1cec   :  { %v2425_v62 = vpop.f32.mrf.mxu0 }
0x1cee   :  { %v4095_v63 = vpop.f32.mrf.mxu0 }
0x1d55   :  { %v2487_v2 = vpop.xlane.xlu1 %2486 }
0x1d56   :  { %4363 = vrcp.f32 %v2487_v2 }
0x1d59   :  { %v2592_v7 = vpop.permute.xlu1 %2591 }
0x1d5a   :  { %v2597_v3 = vsel %vm294_vm2, %v2592_v7, 0 }
0x1d63   :  { %v4364_v4 = vpop.eup %4363 }
0x1d64   :  { %v2489_v5 = vmul.f32 %v4364_v4, %v4362_v58 }
0x1d66   :  { %v2490_v8 = vpack.c.bf16 %v2489_v5, %v2489_v5 }
0x1d68   :  { %4105 = vmatmul.mubr.msk.bf16.vlgmr.msra.gmra.mxu0 %vm341_vm4, %v2490_v8 }
0x1d69   :  { %4115 = vmatpush3.bf16.xpose.msra.mxu0 %v2597_v3  ;;  %4116 = vmatprep.mubr.msk.bf16.mxu0 %vm4392_vm0, %v4391_v0 }
0x1d6a   :  { %4126 = vmatprep.subr.bf16.mxu0 %v4391_v0 }
0x1d70   :  { %4117 = vmatmul.mubr.msk.bf16.vlgmr.msra.gmra.mxu0 %vm294_vm2, %v5015_v53 }
0x1d71   :  { %4127 = vmatpush3.bf16.xpose.msra.mxu0 %v2707_v25  ;;  %4128 = vmatprep.mubr.msk.bf16.mxu0 %vm4392_vm0, %v4391_v0 }
0x1d72   :  { %4138 = vmatprep.subr.bf16.mxu0 %v4391_v0 }
0x1d78   :  { %4129 = vmatmul.mubr.msk.bf16.vlgmr.msra.gmra.mxu0 %vm294_vm2, %v2700_v10 }
0x1d79   :  { %4139 = vmatpush3.bf16.msra.mxu0 %v4966_v19  ;;  %4140 = vmatprep.mubr.msk.bf16.mxu0 %vm4392_vm0, %v4391_v0 }
0x1d7a   :  { %4150 = vmatprep.subr.bf16.mxu0 %v4391_v0 }
0x1e28   :  { %v2533_v12 = vpop.f32.mrf.mxu0 }
0x1e29   :  { %v2539_v14 = vpack.c.bf16 %v2533_v12, %v2533_v12 }
0x1e2a   :  { %v4106_v15 = vpop.f32.mrf.mxu0 }
0x1e2b   :  { %4111 = vmatmul.mubr.msk.bf16.vlgmr.msra.gmra.mxu1 %vm294_vm2, %v2539_v14 }
0x1e2c   :  { %4121 = vmatpush3.bf16.msra.mxu1 %v2656_v16  ;;  %v2536_v21 = vpop.f32.mrf.mxu0  ;;  %4122 = vmatprep.mubr.msk.bf16.mxu1 %vm4392_vm0, %v4391_v0 }
0x1e2d   :  { %4132 = vmatprep.subr.bf16.mxu1 %v4391_v0 }
0x1e2e   :  { %v4107_v19 = vpop.f32.mrf.mxu0 }
0x1e30   :  { %v2633_v22 = vpop.f32.mrf.mxu0 }
0x1e31   :  { %v2639_v60 = vsel %vm341_vm4, %v2633_v22, -inf }
0x1e32   :  { %2640 = vmax.xlane.f32.xlu0 %v2639_v60  ;;  %v4118_v23 = vpop.f32.mrf.mxu0 }
0x1e34   :  { %v2636_v35 = vpop.f32.mrf.mxu0 }
0x1e36   :  { %v4119_v26 = vpop.f32.mrf.mxu0 }
0x1e38   :  { %v2743_v27 = vpop.f32.mrf.mxu0 }
0x1e39   :  { %v2749_v38 = vsel %vm341_vm4, %v2743_v27, -inf }
0x1e3a   :  { %2750 = vmax.xlane.f32.xlu1 %v2749_v38  ;;  %v4130_v28 = vpop.f32.mrf.mxu0 }
0x1e3c   :  { %v2746_v33 = vpop.f32.mrf.mxu0 }
0x1e3e   :  { %v4131_v34 = vpop.f32.mrf.mxu0 }
0x1e4b   :  { %2898 = vrot.lane.b32.xlu1 %v5015_v53, %s4397_s15 }
0x1e4f   :  { %2896 = vrot.lane.b32.xlu1 %v5015_v53, %s4398_s16 }
0x1ebb   :  { %v2641_v40 = vpop.xlane.xlu0 %2640 }
0x1ebc   :  { %v2642_v13 = vsub.f32 %v2633_v22, %v2641_v40 }
0x1ebe   :  { %v2643_v41 = vmul.f32 1.442695, %v2642_v13 }
0x1ec0   :  { %4365 = vpow2.f32 %v2643_v41 }
0x1ec3   :  { %v2751_v42 = vpop.xlane.xlu1 %2750 }
0x1ec4   :  { %v2752_v43 = vsub.f32 %v2743_v27, %v2751_v42 }
0x1ec6   :  { %v2753_v44 = vmul.f32 1.442695, %v2752_v43 }
0x1ec7   :  { %v2899_v10 = vpop.permute.xlu1 %2898 }
0x1ec8   :  { %4367 = vpow2.f32 %v2753_v44 }
0x1ecb   :  { %v2897_v19 = vpop.permute.xlu1 %2896 }
0x1ecd   :  { %v4366_v50 = vpop.eup %4365 }
0x1ece   :  { %v2645_v49 = vsel %vm341_vm4, %v4366_v50, 0.0 }
0x1ecf   :  { %2646 = vadd.xlane.f32.xlu0 %v2645_v49 }
0x1ed5   :  { %v4368_v31 = vpop.eup %4367 }
0x1ed6   :  { %v2755_v52 = vsel %vm341_vm4, %v4368_v31, 0.0 }
0x1ed7   :  { %2756 = vadd.xlane.f32.xlu0 %v2755_v52 }
0x1eeb   :  { %v2583_v54 = vpop.f32.mrf.mxu1 }
0x1eec   :  { %v5070_v20 = vadd.f32 %v2583_v54, %v5027_v61 }
0x1eed   :  { %v4112_v55 = vpop.f32.mrf.mxu1  ;;  %2761 = vrot.lane.b32.xlu0 %v5053_v11, %s4394_s30 }
0x1eef   :  { %v2586_v56 = vpop.f32.mrf.mxu1 }
0x1ef1   :  { %v4113_v57 = vpop.f32.mrf.mxu1 }
0x1f58   :  { %v2647_v58 = vpop.xlane.xlu0 %2646 }
0x1f59   :  { %4369 = vrcp.f32 %v2647_v58 }
0x1f60   :  { %v2757_v59 = vpop.xlane.xlu0 %2756 }
0x1f61   :  { %4371 = vrcp.f32 %v2757_v59 }
0x1f64   :  { %v2762_v62 = vpop.permute.xlu0 %2761 }
0x1f65   :  { %v2767_v2 = vsel %vm357_vm3, %v2762_v62, 0 }
0x1f66   :  { %v4370_v6 = vpop.eup %4369 }
0x1f67   :  { %v2649_v30 = vmul.f32 %v4370_v6, %v4366_v50 }
0x1f69   :  { %v2650_v63 = vpack.c.bf16 %v2649_v30, %v2649_v30  ;;  %v3209_v30 = vrot.slane %v4906_v51, %v1552_v17 }
0x1f6b   :  { %4123 = vmatmul.mubr.msk.bf16.vlgmr.msra.gmra.mxu1 %vm341_vm4, %v2650_v63 }
0x1f6c   :  { %4133 = vmatpush3.bf16.msra.mxu1 %v2767_v2  ;;  %4134 = vmatprep.mubr.msk.bf16.mxu1 %vm4392_vm0, %v4391_v0 }
0x1f6d   :  { %4144 = vmatprep.subr.bf16.mxu1 %v4391_v0 }
0x1f6e   :  { %v4372_v61 = vpop.eup %4371 }
0x1f6f   :  { %v2759_v4 = vmul.f32 %v4372_v61, %v4368_v31 }
0x1f71   :  { %v2760_v5 = vpack.c.bf16 %v2759_v4, %v2759_v4 }
0x1f73   :  { %4135 = vmatmul.mubr.msk.bf16.vlgmr.msra.gmra.mxu1 %vm341_vm4, %v2760_v5 }
0x1f74   :  { %4145 = vmatpush3.bf16.msra.mxu1 %v4959_v45  ;;  %4146 = vmatprep.mubr.msk.bf16.mxu1 %vm4392_vm0, %v4391_v0  ;;  %v2904_v45 = vsel %vm294_vm2, %v2899_v10, 0 }
0x1f75   :  { %4156 = vmatprep.subr.bf16.mxu1 %v4391_v0 }
0x202b   :  { %v2692_v7 = vpop.f32.mrf.mxu1 }
0x202c   :  { %v2698_v8 = vpack.c.bf16 %v2692_v7, %v2692_v7 }
0x202d   :  { %v4124_v3 = vpop.f32.mrf.mxu1 }
0x202e   :  { %4147 = vmatmul.mubr.msk.bf16.vlgmr.msra.gmra.mxu1 %vm294_vm2, %v2698_v8 }
0x202f   :  { %v2695_v9 = vpop.f32.mrf.mxu1  ;;  %4158 = vmatprep.mubr.msk.bf16.mxu1 %vm4392_vm0, %v4391_v0 }
0x2031   :  { %v4125_v25 = vpop.f32.mrf.mxu1 }
0x2033   :  { %v2803_v12 = vpop.f32.mrf.mxu1 }
0x2034   :  { %v2809_v14 = vpack.c.bf16 %v2803_v12, %v2803_v12 }
0x2035   :  { %v4136_v15 = vpop.f32.mrf.mxu1 }
0x2036   :  { %4141 = vmatmul.mubr.msk.bf16.vlgmr.msra.gmra.mxu0 %vm294_vm2, %v2809_v14 }
0x2037   :  { %4151 = vmatpush3.bf16.xpose.msra.mxu0 %v2904_v45  ;;  %v2806_v16 = vpop.f32.mrf.mxu1  ;;  %4152 = vmatprep.mubr.msk.bf16.mxu0 %vm4392_vm0, %v4391_v0 }
0x2038   :  { %4162 = vmatprep.subr.bf16.mxu0 %v4391_v0 }
0x2039   :  { %v4137_v21 = vpop.f32.mrf.mxu1 }
0x203e   :  { %4153 = vmatmul.mubr.msk.bf16.vlgmr.msra.gmra.mxu0 %vm294_vm2, %v2897_v19 }
0x203f   :  { %4163 = vmatpush3.bf16.msra.mxu0 %v5004_v37  ;;  %4164 = vmatprep.mubr.msk.bf16.mxu0 %vm4392_vm0, %v4391_v0 }
0x2040   :  { %4174 = vmatprep.subr.bf16.mxu0 %v4391_v0 }
0x20ee   :  { %v2890_v22 = vpop.f32.mrf.mxu1 }
0x20f0   :  { %v4148_v60 = vpop.f32.mrf.mxu1 }
0x20f2   :  { %v2893_v23 = vpop.f32.mrf.mxu1 }
0x20f4   :  { %v4149_v35 = vpop.f32.mrf.mxu1 }
0x20f6   :  { %v2847_v26 = vpop.f32.mrf.mxu0 }
0x20f7   :  { %v5097_v27 = vadd.f32 %v2890_v22, %v2847_v26 }
0x20f8   :  { %v4142_v38 = vpop.f32.mrf.mxu0 }
0x20fa   :  { %v2850_v28 = vpop.f32.mrf.mxu0 }
0x20fc   :  { %v4143_v33 = vpop.f32.mrf.mxu0 }
0x20fe   :  { %v2940_v34 = vpop.f32.mrf.mxu0 }
0x20ff   :  { %v2946_v40 = vsel %vm341_vm4, %v2940_v34, -inf }
0x2100   :  { %2947 = vmax.xlane.f32.xlu0 %v2946_v40  ;;  %v4154_v37 = vpop.f32.mrf.mxu0 }
0x2102   :  { %v2943_v13 = vpop.f32.mrf.mxu0 }
0x2104   :  { %v4155_v41 = vpop.f32.mrf.mxu0 }
0x2116   :  { %2958 = vrot.lane.b32.xlu0 %v5053_v11, %s4398_s16 }
0x211a   :  { %3051 = vrot.lane.b32.xlu0 %v5015_v53, %s4399_s21 }
0x2189   :  { %v2948_v42 = vpop.xlane.xlu0 %2947 }
0x218a   :  { %v2949_v43 = vsub.f32 %v2940_v34, %v2948_v42 }
0x218c   :  { %v2950_v44 = vmul.f32 1.442695, %v2949_v43 }
0x218d   :  { %v2959_v50 = vpop.permute.xlu0 %2958 }
0x218e   :  { %4373 = vpow2.f32 %v2950_v44  ;;  %v2964_v49 = vsel %vm357_vm3, %v2959_v50, 0 }
0x218f   :  { %4157 = vmatpush3.bf16.msra.mxu1 %v2964_v49 }
0x2190   :  { %4168 = vmatprep.subr.bf16.mxu1 %v4391_v0 }
0x2191   :  { %v3052_v6 = vpop.permute.xlu0 %3051 }
0x219b   :  { %v4374_v31 = vpop.eup %4373 }
0x219c   :  { %v2952_v52 = vsel %vm341_vm4, %v4374_v31, 0.0 }
0x219d   :  { %2953 = vadd.xlane.f32.xlu1 %v2952_v52 }
0x21ae   :  { %3053 = vrot.lane.b32.xlu1 %v5015_v53, %s4400_s22 }
0x2226   :  { %v2954_v54 = vpop.xlane.xlu1 %2953 }
0x2227   :  { %4375 = vrcp.f32 %v2954_v54 }
0x222a   :  { %v3054_v57 = vpop.permute.xlu1 %3053 }
0x222b   :  { %v3059_v59 = vsel %vm294_vm2, %v3054_v57, 0 }
0x2234   :  { %v4376_v55 = vpop.eup %4375 }
0x2235   :  { %v2956_v56 = vmul.f32 %v4376_v55, %v4374_v31 }
0x2237   :  { %v2957_v58 = vpack.c.bf16 %v2956_v56, %v2956_v56 }
0x2239   :  { %4159 = vmatmul.mubr.msk.bf16.vlgmr.msra.gmra.mxu1 %vm341_vm4, %v2957_v58 }
0x223a   :  { %4169 = vmatpush3.bf16.xpose.msra.mxu1 %v3059_v59  ;;  %4170 = vmatprep.mubr.msk.bf16.mxu1 %vm4392_vm0, %v4391_v0 }
0x223b   :  { %4180 = vmatprep.subr.bf16.mxu1 %v4391_v0 }
0x2241   :  { %4171 = vmatmul.mubr.msk.bf16.vlgmr.msra.gmra.mxu1 %vm294_vm2, %v3052_v6  ;;  %v4293_v6 = vld [vmem:[%s5249_s5 + $0x38] sm:$0xff]  }
0x2242   :  { %4181 = vmatpush3.bf16.msra.mxu1 %v5032_v1  ;;  %4182 = vmatprep.mubr.msk.bf16.mxu1 %vm4392_vm0, %v4391_v0  ;;  %v3210_v1 = vadd.f32 %v3209_v30, %v5070_v20 }
0x2243   :  { %4198 = vmatprep.subr.bf16.mxu1 %v4391_v0 }
0x2244   :  { %v3212_v7 = vadd.f32 %v3210_v1, %v4894_v46  ;;  %v4300_v1 = vld [vmem:[%s5250_s6 + $0x60] sm:$0xff]  }
0x2246   :  { %v3214_v17 = vsel %vm242_vm1, %v3212_v7, 0.0 }
0x22f9   :  { %v3000_v53 = vpop.f32.mrf.mxu1 }
0x22fa   :  { %v3006_v62 = vpack.c.bf16 %v3000_v53, %v3000_v53  ;;  %v4295_v53 = vld [vmem:[%s5249_s5 + $0x28] sm:$0xff]  }
0x22fb   :  { %v4160_v63 = vpop.f32.mrf.mxu1 }
0x22fc   :  { %4165 = vmatmul.mubr.msk.bf16.vlgmr.msra.gmra.mxu0 %vm294_vm2, %v3006_v62  ;;  %v4297_v62 = vld [vmem:[%s5250_s6 + $0x78] sm:$0xff]   ;;  %v4298_v63 = vld [vmem:[%s5250_s6 + $0x70] sm:$0xff]  }
0x22fd   :  { %v3003_v2 = vpop.f32.mrf.mxu1  ;;  %4176 = vmatprep.mubr.msk.bf16.mxu0 %vm4392_vm0, %v4391_v0 }
0x22fe   :  { %v4299_v2 = vld [vmem:[%s5250_s6 + $0x68] sm:$0xff]  }
0x22ff   :  { %v4161_v61 = vpop.f32.mrf.mxu1 }
0x2300   :  { %v4301_v61 = vld [vmem:[%s5250_s6 + $0x58] sm:$0xff]  }
0x2301   :  { %v3095_v4 = vpop.f32.mrf.mxu1 }
0x2302   :  { %v3101_v5 = vsel %vm341_vm4, %v3095_v4, -inf }
0x2303   :  { %3102 = vmax.xlane.f32.xlu1 %v3101_v5  ;;  %v4172_v8 = vpop.f32.mrf.mxu1 }
0x2305   :  { %v3098_v3 = vpop.f32.mrf.mxu1 }
0x2307   :  { %3215 = vadd.xlane.f32.xlu1 %v3214_v17  ;;  %v4173_v9 = vpop.f32.mrf.mxu1 }
0x238c   :  { %v3103_v25 = vpop.xlane.xlu1 %3102 }
0x238d   :  { %v3104_v10 = vsub.f32 %v3095_v4, %v3103_v25 }
0x238f   :  { %v3105_v12 = vmul.f32 1.442695, %v3104_v10  ;;  %v3243_v10 = vrot.slane %v4906_v51, %v1587_v32  ;;  %v4302_v32 = vld [vmem:[%s5250_s6 + $0x50] sm:$0xff]  }
0x2390   :  { %v3216_v34 = vpop.xlane.xlu1 %3215 }
0x2391   :  { %4377 = vpow2.f32 %v3105_v12  ;;  %v3220_v40 = vmul.f32 0.015625, %v3216_v34  ;;  %v3331_v34 = vrot.slane %v4906_v51, %v1675_v47 }
0x2393   :  { %v3222_v42 = vsub.f32 %v3212_v7, %v3220_v40 }
0x2395   :  { %v3224_v52 = vmul.f32 %v3222_v42, %v3222_v42 }
0x2397   :  { %v3226_v54 = vsel %vm242_vm1, %v3224_v52, 0.0 }
0x239e   :  { %v4378_v14 = vpop.eup %4377 }
0x239f   :  { %v3107_v20 = vsel %vm341_vm4, %v4378_v14, 0.0 }
0x23a0   :  { %3108 = vadd.xlane.f32.xlu0 %v3107_v20 }
0x23b6   :  { %3113 = vrot.lane.b32.xlu0 %v5053_v11, %s4399_s21 }
0x23bc   :  { %v3044_v15 = vpop.f32.mrf.mxu0 }
0x23bd   :  { %v3050_v46 = vadd.f32 %v3044_v15, %v5097_v27  ;;  %v3249_v15 = vrot.slane %v4906_v51, %v1593_v36  ;;  %v4303_v36 = vld [vmem:[%s5250_s6 + $0x48] sm:$0xff]  }
0x23be   :  { %v4166_v45 = vpop.f32.mrf.mxu0 }
0x23c0   :  { %v3047_v16 = vpop.f32.mrf.mxu0 }
0x23c2   :  { %v4167_v21 = vpop.f32.mrf.mxu0 }
0x2429   :  { %v3109_v19 = vpop.xlane.xlu0 %3108 }
0x242a   :  { %4379 = vrcp.f32 %v3109_v19  ;;  %v4304_v19 = vld [vmem:[%s5250_s6 + $0x40] sm:$0xff]  }
0x242d   :  { %v3114_v22 = vpop.permute.xlu0 %3113 }
0x242e   :  { %v3119_v60 = vsel %vm357_vm3, %v3114_v22, 0  ;;  %v3256_v22 = vrot.slane %v4906_v51, %v1600_v18 }
0x242f   :  { %4175 = vmatpush3.bf16.msra.mxu0 %v3119_v60 }
0x2430   :  { %4186 = vmatprep.subr.bf16.mxu0 %v4391_v0 }
0x2437   :  { %v4380_v23 = vpop.eup %4379 }
0x2438   :  { %v3111_v35 = vmul.f32 %v4380_v23, %v4378_v14 }
0x243a   :  { %v3112_v26 = vpack.c.bf16 %v3111_v35, %v3111_v35 }
0x243c   :  { %4177 = vmatmul.mubr.msk.bf16.vlgmr.msra.gmra.mxu0 %vm341_vm4, %v3112_v26 }
0x243d   :  { %4194 = vmatprep.mubr.msk.bf16.mxu0 %vm4392_vm0, %v4391_v0  ;;  %4187 = vmatpush3.bf16.msra.mxu0 %v4293_v6  ;;  %v4305_v6 = vld [vmem:[%s5251_s8 + $0x18] sm:$0xff]  }
0x243e   :  { %4188 = vmatprep.subr.bf16.mxu0 %v4391_v0 }
0x24fc   :  { %v3155_v11 = vpop.f32.mrf.mxu0 }
0x24fd   :  { %v3161_v27 = vpack.c.bf16 %v3155_v11, %v3155_v11 }
0x24fe   :  { %v4178_v38 = vpop.f32.mrf.mxu0 }
0x24ff   :  { %4183 = vmatmul.mubr.msk.bf16.vlgmr.msra.gmra.mxu1 %vm294_vm2, %v3161_v27 }
0x2500   :  { %v3158_v28 = vpop.f32.mrf.mxu0  ;;  %4214 = vmatprep.mubr.msk.bf16.mxu1 %vm4392_vm0, %v4391_v0  ;;  %4199 = vmatpush3.bf16.msra.mxu1 %v4297_v62 }
0x2501   :  { %4200 = vmatprep.subr.bf16.mxu1 %v4391_v0 }
0x2502   :  { %v4179_v33 = vpop.f32.mrf.mxu0 }
0x2504   :  { %4201 = vmatpush3.bf16.msra.mxu1 %v4298_v63 }
0x2505   :  { %4202 = vmatprep.subr.bf16.mxu1 %v4391_v0 }
0x2508   :  { %4203 = vmatpush3.bf16.msra.mxu1 %v4299_v2 }
0x2509   :  { %4204 = vmatprep.subr.bf16.mxu1 %v4391_v0 }
0x250c   :  { %4205 = vmatpush3.bf16.msra.mxu1 %v4300_v1 }
0x250d   :  { %4206 = vmatprep.subr.bf16.mxu1 %v4391_v0 }
0x2510   :  { %4207 = vmatpush3.bf16.msra.mxu1 %v4301_v61 }
0x2511   :  { %4208 = vmatprep.subr.bf16.mxu1 %v4391_v0 }
0x2514   :  { %4209 = vmatpush3.bf16.msra.mxu1 %v4302_v32 }
0x2515   :  { %4210 = vmatprep.subr.bf16.mxu1 %v4391_v0 }
0x2518   :  { %4211 = vmatpush3.bf16.msra.mxu1 %v4303_v36 }
0x2519   :  { %4212 = vmatprep.subr.bf16.mxu1 %v4391_v0 }
0x251c   :  { %4213 = vmatpush3.bf16.msra.mxu1 %v4304_v19 }
0x25bf   :  { %v3199_v37 = vpop.f32.mrf.mxu1 }
0x25c0   :  { %v3205_v13 = vadd.f32 %v3199_v37, %v3050_v46 }
0x25c1   :  { %v4184_v41 = vpop.f32.mrf.mxu1 }
0x25c2   :  { %v3211_v43 = vadd.f32 %v3209_v30, %v3205_v13  ;;  %v4296_v30 = vld [vmem:[%s5249_s5 + $0x20] sm:$0xff]  }
0x25c3   :  { %v3202_v44 = vpop.f32.mrf.mxu1 }
0x25c4   :  { %v3213_v50 = vadd.f32 %v3211_v43, %v4896_v48  ;;  %v4294_v48 = vld [vmem:[%s5249_s5 + $0x30] sm:$0xff]  }
0x25c5   :  { %v4185_v49 = vpop.f32.mrf.mxu1  ;;  %4189 = vmatpush3.bf16.msra.mxu0 %v4294_v48  ;;  %v4306_v48 = vld [vmem:[%s5251_s8 + $0x10] sm:$0xff]  }
0x25c6   :  { %v3217_v31 = vsel %vm242_vm1, %v3213_v50, 0.0  ;;  %4190 = vmatprep.subr.bf16.mxu0 %v4391_v0 }
0x25c7   :  { %3218 = vadd.xlane.f32.xlu1 %v3217_v31 }
0x25c9   :  { %4191 = vmatpush3.bf16.msra.mxu0 %v4295_v53  ;;  %v4307_v53 = vld [vmem:[%s5251_s8 + $0x8] sm:$0xff]  }
0x25ca   :  { %4192 = vmatprep.subr.bf16.mxu0 %v4391_v0 }
0x25cb   :  { %3227 = vadd.xlane.f32.xlu1 %v3226_v54 }
0x25cd   :  { %4193 = vmatpush3.bf16.msra.mxu0 %v4296_v30  ;;  %v4308_v30 = vld [vmem:[%s5251_s8] sm:$0xff]  }
0x25ce   :  { %4218 = vmatprep.subr.bf16.mxu0 %v4391_v0 }
0x2650   :  { %v3219_v55 = vpop.xlane.xlu1 %3218 }
0x2651   :  { %v3221_v56 = vmul.f32 0.015625, %v3219_v55 }
0x2653   :  { %v3223_v57 = vsub.f32 %v3213_v50, %v3221_v56 }
0x2654   :  { %v3228_v4 = vpop.xlane.xlu1 %3227 }
0x2655   :  { %v3225_v58 = vmul.f32 %v3223_v57, %v3223_v57  ;;  %v3232_v5 = vmul.f32 0.015625, %v3228_v4 }
0x2657   :  { %v3229_v59 = vsel %vm242_vm1, %v3225_v58, 0.0  ;;  %v3234_v7 = vadd.f32 1e-05, %v3232_v5 }
0x2658   :  { %3230 = vadd.xlane.f32.xlu1 %v3229_v59 }
0x2659   :  { %4381 = vrsqrt.f32 %v3234_v7 }
0x2666   :  { %v4382_v9 = vpop.eup %4381 }
0x2667   :  { %v3238_v25 = vmul.f32 %v4382_v9, %v3222_v42 }
0x2669   :  { %v3244_v20 = vmul.f32 %v3243_v10, %v3238_v25 }
0x266b   :  { %v3250_v45 = vadd.f32 %v3249_v15, %v3244_v20 }
0x26e1   :  { %v3231_v8 = vpop.xlane.xlu1 %3230 }
0x26e2   :  { %v3233_v3 = vmul.f32 0.015625, %v3231_v8  ;;  %v4390_v8 = vld [vmem:[%s5247_s7 + $0x10] sm:$0xff] }
0x26e3   :  { %v3458_v25 = vrot.slane %v4390_v8, %v1802_v24 }
0x26e4   :  { %v3235_v17 = vadd.f32 1e-05, %v3233_v3  ;;  %v3452_v3 = vrot.slane %v4390_v8, %v1796_v39 }
0x26e6   :  { %4383 = vrsqrt.f32 %v3235_v17 }
0x26f3   :  { %v4384_v12 = vpop.eup %4383 }
0x26f4   :  { %v3239_v14 = vmul.f32 %v4384_v12, %v3223_v57 }
0x26f6   :  { %v3245_v46 = vmul.f32 %v3243_v10, %v3239_v14 }
0x26f8   :  { %v3251_v16 = vadd.f32 %v3249_v15, %v3245_v46  ;;  %v3702_v15 = vld [vmem:[%s5252_s9] ss:$0 sm:$0xff] }
0x26fa   :  { %v3252_v21 = vpack.c.bf16 %v3251_v16, %v3250_v45 }
0x26fc   :  { %4195 = vmatmul.mubr.msk.bf16.vlgmr.msra.gmra.mxu0 %vm242_vm1, %v3252_v21 }
0x26fd   :  { %4226 = vmatprep.mubr.msk.bf16.mxu0 %vm4392_vm0, %v4391_v0  ;;  %4219 = vmatpush3.bf16.msra.mxu0 %v4305_v6 }
0x26fe   :  { %4220 = vmatprep.subr.bf16.mxu0 %v4391_v0 }
0x2701   :  { %4221 = vmatpush3.bf16.msra.mxu0 %v4306_v48 }
0x2702   :  { %4222 = vmatprep.subr.bf16.mxu0 %v4391_v0 }
0x2705   :  { %4223 = vmatpush3.bf16.msra.mxu0 %v4307_v53 }
0x2706   :  { %4224 = vmatprep.subr.bf16.mxu0 %v4391_v0 }
0x2709   :  { %4225 = vmatpush3.bf16.msra.mxu0 %v4308_v30 }
0x27bc   :  { %v3318_v60 = vpop.f32.mrf.mxu0 }
0x27bd   :  { %v3319_v35 = vadd.f32 %v3318_v60, %v3256_v22 }
0x27be   :  { %v4196_v23 = vpop.f32.mrf.mxu0 }
0x27bf   :  { %v3325_v38 = vmax.f32 %v3319_v35, 0.0 }
0x27c0   :  { %v3321_v26 = vpop.f32.mrf.mxu0 }
0x27c1   :  { %v3322_v11 = vadd.f32 %v3321_v26, %v3256_v22 }
0x27c2   :  { %v4197_v27 = vpop.f32.mrf.mxu0 }
0x27c3   :  { %v3326_v28 = vmax.f32 %v3322_v11, 0.0 }
0x27c5   :  { %v3327_v33 = vpack.c.bf16 %v3326_v28, %v3325_v38 }
0x27c7   :  { %4215 = vmatmul.mubr.bf16.vlgmr.msra.gmra.mxu1 %v3327_v33 }
0x2887   :  { %v3414_v40 = vpop.f32.mrf.mxu1 }
0x2888   :  { %v3415_v37 = vadd.f32 %v3414_v40, %v3331_v34 }
0x2889   :  { %v4216_v13 = vpop.f32.mrf.mxu1 }
0x288a   :  { %v3421_v41 = vadd.f32 %v3415_v37, %v3250_v45 }
0x288b   :  { %v3417_v42 = vpop.f32.mrf.mxu1 }
0x288c   :  { %v3418_v18 = vadd.f32 %v3417_v42, %v3331_v34  ;;  %v3423_v43 = vsel %vm242_vm1, %v3421_v41, 0.0 }
0x288d   :  { %3424 = vadd.xlane.f32.xlu1 %v3423_v43  ;;  %v4217_v44 = vpop.f32.mrf.mxu1 }
0x288e   :  { %v3422_v50 = vadd.f32 %v3418_v18, %v3251_v16 }
0x2890   :  { %v3426_v49 = vsel %vm242_vm1, %v3422_v50, 0.0 }
0x2891   :  { %3427 = vadd.xlane.f32.xlu1 %v3426_v49 }
0x2916   :  { %v3425_v31 = vpop.xlane.xlu1 %3424 }
0x2917   :  { %v3429_v52 = vmul.f32 0.015625, %v3425_v31 }
0x2919   :  { %v3431_v54 = vsub.f32 %v3421_v41, %v3429_v52 }
0x291a   :  { %v3428_v55 = vpop.xlane.xlu1 %3427 }
0x291b   :  { %v3430_v56 = vmul.f32 0.015625, %v3428_v55  ;;  %v3433_v47 = vmul.f32 %v3431_v54, %v3431_v54 }
0x291d   :  { %v3432_v51 = vsub.f32 %v3422_v50, %v3430_v56  ;;  %v3435_v57 = vsel %vm242_vm1, %v3433_v47, 0.0 }
0x291e   :  { %3436 = vadd.xlane.f32.xlu0 %v3435_v57 }
0x291f   :  { %v3434_v58 = vmul.f32 %v3432_v51, %v3432_v51 }
0x2921   :  { %v3438_v59 = vsel %vm242_vm1, %v3434_v58, 0.0 }
0x2922   :  { %3439 = vadd.xlane.f32.xlu1 %v3438_v59 }
0x29a7   :  { %v3437_v62 = vpop.xlane.xlu0 %3436 }
0x29a8   :  { %v3441_v63 = vmul.f32 0.015625, %v3437_v62 }
0x29aa   :  { %v3443_v2 = vadd.f32 1e-05, %v3441_v63 }
0x29ab   :  { %v3440_v1 = vpop.xlane.xlu1 %3439 }
0x29ac   :  { %4385 = vrsqrt.f32 %v3443_v2  ;;  %v3442_v61 = vmul.f32 0.015625, %v3440_v1 }
0x29ae   :  { %v3444_v4 = vadd.f32 1e-05, %v3442_v61 }
0x29b0   :  { %4387 = vrsqrt.f32 %v3444_v4 }
0x29b9   :  { %v4386_v5 = vpop.eup %4385 }
0x29ba   :  { %v3447_v7 = vmul.f32 %v4386_v5, %v3431_v54 }
0x29bc   :  { %v3453_v9 = vmul.f32 %v3452_v3, %v3447_v7 }
0x29bd   :  { %v4388_v17 = vpop.eup %4387 }
0x29be   :  { %v3448_v0 = vmul.f32 %v4388_v17, %v3432_v51  ;;  %v3459_v12 = vadd.f32 %v3458_v25, %v3453_v9 }
0x29c0   :  { %v3454_v10 = vmul.f32 %v3452_v3, %v3448_v0 }
0x29c2   :  { %v3460_v14 = vadd.f32 %v3458_v25, %v3454_v10 }
0x29c4   :  { %v3461_v20 = vpack.c.bf16 %v3460_v14, %v3459_v12 }
0x29c6   :  { %4227 = vmatmul.mubr.msk.bf16.vlgmr.msra.gmra.mxu0 %vm242_vm1, %v3461_v20 }
0x2a86   :  { %v3538_v46 = vpop.f32.mrf.mxu0 }
0x2a87   :  { %v3539_v45 = vadd.f32 %v3702_v15, %v3538_v46 }
0x2a88   :  { %v4228_v16 = vpop.f32.mrf.mxu0 }
0x2a89   :  { %3545 = vst [vmem:[%s5253_s10] sm:$0xff] %v3539_v45 }
0x2a8a   :  { %v3541_v39 = vpop.f32.mrf.mxu0 }
0x2a8b   :  { %v3542_v29 = vadd.f32 %v3702_v15, %v3541_v39 }
0x2a8c   :  { %v4229_v24 = vpop.f32.mrf.mxu0 }
0x2a8d   :  { %3546 = vst [vmem:[%s5253_s10 + $0x8] sm:$0xff] %v3542_v29 }

</bundles_post_ra>
